<compile_context>
chip_gen: v7x
topology: tpu7x:2x2x1
jax: 0.10.0
libtpu: 0.0.40
codegen_flags: <defaults>
</compile_context>

<pallas_src>
import functools

import jax
import jax.numpy as jnp
from jax.experimental import pallas as pl
from jax.experimental.pallas import tpu as pltpu

H1, H2, H3 = 786, 512, 256      # hidden sizes fixed by the module definition
LANE = 128
H1_PAD = 896                    # 786 padded up to 7*128 (lane-dense layers 1/2)


def _round_up(x, m):
    return ((x + m - 1) // m) * m


def _prelu(h, a):
    # nn.PReLU(): max(0, x) + a * min(0, x)   (single shared slope)
    return jnp.where(h > 0, h, a * h)


def encoder_kernel(alpha_ref,                      # SMEM (3,)  PReLU slopes
                   x_ref,                          # VMEM (tb, D_in)
                   w1_ref, b1_ref,                 # (D_in, 896) bf16, (1, 896) f32
                   w2_ref, b2_ref,                 # (896, 512) bf16, (1, 512) f32
                   w3_ref, b3_ref,                 # (512, 256) bf16, (1, 256) f32
                   w4_ref, b4_ref,                 # (256, D_out_pad) bf16, (1, D_out_pad) f32
                   o_ref):                         # VMEM (tb, D_out_pad)
    # bf16 operands feed the MXU, accumulation stays in f32;
    # bias add + PReLU are kept in f32 (v5e VPU/EUP has no bf16 path).
    h = jnp.dot(x_ref[...].astype(jnp.bfloat16), w1_ref[...],
                preferred_element_type=jnp.float32) + b1_ref[...]
    h = _prelu(h, alpha_ref[0])

    h = jnp.dot(h.astype(jnp.bfloat16), w2_ref[...],
                preferred_element_type=jnp.float32) + b2_ref[...]
    h = _prelu(h, alpha_ref[1])

    h = jnp.dot(h.astype(jnp.bfloat16), w3_ref[...],
                preferred_element_type=jnp.float32) + b3_ref[...]
    h = _prelu(h, alpha_ref[2])

    h = jnp.dot(h.astype(jnp.bfloat16), w4_ref[...],
                preferred_element_type=jnp.float32) + b4_ref[...]
    o_ref[...] = h.astype(o_ref.dtype)


@functools.partial(jax.jit, static_argnames=("block_b", "single_buffer_weights"))
def _encoder_pallas(x, alphas, w1, b1, w2, b2, w3, b3, w4, b4,
                    *, block_b, single_buffer_weights):
    B, D_in = x.shape
    D_out = w4.shape[1]
    D_out_pad = _round_up(D_out, LANE)          # lane-dense output stores
    tb = block_b
    grid = (pl.cdiv(B, tb),)

    def pad_cols(a, n):
        return jnp.pad(a, ((0, 0), (0, n - a.shape[1])))

    def pad_rows(a, n):
        return jnp.pad(a, ((0, n - a.shape[0]), (0, 0)))

    # Explicit zero padding keeps the math identical:
    #  - layer-1 padded columns get zero weight + zero bias -> activation 0,
    #    and layer-2's padded rows are zero, so they contribute nothing.
    #  - padded output columns are sliced off below.
    w1p = pad_cols(w1, H1_PAD).astype(jnp.bfloat16)
    b1p = pad_cols(b1, H1_PAD).astype(jnp.float32)
    w2p = pad_rows(w2, H1_PAD).astype(jnp.bfloat16)
    b2p = b2.astype(jnp.float32)
    w3p = w3.astype(jnp.bfloat16)
    b3p = b3.astype(jnp.float32)
    w4p = pad_cols(w4, D_out_pad).astype(jnp.bfloat16)
    b4p = pad_cols(b4, D_out_pad).astype(jnp.float32)

    # Weight/bias blocks: whole array, constant index_map (never re-fetched
    # across the batch grid). Single-buffer them when the build supports it.
    wkw = {}
    if single_buffer_weights:
        wkw = dict(pipeline_mode=pl.Buffered(1))

    def rep(shape):
        return pl.BlockSpec(shape, lambda i: (0,) * len(shape), **wkw)

    out = pl.pallas_call(
        encoder_kernel,
        out_shape=jax.ShapeDtypeStruct((B, D_out_pad), x.dtype),
        grid=grid,
        in_specs=[
            pl.BlockSpec(memory_space=pltpu.MemorySpace.SMEM),   # PReLU slopes
            pl.BlockSpec((tb, D_in), lambda i: (i, 0)),          # x batch tile
            rep(w1p.shape), rep(b1p.shape),
            rep(w2p.shape), rep(b2p.shape),
            rep(w3p.shape), rep(b3p.shape),
            rep(w4p.shape), rep(b4p.shape),
        ],
        out_specs=pl.BlockSpec((tb, D_out_pad), lambda i: (i, 0)),
        compiler_params=pltpu.CompilerParams(
            dimension_semantics=("parallel",),
            # stay well below v7x's 64 MiB physical VMEM per TensorCore
            vmem_limit_bytes=40 * 1024 * 1024,
        ),
    )(alphas, x, w1p, b1p, w2p, b2p, w3p, b3p, w4p, b4p)

    return out[:, :D_out]


def _default_block_b(B):
    # Bounded batch tile: <=256 rows (MXU pass height on v6e/v7x; pass
    # block_b=128 explicitly on v5e), multiple of 8, and >=2 grid steps when
    # the batch allows it so v7x can shard across its 2 TensorCores.
    if B <= 16:
        return B
    return min(256, _round_up(pl.cdiv(B, 2), 8))


def encoder_forward(x, alphas, w1, b1, w2, b2, w3, b3, w4, b4, *, block_b=None):
    tb = _default_block_b(x.shape[0]) if block_b is None else block_b
    try:
        return _encoder_pallas(x, alphas, w1, b1, w2, b2, w3, b3, w4, b4,
                               block_b=tb, single_buffer_weights=True)
    except Exception:
        # pipeline_mode=pl.Buffered(1) not accepted by this build at top-level
        # pallas_call; fall back to default (double-buffered) weight blocks.
        return _encoder_pallas(x, alphas, w1, b1, w2, b2, w3, b3, w4, b4,
                               block_b=tb, single_buffer_weights=False)


def init_linear(key, fan_in, fan_out, dtype=jnp.float32):
    """Deterministic init mimicking torch Linear (uniform +/- 1/sqrt(fan_in)).
    Weight is stored as [fan_in, fan_out] (pre-transposed for x @ W)."""
    kw, kb = jax.random.split(key)
    bound = 1.0 / jnp.sqrt(fan_in)
    w = jax.random.uniform(kw, (fan_in, fan_out), dtype, -bound, bound)
    b = jax.random.uniform(kb, (1, fan_out), dtype, -bound, bound)
    return w, b


def reference_forward(x, alphas, w1, b1, w2, b2, w3, b3, w4, b4):
    h = _prelu(x @ w1 + b1, alphas[0])
    h = _prelu(h @ w2 + b2, alphas[1])
    h = _prelu(h @ w3 + b3, alphas[2])
    return h @ w4 + b4


def reference_forward_mixed(x, alphas, w1, b1, w2, b2, w3, b3, w4, b4):
    # Mimics the kernel arithmetic: bf16 MXU operands, f32 accumulation.
    def mm(a, w):
        return jnp.dot(a.astype(jnp.bfloat16), w.astype(jnp.bfloat16),
                       preferred_element_type=jnp.float32)
    h = _prelu(mm(x, w1) + b1, alphas[0])
    h = _prelu(mm(h, w2) + b2, alphas[1])
    h = _prelu(mm(h, w3) + b3, alphas[2])
    return mm(h, w4) + b4


if __name__ == "__main__":
    batch = 8
    input_size = 32
    output_size = 16

    key = jax.random.PRNGKey(0)
    kx, k1, k2, k3, k4 = jax.random.split(key, 5)

    x = jax.random.normal(kx, (batch, input_size), jnp.float32)

    w1, b1 = init_linear(k1, input_size, H1)
    w2, b2 = init_linear(k2, H1, H2)
    w3, b3 = init_linear(k3, H2, H3)
    w4, b4 = init_linear(k4, H3, output_size)

    # nn.PReLU() default slope = 0.25 for each of the three activations
    alphas = jnp.full((3,), 0.25, jnp.float32)

    out = encoder_forward(x, alphas, w1, b1, w2, b2, w3, b3, w4, b4)
    out = jax.block_until_ready(out)

    ref_mixed = reference_forward_mixed(x, alphas, w1, b1, w2, b2, w3, b3, w4, b4)
    ref_f32 = reference_forward(x, alphas, w1, b1, w2, b2, w3, b3, w4, b4)

    assert out.shape == (batch, output_size)
    assert jnp.allclose(out, ref_mixed, atol=5e-3, rtol=5e-3), \
        "mismatch vs mixed-precision reference"
    assert jnp.allclose(out, ref_f32, atol=3e-2, rtol=3e-2), \
        "mismatch vs f32 reference"

    print("KERNEL_OK")
</pallas_src>

<mosaic_0001>
module attributes {stable_mosaic.version = 11 : i64} {
  func.func @encoder_kernel(%arg0: i32, %arg1: memref<3xf32, #tpu.memory_space<smem>>, %arg2: memref<8x32xf32, #tpu.memory_space<vmem>>, %arg3: memref<32x896xbf16, #tpu.memory_space<vmem>>, %arg4: memref<1x896xf32, #tpu.memory_space<vmem>>, %arg5: memref<896x512xbf16, #tpu.memory_space<vmem>>, %arg6: memref<1x512xf32, #tpu.memory_space<vmem>>, %arg7: memref<512x256xbf16, #tpu.memory_space<vmem>>, %arg8: memref<1x256xf32, #tpu.memory_space<vmem>>, %arg9: memref<256x128xbf16, #tpu.memory_space<vmem>>, %arg10: memref<1x128xf32, #tpu.memory_space<vmem>>, %arg11: memref<8x128xf32, #tpu.memory_space<vmem>>) attributes {dimension_semantics = [#tpu.dimension_semantics<parallel>], iteration_bounds = array<i64: 1>, scalar_prefetch = 0 : i64, scratch_operands = 0 : i64, tpu.core_type = #tpu.core_type<tc>, window_params = [{transform_indices = @transform_0, window_bounds = array<i64: 3>}, {transform_indices = @transform_1, window_bounds = array<i64: 8, 32>}, {pipeline_mode = #tpu.pipeline_mode<synchronous>, transform_indices = @transform_2, window_bounds = array<i64: 32, 896>}, {pipeline_mode = #tpu.pipeline_mode<synchronous>, transform_indices = @transform_3, window_bounds = array<i64: 1, 896>}, {pipeline_mode = #tpu.pipeline_mode<synchronous>, transform_indices = @transform_4, window_bounds = array<i64: 896, 512>}, {pipeline_mode = #tpu.pipeline_mode<synchronous>, transform_indices = @transform_5, window_bounds = array<i64: 1, 512>}, {pipeline_mode = #tpu.pipeline_mode<synchronous>, transform_indices = @transform_6, window_bounds = array<i64: 512, 256>}, {pipeline_mode = #tpu.pipeline_mode<synchronous>, transform_indices = @transform_7, window_bounds = array<i64: 1, 256>}, {pipeline_mode = #tpu.pipeline_mode<synchronous>, transform_indices = @transform_8, window_bounds = array<i64: 256, 128>}, {pipeline_mode = #tpu.pipeline_mode<synchronous>, transform_indices = @transform_9, window_bounds = array<i64: 1, 128>}, {transform_indices = @transform_10, window_bounds = array<i64: 8, 128>}]} {
    %c0 = arith.constant 0 : index
    %c0_0 = arith.constant 0 : index
    %0 = vector.load %arg2[%c0, %c0_0] : memref<8x32xf32, #tpu.memory_space<vmem>>, vector<8x32xf32>
    %1 = arith.truncf %0 : vector<8x32xf32> to vector<8x32xbf16>
    %c0_1 = arith.constant 0 : index
    %c0_2 = arith.constant 0 : index
    %2 = vector.load %arg3[%c0_1, %c0_2] : memref<32x896xbf16, #tpu.memory_space<vmem>>, vector<32x896xbf16>
    %cst = arith.constant dense<0.000000e+00> : vector<8x896xf32>
    %3 = tpu.matmul %1, %2, %cst {dimension_numbers = #tpu.dot_dimension_numbers<[1], [0], [0], [1], [0, 0, 1, 1], [], []>} : vector<8x32xbf16>, vector<32x896xbf16>, vector<8x896xf32> -> vector<8x896xf32>
    %c0_3 = arith.constant 0 : index
    %c0_4 = arith.constant 0 : index
    %4 = vector.load %arg4[%c0_3, %c0_4] : memref<1x896xf32, #tpu.memory_space<vmem>>, vector<1x896xf32>
    %5 = vector.broadcast %4 : vector<1x896xf32> to vector<8x896xf32>
    %6 = arith.addf %3, %5 : vector<8x896xf32>
    %c0_5 = arith.constant 0 : index
    %7 = memref.load %arg1[%c0_5] : memref<3xf32, #tpu.memory_space<smem>>
    %cst_6 = arith.constant 0.000000e+00 : f32
    %8 = vector.broadcast %cst_6 : f32 to vector<8x896xf32>
    %9 = arith.cmpf ogt, %6, %8 : vector<8x896xf32>
    %10 = vector.broadcast %7 : f32 to vector<8x896xf32>
    %11 = arith.mulf %10, %6 : vector<8x896xf32>
    %12 = arith.select %9, %6, %11 : vector<8x896xi1>, vector<8x896xf32>
    %13 = arith.truncf %12 : vector<8x896xf32> to vector<8x896xbf16>
    %c0_7 = arith.constant 0 : index
    %c0_8 = arith.constant 0 : index
    %14 = vector.load %arg5[%c0_7, %c0_8] : memref<896x512xbf16, #tpu.memory_space<vmem>>, vector<896x512xbf16>
    %cst_9 = arith.constant dense<0.000000e+00> : vector<8x512xf32>
    %15 = tpu.matmul %13, %14, %cst_9 {dimension_numbers = #tpu.dot_dimension_numbers<[1], [0], [0], [1], [0, 0, 1, 1], [], []>} : vector<8x896xbf16>, vector<896x512xbf16>, vector<8x512xf32> -> vector<8x512xf32>
    %c0_10 = arith.constant 0 : index
    %c0_11 = arith.constant 0 : index
    %16 = vector.load %arg6[%c0_10, %c0_11] : memref<1x512xf32, #tpu.memory_space<vmem>>, vector<1x512xf32>
    %17 = vector.broadcast %16 : vector<1x512xf32> to vector<8x512xf32>
    %18 = arith.addf %15, %17 : vector<8x512xf32>
    %c1 = arith.constant 1 : index
    %19 = memref.load %arg1[%c1] : memref<3xf32, #tpu.memory_space<smem>>
    %cst_12 = arith.constant 0.000000e+00 : f32
    %20 = vector.broadcast %cst_12 : f32 to vector<8x512xf32>
    %21 = arith.cmpf ogt, %18, %20 : vector<8x512xf32>
    %22 = vector.broadcast %19 : f32 to vector<8x512xf32>
    %23 = arith.mulf %22, %18 : vector<8x512xf32>
    %24 = arith.select %21, %18, %23 : vector<8x512xi1>, vector<8x512xf32>
    %25 = arith.truncf %24 : vector<8x512xf32> to vector<8x512xbf16>
    %c0_13 = arith.constant 0 : index
    %c0_14 = arith.constant 0 : index
    %26 = vector.load %arg7[%c0_13, %c0_14] : memref<512x256xbf16, #tpu.memory_space<vmem>>, vector<512x256xbf16>
    %cst_15 = arith.constant dense<0.000000e+00> : vector<8x256xf32>
    %27 = tpu.matmul %25, %26, %cst_15 {dimension_numbers = #tpu.dot_dimension_numbers<[1], [0], [0], [1], [0, 0, 1, 1], [], []>} : vector<8x512xbf16>, vector<512x256xbf16>, vector<8x256xf32> -> vector<8x256xf32>
    %c0_16 = arith.constant 0 : index
    %c0_17 = arith.constant 0 : index
    %28 = vector.load %arg8[%c0_16, %c0_17] : memref<1x256xf32, #tpu.memory_space<vmem>>, vector<1x256xf32>
    %29 = vector.broadcast %28 : vector<1x256xf32> to vector<8x256xf32>
    %30 = arith.addf %27, %29 : vector<8x256xf32>
    %c2 = arith.constant 2 : index
    %31 = memref.load %arg1[%c2] : memref<3xf32, #tpu.memory_space<smem>>
    %cst_18 = arith.constant 0.000000e+00 : f32
    %32 = vector.broadcast %cst_18 : f32 to vector<8x256xf32>
    %33 = arith.cmpf ogt, %30, %32 : vector<8x256xf32>
    %34 = vector.broadcast %31 : f32 to vector<8x256xf32>
    %35 = arith.mulf %34, %30 : vector<8x256xf32>
    %36 = arith.select %33, %30, %35 : vector<8x256xi1>, vector<8x256xf32>
    %37 = arith.truncf %36 : vector<8x256xf32> to vector<8x256xbf16>
    %c0_19 = arith.constant 0 : index
    %c0_20 = arith.constant 0 : index
    %38 = vector.load %arg9[%c0_19, %c0_20] : memref<256x128xbf16, #tpu.memory_space<vmem>>, vector<256x128xbf16>
    %cst_21 = arith.constant dense<0.000000e+00> : vector<8x128xf32>
    %39 = tpu.matmul %37, %38, %cst_21 {dimension_numbers = #tpu.dot_dimension_numbers<[1], [0], [0], [1], [0, 0, 1, 1], [], []>} : vector<8x256xbf16>, vector<256x128xbf16>, vector<8x128xf32> -> vector<8x128xf32>
    %c0_22 = arith.constant 0 : index
    %c0_23 = arith.constant 0 : index
    %40 = vector.load %arg10[%c0_22, %c0_23] : memref<1x128xf32, #tpu.memory_space<vmem>>, vector<1x128xf32>
    %41 = vector.broadcast %40 : vector<1x128xf32> to vector<8x128xf32>
    %42 = arith.addf %39, %41 : vector<8x128xf32>
    %c0_24 = arith.constant 0 : index
    %c0_25 = arith.constant 0 : index
    %43 = vector.load %arg11[%c0_24, %c0_25] : memref<8x128xf32, #tpu.memory_space<vmem>>, vector<8x128xf32>
    tpu.vector_store %arg11[%c0_24, %c0_25], %42 {strides = array<i32>} : memref<8x128xf32, #tpu.memory_space<vmem>>, vector<8x128xf32>,
    return
  }
  func.func @transform_0(%arg0: i32) -> i32 {
    %c0_i32 = arith.constant 0 : i32
    %c0_i32_0 = arith.constant 0 : i32
    return %c0_i32 : i32
  }
  func.func @transform_1(%arg0: i32) -> (i32, i32) {
    %c0_i32 = arith.constant 0 : i32
    %c0_i32_0 = arith.constant 0 : i32
    return %arg0, %c0_i32 : i32, i32
  }
  func.func @transform_2(%arg0: i32) -> (i32, i32) {
    %c0_i32 = arith.constant 0 : i32
    %c0_i32_0 = arith.constant 0 : i32
    %c0_i32_1 = arith.constant 0 : i32
    return %c0_i32, %c0_i32_0 : i32, i32
  }
  func.func @transform_3(%arg0: i32) -> (i32, i32) {
    %c0_i32 = arith.constant 0 : i32
    %c0_i32_0 = arith.constant 0 : i32
    %c0_i32_1 = arith.constant 0 : i32
    return %c0_i32, %c0_i32_0 : i32, i32
  }
  func.func @transform_4(%arg0: i32) -> (i32, i32) {
    %c0_i32 = arith.constant 0 : i32
    %c0_i32_0 = arith.constant 0 : i32
    %c0_i32_1 = arith.constant 0 : i32
    return %c0_i32, %c0_i32_0 : i32, i32
  }
  func.func @transform_5(%arg0: i32) -> (i32, i32) {
    %c0_i32 = arith.constant 0 : i32
    %c0_i32_0 = arith.constant 0 : i32
    %c0_i32_1 = arith.constant 0 : i32
    return %c0_i32, %c0_i32_0 : i32, i32
  }
  func.func @transform_6(%arg0: i32) -> (i32, i32) {
    %c0_i32 = arith.constant 0 : i32
    %c0_i32_0 = arith.constant 0 : i32
    %c0_i32_1 = arith.constant 0 : i32
    return %c0_i32, %c0_i32_0 : i32, i32
  }
  func.func @transform_7(%arg0: i32) -> (i32, i32) {
    %c0_i32 = arith.constant 0 : i32
    %c0_i32_0 = arith.constant 0 : i32
    %c0_i32_1 = arith.constant 0 : i32
    return %c0_i32, %c0_i32_0 : i32, i32
  }
  func.func @transform_8(%arg0: i32) -> (i32, i32) {
    %c0_i32 = arith.constant 0 : i32
    %c0_i32_0 = arith.constant 0 : i32
    %c0_i32_1 = arith.constant 0 : i32
    return %c0_i32, %c0_i32_0 : i32, i32
  }
  func.func @transform_9(%arg0: i32) -> (i32, i32) {
    %c0_i32 = arith.constant 0 : i32
    %c0_i32_0 = arith.constant 0 : i32
    %c0_i32_1 = arith.constant 0 : i32
    return %c0_i32, %c0_i32_0 : i32, i32
  }
  func.func @transform_10(%arg0: i32) -> (i32, i32) {
    %c0_i32 = arith.constant 0 : i32
    %c0_i32_0 = arith.constant 0 : i32
    return %arg0, %c0_i32 : i32, i32
  }
}

module attributes {stable_mosaic.version = 11 : i64} {
  func.func @encoder_kernel(%arg0: i32, %arg1: memref<3xf32, #tpu.memory_space<smem>>, %arg2: memref<8x32xf32, #tpu.memory_space<vmem>>, %arg3: memref<32x896xbf16, #tpu.memory_space<vmem>>, %arg4: memref<1x896xf32, #tpu.memory_space<vmem>>, %arg5: memref<896x512xbf16, #tpu.memory_space<vmem>>, %arg6: memref<1x512xf32, #tpu.memory_space<vmem>>, %arg7: memref<512x256xbf16, #tpu.memory_space<vmem>>, %arg8: memref<1x256xf32, #tpu.memory_space<vmem>>, %arg9: memref<256x128xbf16, #tpu.memory_space<vmem>>, %arg10: memref<1x128xf32, #tpu.memory_space<vmem>>, %arg11: memref<8x128xf32, #tpu.memory_space<vmem>>) attributes {dimension_semantics = [#tpu.dimension_semantics<parallel>], iteration_bounds = array<i64: 1>, scalar_prefetch = 0 : i64, scratch_operands = 0 : i64, tpu.core_type = #tpu.core_type<tc>, window_params = [{transform_indices = @transform_0, window_bounds = array<i64: 3>}, {transform_indices = @transform_1, window_bounds = array<i64: 8, 32>}, {pipeline_mode = #tpu.pipeline_mode<synchronous>, transform_indices = @transform_2, window_bounds = array<i64: 32, 896>}, {pipeline_mode = #tpu.pipeline_mode<synchronous>, transform_indices = @transform_3, window_bounds = array<i64: 1, 896>}, {pipeline_mode = #tpu.pipeline_mode<synchronous>, transform_indices = @transform_4, window_bounds = array<i64: 896, 512>}, {pipeline_mode = #tpu.pipeline_mode<synchronous>, transform_indices = @transform_5, window_bounds = array<i64: 1, 512>}, {pipeline_mode = #tpu.pipeline_mode<synchronous>, transform_indices = @transform_6, window_bounds = array<i64: 512, 256>}, {pipeline_mode = #tpu.pipeline_mode<synchronous>, transform_indices = @transform_7, window_bounds = array<i64: 1, 256>}, {pipeline_mode = #tpu.pipeline_mode<synchronous>, transform_indices = @transform_8, window_bounds = array<i64: 256, 128>}, {pipeline_mode = #tpu.pipeline_mode<synchronous>, transform_indices = @transform_9, window_bounds = array<i64: 1, 128>}, {transform_indices = @transform_10, window_bounds = array<i64: 8, 128>}]} {
    %c0 = arith.constant 0 : index
    %c0_0 = arith.constant 0 : index
    %0 = vector.load %arg2[%c0, %c0_0] : memref<8x32xf32, #tpu.memory_space<vmem>>, vector<8x32xf32>
    %1 = arith.truncf %0 : vector<8x32xf32> to vector<8x32xbf16>
    %c0_1 = arith.constant 0 : index
    %c0_2 = arith.constant 0 : index
    %2 = vector.load %arg3[%c0_1, %c0_2] : memref<32x896xbf16, #tpu.memory_space<vmem>>, vector<32x896xbf16>
    %cst = arith.constant dense<0.000000e+00> : vector<8x896xf32>
    %3 = tpu.matmul %1, %2, %cst {dimension_numbers = #tpu.dot_dimension_numbers<[1], [0], [0], [1], [0, 0, 1, 1], [], []>} : vector<8x32xbf16>, vector<32x896xbf16>, vector<8x896xf32> -> vector<8x896xf32>
    %c0_3 = arith.constant 0 : index
    %c0_4 = arith.constant 0 : index
    %4 = vector.load %arg4[%c0_3, %c0_4] : memref<1x896xf32, #tpu.memory_space<vmem>>, vector<1x896xf32>
    %5 = vector.broadcast %4 : vector<1x896xf32> to vector<8x896xf32>
    %6 = arith.addf %3, %5 : vector<8x896xf32>
    %c0_5 = arith.constant 0 : index
    %7 = memref.load %arg1[%c0_5] : memref<3xf32, #tpu.memory_space<smem>>
    %cst_6 = arith.constant 0.000000e+00 : f32
    %8 = vector.broadcast %cst_6 : f32 to vector<8x896xf32>
    %9 = arith.cmpf ogt, %6, %8 : vector<8x896xf32>
    %10 = vector.broadcast %7 : f32 to vector<8x896xf32>
    %11 = arith.mulf %10, %6 : vector<8x896xf32>
    %12 = arith.select %9, %6, %11 : vector<8x896xi1>, vector<8x896xf32>
    %13 = arith.truncf %12 : vector<8x896xf32> to vector<8x896xbf16>
    %c0_7 = arith.constant 0 : index
    %c0_8 = arith.constant 0 : index
    %14 = vector.load %arg5[%c0_7, %c0_8] : memref<896x512xbf16, #tpu.memory_space<vmem>>, vector<896x512xbf16>
    %cst_9 = arith.constant dense<0.000000e+00> : vector<8x512xf32>
    %15 = tpu.matmul %13, %14, %cst_9 {dimension_numbers = #tpu.dot_dimension_numbers<[1], [0], [0], [1], [0, 0, 1, 1], [], []>} : vector<8x896xbf16>, vector<896x512xbf16>, vector<8x512xf32> -> vector<8x512xf32>
    %c0_10 = arith.constant 0 : index
    %c0_11 = arith.constant 0 : index
    %16 = vector.load %arg6[%c0_10, %c0_11] : memref<1x512xf32, #tpu.memory_space<vmem>>, vector<1x512xf32>
    %17 = vector.broadcast %16 : vector<1x512xf32> to vector<8x512xf32>
    %18 = arith.addf %15, %17 : vector<8x512xf32>
    %c1 = arith.constant 1 : index
    %19 = memref.load %arg1[%c1] : memref<3xf32, #tpu.memory_space<smem>>
    %cst_12 = arith.constant 0.000000e+00 : f32
    %20 = vector.broadcast %cst_12 : f32 to vector<8x512xf32>
    %21 = arith.cmpf ogt, %18, %20 : vector<8x512xf32>
    %22 = vector.broadcast %19 : f32 to vector<8x512xf32>
    %23 = arith.mulf %22, %18 : vector<8x512xf32>
    %24 = arith.select %21, %18, %23 : vector<8x512xi1>, vector<8x512xf32>
    %25 = arith.truncf %24 : vector<8x512xf32> to vector<8x512xbf16>
    %c0_13 = arith.constant 0 : index
    %c0_14 = arith.constant 0 : index
    %26 = vector.load %arg7[%c0_13, %c0_14] : memref<512x256xbf16, #tpu.memory_space<vmem>>, vector<512x256xbf16>
    %cst_15 = arith.constant dense<0.000000e+00> : vector<8x256xf32>
    %27 = tpu.matmul %25, %26, %cst_15 {dimension_numbers = #tpu.dot_dimension_numbers<[1], [0], [0], [1], [0, 0, 1, 1], [], []>} : vector<8x512xbf16>, vector<512x256xbf16>, vector<8x256xf32> -> vector<8x256xf32>
    %c0_16 = arith.constant 0 : index
    %c0_17 = arith.constant 0 : index
    %28 = vector.load %arg8[%c0_16, %c0_17] : memref<1x256xf32, #tpu.memory_space<vmem>>, vector<1x256xf32>
    %29 = vector.broadcast %28 : vector<1x256xf32> to vector<8x256xf32>
    %30 = arith.addf %27, %29 : vector<8x256xf32>
    %c2 = arith.constant 2 : index
    %31 = memref.load %arg1[%c2] : memref<3xf32, #tpu.memory_space<smem>>
    %cst_18 = arith.constant 0.000000e+00 : f32
    %32 = vector.broadcast %cst_18 : f32 to vector<8x256xf32>
    %33 = arith.cmpf ogt, %30, %32 : vector<8x256xf32>
    %34 = vector.broadcast %31 : f32 to vector<8x256xf32>
    %35 = arith.mulf %34, %30 : vector<8x256xf32>
    %36 = arith.select %33, %30, %35 : vector<8x256xi1>, vector<8x256xf32>
    %37 = arith.truncf %36 : vector<8x256xf32> to vector<8x256xbf16>
    %c0_19 = arith.constant 0 : index
    %c0_20 = arith.constant 0 : index
    %38 = vector.load %arg9[%c0_19, %c0_20] : memref<256x128xbf16, #tpu.memory_space<vmem>>, vector<256x128xbf16>
    %cst_21 = arith.constant dense<0.000000e+00> : vector<8x128xf32>
    %39 = tpu.matmul %37, %38, %cst_21 {dimension_numbers = #tpu.dot_dimension_numbers<[1], [0], [0], [1], [0, 0, 1, 1], [], []>} : vector<8x256xbf16>, vector<256x128xbf16>, vector<8x128xf32> -> vector<8x128xf32>
    %c0_22 = arith.constant 0 : index
    %c0_23 = arith.constant 0 : index
    %40 = vector.load %arg10[%c0_22, %c0_23] : memref<1x128xf32, #tpu.memory_space<vmem>>, vector<1x128xf32>
    %41 = vector.broadcast %40 : vector<1x128xf32> to vector<8x128xf32>
    %42 = arith.addf %39, %41 : vector<8x128xf32>
    %c0_24 = arith.constant 0 : index
    %c0_25 = arith.constant 0 : index
    %43 = vector.load %arg11[%c0_24, %c0_25] : memref<8x128xf32, #tpu.memory_space<vmem>>, vector<8x128xf32>
    tpu.vector_store %arg11[%c0_24, %c0_25], %42 {strides = array<i32>} : memref<8x128xf32, #tpu.memory_space<vmem>>, vector<8x128xf32>,
    return
  }
  func.func @transform_0(%arg0: i32) -> i32 {
    %c0_i32 = arith.constant 0 : i32
    %c0_i32_0 = arith.constant 0 : i32
    return %c0_i32 : i32
  }
  func.func @transform_1(%arg0: i32) -> (i32, i32) {
    %c0_i32 = arith.constant 0 : i32
    %c0_i32_0 = arith.constant 0 : i32
    return %arg0, %c0_i32 : i32, i32
  }
  func.func @transform_2(%arg0: i32) -> (i32, i32) {
    %c0_i32 = arith.constant 0 : i32
    %c0_i32_0 = arith.constant 0 : i32
    %c0_i32_1 = arith.constant 0 : i32
    return %c0_i32, %c0_i32_0 : i32, i32
  }
  func.func @transform_3(%arg0: i32) -> (i32, i32) {
    %c0_i32 = arith.constant 0 : i32
    %c0_i32_0 = arith.constant 0 : i32
    %c0_i32_1 = arith.constant 0 : i32
    return %c0_i32, %c0_i32_0 : i32, i32
  }
  func.func @transform_4(%arg0: i32) -> (i32, i32) {
    %c0_i32 = arith.constant 0 : i32
    %c0_i32_0 = arith.constant 0 : i32
    %c0_i32_1 = arith.constant 0 : i32
    return %c0_i32, %c0_i32_0 : i32, i32
  }
  func.func @transform_5(%arg0: i32) -> (i32, i32) {
    %c0_i32 = arith.constant 0 : i32
    %c0_i32_0 = arith.constant 0 : i32
    %c0_i32_1 = arith.constant 0 : i32
    return %c0_i32, %c0_i32_0 : i32, i32
  }
  func.func @transform_6(%arg0: i32) -> (i32, i32) {
    %c0_i32 = arith.constant 0 : i32
    %c0_i32_0 = arith.constant 0 : i32
    %c0_i32_1 = arith.constant 0 : i32
    return %c0_i32, %c0_i32_0 : i32, i32
  }
  func.func @transform_7(%arg0: i32) -> (i32, i32) {
    %c0_i32 = arith.constant 0 : i32
    %c0_i32_0 = arith.constant 0 : i32
    %c0_i32_1 = arith.constant 0 : i32
    return %c0_i32, %c0_i32_0 : i32, i32
  }
  func.func @transform_8(%arg0: i32) -> (i32, i32) {
    %c0_i32 = arith.constant 0 : i32
    %c0_i32_0 = arith.constant 0 : i32
    %c0_i32_1 = arith.constant 0 : i32
    return %c0_i32, %c0_i32_0 : i32, i32
  }
  func.func @transform_9(%arg0: i32) -> (i32, i32) {
    %c0_i32 = arith.constant 0 : i32
    %c0_i32_0 = arith.constant 0 : i32
    %c0_i32_1 = arith.constant 0 : i32
    return %c0_i32, %c0_i32_0 : i32, i32
  }
  func.func @transform_10(%arg0: i32) -> (i32, i32) {
    %c0_i32 = arith.constant 0 : i32
    %c0_i32_0 = arith.constant 0 : i32
    return %arg0, %c0_i32 : i32, i32
  }
}

</mosaic_0001>

<bundles_post_ra>
// kernel: _encoder_pallas.1
= control target key start
LH: loop header
LB: loop body
LE: loop exit
PB: predicated region body
PF: predicated region fallthrough
CT: control target
= control target key end

     0   :  { %15 = vsyncpa [#allocation4], 0  ;;  %s4808_s0 = inlined_call_operand.vmem [shape: f32[3], index: 0, kind: input, shape index: {}]   ;;  %s4809_s1 = inlined_call_operand.vmem [shape: f32[8,32], index: 1, kind: input, shape index: {}]   ;;  %s4810_s2 = inlined_call_operand.vmem [shape: bf16[32,896], index: 2, kind: input, shape index: {}]   ;;  %s4811_s3 = inlined_call_operand.vmem [shape: f32[1,896], index: 3, kind: input, shape index: {}]   ;;  %s4812_s4 = inlined_call_operand.vmem [shape: bf16[896,512], index: 4, kind: input, shape index: {}]   ;;  %s4813_s5 = inlined_call_operand.vmem [shape: f32[1,512], index: 5, kind: input, shape index: {}]   ;;  %s4814_s6 = inlined_call_operand.vmem [shape: bf16[512,256], index: 6, kind: input, shape index: {}]   ;;  %s4815_s7 = inlined_call_operand.vmem [shape: f32[1,256], index: 7, kind: input, shape index: {}]   ;;  %s4816_s8 = inlined_call_operand.vmem [shape: bf16[256,128], index: 8, kind: input, shape index: {}]   ;;  %s4817_s9 = inlined_call_operand.vmem [shape: f32[1,128], index: 9, kind: input, shape index: {}]   ;;  %s4818_s10 = inlined_call_operand.hbm [shape: f32[8,128], index: 10, kind: output, shape index: {}]  }
   0x1   :  { %16 = vsyncpa [#allocation3], 0  ;;  %s23_s15 = sshll.u32 %s4808_s0, 4  ;;  %s24_s15 = int_to_ptr.vmem [resolvable:$true] %s23_s15 }
   0x2   :  { %s3628_s16 = scalar_lea.vmem %s24_s15, 16  ;;  %p3633_p1 = scmp.lt.s32.totalorder %s24_s15, %s24_s15 }
   0x3   :  { %p3629_p0 = scmp.ne.s32.totalorder %s24_s15, %s3628_s16  ;;  %p3634_p2 = scmp.lt.s32.totalorder %s3628_s16, %s3628_s16 }
   0x5   :  { %p3635_p3 = por %p3634_p2, %p3633_p1 }
   0x7   :  { %p3636_p4 = pnand %p3635_p3, %p3629_p0 }
   0x9   :  { %3639 = shalt.err (!%p3636_p4)
}
   0xa   :  { %s3666_s17 = smov [#allocation2]  }
   0xb   :  { %26 = dma.vmem_to_smem %s24_s15, 16, %s3666_s17, [#allocation4]  }
   0xc   :  { %3662 = dma.done.wait [#allocation4], 16  }
   0xd   :  { %3663 = vsyncadd [#allocation4], 4294967280 }
   0xe   :  { %48 = sfence }
   0xf   :  { %v3160_v0 = vld [vmem:[%s4810_s2 + $0x4] ss:$28 sps:$4 sm:$0xff]   ;;  %v3667_v2 = vmov 0   ;;  %v3163_v3 = vld [vmem:[%s4810_s2 + $0x3c] ss:$28 sps:$4 sm:$0xff]   ;;  %vm177_vm0 = vcmask 261120  }
  0x10   :  { %v3162_v1 = vld [vmem:[%s4810_s2] ss:$28 sps:$4 sm:$0xff]   ;;  %213 = vmatprep.mubr.bf16.mxu0 %v3667_v2  ;;  %181 = vmatprep.subr.bf16.mxu0 %v3160_v0  ;;  %v3165_v4 = vld [vmem:[%s4810_s2 + $0x38] ss:$28 sps:$4 sm:$0xff]   ;;  %v3168_v6 = vld [vmem:[%s4810_s2 + $0xc] ss:$28 sps:$4 sm:$0xff]  }
  0x11   :  { %182 = vmatpush1.bf16.msra.mxu0 %v3162_v1  ;;  %v50_v5 = vld [vmem:[%s4809_s1] sm:$0xff]  ;;  %v3174_v13 = vld [vmem:[%s4810_s2 + $0x14] ss:$28 sps:$4 sm:$0xff]   ;;  %v3177_v17 = vld [vmem:[%s4810_s2 + $0x4c] ss:$28 sps:$4 sm:$0xff]   ;;  %v3668_v24 = vmov 0.0  }
  0x12   :  { %183 = vmatprep.subr.bf16.mxu0 %v3163_v3  ;;  %v51_v7 = vpack.c.bf16 %v50_v5, %v50_v5  ;;  %v3166_v8 = vld [vmem:[%s4810_s2 + $0x8] ss:$28 sps:$4 sm:$0xff]   ;;  %v3169_v10 = vld [vmem:[%s4810_s2 + $0x40] ss:$28 sps:$4 sm:$0xff]   ;;  %v3172_v16 = vld [vmem:[%s4810_s2 + $0x10] ss:$28 sps:$4 sm:$0xff]  }
  0x13   :  { %v3171_v9 = vld [vmem:[%s4810_s2 + $0x44] ss:$28 sps:$4 sm:$0xff]   ;;  %v3178_v23 = vld [vmem:[%s4810_s2 + $0x18] ss:$28 sps:$4 sm:$0xff]   ;;  %v3179_v26 = vld [vmem:[%s4810_s2 + $0x50] ss:$28 sps:$4 sm:$0xff]  }
  0x14   :  { %v3180_v11 = vld [vmem:[%s4812_s4 + $0x4] ss:$16 sps:$4 sm:$0xff]   ;;  %v3182_v12 = vld [vmem:[%s4812_s4] ss:$16 sps:$4 sm:$0xff]   ;;  %vm3669_vm1 = vmmov 0   ;;  %s344_s21 = sld [smem:[#allocation2]] }
  0x15   :  { %184 = vmatpush1.bf16.msra.mxu0 %v3165_v4  ;;  %v3183_v14 = vld [vmem:[%s4812_s4 + $0x24] ss:$16 sps:$4 sm:$0xff]   ;;  %1740 = vmatprep.subr.bf16.mxu1 %v3180_v11  ;;  %v3185_v15 = vld [vmem:[%s4812_s4 + $0x20] ss:$16 sps:$4 sm:$0xff]   ;;  %s3072_s14 = sld [smem:[#allocation2 + $0x2]]  ;;  %s3670_s17 = smov [#allocation5]  }
  0x16   :  { %222 = vmatprep.subr.bf16.mxu0 %v3168_v6  ;;  %1741 = vmatpush1.bf16.msra.mxu1 %v3182_v12  ;;  %v3186_v18 = vld [vmem:[%s4812_s4 + $0x44] ss:$16 sps:$4 sm:$0xff]   ;;  %v3191_v20 = vld [vmem:[%s4812_s4 + $0x40] ss:$16 sps:$4 sm:$0xff]   ;;  %s2756_s18 = sshll.u32 %s3670_s17, 4  ;;  %s2757_s18 = int_to_ptr.vmem [resolvable:$true] %s2756_s18 }
  0x17   :  { %1742 = vmatprep.subr.bf16.mxu1 %v3183_v14  ;;  %v3175_v19 = vld [vmem:[%s4810_s2 + $0x48] ss:$28 sps:$4 sm:$0xff]   ;;  %v3197_v22 = vld [vmem:[%s4812_s4 + $0x60] ss:$16 sps:$4 sm:$0xff]   ;;  %s3640_s19 = scalar_lea.vmem %s2757_s18, 128  ;;  %p3645_p6 = scmp.lt.s32.totalorder %s2757_s18, %s2757_s18 }
  0x18   :  { %2779 = vmatmul.mubr.msk.bf16.vlgmr.msra.gmra.mrb[0].mxu0 %vm177_vm0, %v51_v7  ;;  %v3192_v21 = vld [vmem:[%s4812_s4 + $0x64] ss:$16 sps:$4 sm:$0xff]   ;;  %v3203_v27 = vld [vmem:[%s4812_s4 + $0x80] ss:$16 sps:$4 sm:$0xff]   ;;  %p3641_p5 = scmp.ne.s32.totalorder %s2757_s18, %s3640_s19  ;;  %p3646_p7 = scmp.lt.s32.totalorder %s3640_s19, %s3640_s19 }
  0x19   :  { %223 = vmatpush1.bf16.msra.mxu0 %v3166_v8  ;;  %254 = vmatprep.mubr.bf16.mxu0 %v3667_v2  ;;  %v3198_v25 = vld [vmem:[%s4812_s4 + $0x84] ss:$16 sps:$4 sm:$0xff]   ;;  %v3209_v30 = vld [vmem:[%s4812_s4 + $0xa0] ss:$16 sps:$4 sm:$0xff]  }
  0x1a   :  { %224 = vmatprep.subr.bf16.mxu0 %v3171_v9  ;;  %1743 = vmatpush1.bf16.msra.mxu1 %v3185_v15  ;;  %v3204_v28 = vld [vmem:[%s4812_s4 + $0xa4] ss:$16 sps:$4 sm:$0xff]   ;;  %v3188_v31 = vld [vmem:[%s4812_s4 + $0x200] ss:$16 sps:$4 sm:$0xff]   ;;  %p3647_p8 = por %p3646_p7, %p3645_p6 }
  0x1b   :  { %1744 = vmatprep.subr.bf16.mxu1 %v3186_v18  ;;  %v3190_v29 = vld [vmem:[%s4812_s4 + $0x204] ss:$16 sps:$4 sm:$0xff]   ;;  %v3194_v34 = vld [vmem:[%s4812_s4 + $0x220] ss:$16 sps:$4 sm:$0xff]  }
  0x1c   :  { %v3210_v32 = vld [vmem:[%s4812_s4 + $0xc4] ss:$16 sps:$4 sm:$0xff]   ;;  %v3215_v35 = vld [vmem:[%s4812_s4 + $0xc0] ss:$16 sps:$4 sm:$0xff]   ;;  %p3648_p9 = pnand %p3647_p8, %p3641_p5 }
  0x1d   :  { %225 = vmatpush1.bf16.msra.mxu0 %v3169_v10  ;;  %v3196_v33 = vld [vmem:[%s4812_s4 + $0x224] ss:$16 sps:$4 sm:$0xff]   ;;  %v3221_v38 = vld [vmem:[%s4812_s4 + $0xe0] ss:$16 sps:$4 sm:$0xff]  }
  0x1e   :  { %263 = vmatprep.subr.bf16.mxu0 %v3174_v13  ;;  %1745 = vmatpush1.bf16.msra.mxu1 %v3191_v20  ;;  %v3216_v36 = vld [vmem:[%s4812_s4 + $0xe4] ss:$16 sps:$4 sm:$0xff]   ;;  %v3200_v39 = vld [vmem:[%s4812_s4 + $0x240] ss:$16 sps:$4 sm:$0xff]  }
  0x1f   :  { %1746 = vmatprep.subr.bf16.mxu1 %v3192_v21  ;;  %v3202_v37 = vld [vmem:[%s4812_s4 + $0x244] ss:$16 sps:$4 sm:$0xff]   ;;  %v3206_v42 = vld [vmem:[%s4812_s4 + $0x260] ss:$16 sps:$4 sm:$0xff]   ;;  %v70_v21 = vlaneseq }
  0x20   :  { %2780 = vmatmul.mubr.msk.bf16.vlgmr.msra.gmra.mrb[4].mxu0 %vm177_vm0, %v51_v7  ;;  %v3222_v40 = vld [vmem:[%s4812_s4 + $0x104] ss:$16 sps:$4 sm:$0xff]   ;;  %v3227_v43 = vld [vmem:[%s4812_s4 + $0x100] ss:$16 sps:$4 sm:$0xff]  }
  0x21   :  { %264 = vmatpush1.bf16.msra.mxu0 %v3172_v16  ;;  %295 = vmatprep.mubr.bf16.mxu0 %v3667_v2  ;;  %v3208_v41 = vld [vmem:[%s4812_s4 + $0x264] ss:$16 sps:$4 sm:$0xff]   ;;  %v3233_v46 = vld [vmem:[%s4812_s4 + $0x120] ss:$16 sps:$4 sm:$0xff]   ;;  %v3275_v16 = vld [vmem:[%s4812_s4 + $0xc] ss:$16 sps:$4 sm:$0xff]  }
  0x22   :  { %265 = vmatprep.subr.bf16.mxu0 %v3177_v17  ;;  %1747 = vmatpush1.bf16.msra.mxu1 %v3197_v22  ;;  %v3228_v44 = vld [vmem:[%s4812_s4 + $0x124] ss:$16 sps:$4 sm:$0xff]   ;;  %v3212_v47 = vld [vmem:[%s4812_s4 + $0x280] ss:$16 sps:$4 sm:$0xff]   ;;  %v3979_v22 = vshrl.u32 %v70_v21, 7 }
  0x23   :  { %1748 = vmatprep.subr.bf16.mxu1 %v3198_v25  ;;  %v3214_v45 = vld [vmem:[%s4812_s4 + $0x284] ss:$16 sps:$4 sm:$0xff]   ;;  %v3239_v50 = vld [vmem:[%s4812_s4 + $0x140] ss:$16 sps:$4 sm:$0xff]  }
  0x24   :  { %v3234_v48 = vld [vmem:[%s4812_s4 + $0x144] ss:$16 sps:$4 sm:$0xff]   ;;  %v3218_v51 = vld [vmem:[%s4812_s4 + $0x2a0] ss:$16 sps:$4 sm:$0xff]   ;;  %v3990_v25 = vsub.s32 1, %v3979_v22 }
  0x25   :  { %266 = vmatpush1.bf16.msra.mxu0 %v3175_v19  ;;  %v3220_v49 = vld [vmem:[%s4812_s4 + $0x2a4] ss:$16 sps:$4 sm:$0xff]   ;;  %v3245_v54 = vld [vmem:[%s4812_s4 + $0x160] ss:$16 sps:$4 sm:$0xff]  }
  0x26   :  { %3115 = vmatprep.subr.bf16.mxu0 %v3668_v24  ;;  %1749 = vmatpush1.bf16.msra.mxu1 %v3203_v27  ;;  %v3240_v52 = vld [vmem:[%s4812_s4 + $0x164] ss:$16 sps:$4 sm:$0xff]   ;;  %v3224_v55 = vld [vmem:[%s4812_s4 + $0x2c0] ss:$16 sps:$4 sm:$0xff]  }
  0x27   :  { %1750 = vmatprep.subr.bf16.mxu1 %v3204_v28  ;;  %v3226_v53 = vld [vmem:[%s4812_s4 + $0x2c4] ss:$16 sps:$4 sm:$0xff]   ;;  %v3251_v58 = vld [vmem:[%s4812_s4 + $0x180] ss:$16 sps:$4 sm:$0xff]  }
  0x28   :  { %2781 = vmatmul.mubr.msk.bf16.vlgmr.msra.gmra.mrb[8].mxu0 %vm177_vm0, %v51_v7  ;;  %v3246_v56 = vld [vmem:[%s4812_s4 + $0x184] ss:$16 sps:$4 sm:$0xff]   ;;  %v3230_v59 = vld [vmem:[%s4812_s4 + $0x2e0] ss:$16 sps:$4 sm:$0xff]  }
  0x29   :  { %3116 = vmatpush3.bf16.msra.mxu0 %v3178_v23  ;;  %3119 = vmatprep.mubr.msk.bf16.mxu0 %vm3669_vm1, %v3668_v24  ;;  %v3232_v57 = vld [vmem:[%s4812_s4 + $0x2e4] ss:$16 sps:$4 sm:$0xff]   ;;  %v3257_v62 = vld [vmem:[%s4812_s4 + $0x1a0] ss:$16 sps:$4 sm:$0xff]   ;;  %v3982_v23 = vsub.s32 0, %v3979_v22 }
  0x2a   :  { %3117 = vmatprep.subr.bf16.mxu0 %v3668_v24  ;;  %1751 = vmatpush1.bf16.msra.mxu1 %v3209_v30  ;;  %v3252_v60 = vld [vmem:[%s4812_s4 + $0x1a4] ss:$16 sps:$4 sm:$0xff]   ;;  %v3236_v63 = vld [vmem:[%s4812_s4 + $0x300] ss:$16 sps:$4 sm:$0xff]  }
  0x2b   :  { %1752 = vmatprep.subr.bf16.mxu1 %v3210_v32  ;;  %v3238_v61 = vld [vmem:[%s4812_s4 + $0x304] ss:$16 sps:$4 sm:$0xff]   ;;  %v3242_v1 = vld [vmem:[%s4812_s4 + $0x320] ss:$16 sps:$4 sm:$0xff]   ;;  %v80_v32 = vsub.s32 2, %v3979_v22 }
  0x2c   :  { %v3244_v0 = vld [vmem:[%s4812_s4 + $0x324] ss:$16 sps:$4 sm:$0xff]   ;;  %v3248_v4 = vld [vmem:[%s4812_s4 + $0x340] ss:$16 sps:$4 sm:$0xff]  }
  0x2d   :  { %3118 = vmatpush3.bf16.msra.mxu0 %v3179_v26  ;;  %v3250_v3 = vld [vmem:[%s4812_s4 + $0x344] ss:$16 sps:$4 sm:$0xff]   ;;  %v3254_v6 = vld [vmem:[%s4812_s4 + $0x360] ss:$16 sps:$4 sm:$0xff]  }
  0x2e   :  { %1781 = vmatprep.subr.bf16.mxu0 %v3190_v29  ;;  %1753 = vmatpush1.bf16.msra.mxu1 %v3215_v35  ;;  %v3256_v5 = vld [vmem:[%s4812_s4 + $0x364] ss:$16 sps:$4 sm:$0xff]   ;;  %v3260_v9 = vld [vmem:[%s4812_s4 + $0x380] ss:$16 sps:$4 sm:$0xff]   ;;  %v3996_v29 = vstv %s344_s21  ;;  %v84_v35 = vsub.s32 3, %v3979_v22 }
  0x2f   :  { %1754 = vmatprep.subr.bf16.mxu1 %v3216_v36  ;;  %v3262_v8 = vld [vmem:[%s4812_s4 + $0x384] ss:$16 sps:$4 sm:$0xff]   ;;  %v3263_v10 = vld [vmem:[%s4812_s4 + $0x1c0] ss:$16 sps:$4 sm:$0xff]  }
  0x30   :  { %3120 = vmatmul.mubr.msk.bf16.vlgmr.msra.gmra.mrb[12].mxu0 %vm177_vm0, %v51_v7  ;;  %v3258_v7 = vld [vmem:[%s4812_s4 + $0x1c4] ss:$16 sps:$4 sm:$0xff]   ;;  %v3266_v13 = vld [vmem:[%s4812_s4 + $0x3a0] ss:$16 sps:$4 sm:$0xff]  }
  0x31   :  { %1782 = vmatpush1.bf16.msra.mxu0 %v3188_v31  ;;  %v3264_v11 = vld [vmem:[%s4812_s4 + $0x1e4] ss:$16 sps:$4 sm:$0xff]   ;;  %v3269_v14 = vld [vmem:[%s4812_s4 + $0x1e0] ss:$16 sps:$4 sm:$0xff]  }
  0x32   :  { %1783 = vmatprep.subr.bf16.mxu0 %v3196_v33  ;;  %1755 = vmatpush1.bf16.msra.mxu1 %v3221_v38  ;;  %v3268_v12 = vld [vmem:[%s4812_s4 + $0x3a4] ss:$16 sps:$4 sm:$0xff]   ;;  %v3270_v17 = vld [vmem:[%s4812_s4 + $0x3c0] ss:$16 sps:$4 sm:$0xff]  }
  0x33   :  { %1756 = vmatprep.subr.bf16.mxu1 %v3222_v40  ;;  %v3272_v15 = vld [vmem:[%s4812_s4 + $0x3c4] ss:$16 sps:$4 sm:$0xff]   ;;  %v3276_v19 = vld [vmem:[%s4812_s4 + $0x3e0] ss:$16 sps:$4 sm:$0xff]  }
  0x34   :  { %v3278_v18 = vld [vmem:[%s4812_s4 + $0x3e4] ss:$16 sps:$4 sm:$0xff]  }
  0x35   :  { %1784 = vmatpush1.bf16.msra.mxu0 %v3194_v34  ;;  %v3284_v20 = vld [vmem:[%s4812_s4 + $0x404] ss:$16 sps:$4 sm:$0xff]  }
  0x36   :  { %1785 = vmatprep.subr.bf16.mxu0 %v3202_v37  ;;  %1757 = vmatpush1.bf16.msra.mxu1 %v3227_v43  ;;  %v3987_v24 = vld [vmem:[%s4811_s3] sm:$0xff]  ;;  %s3007_s3 = sld [smem:[#allocation2 + $0x1]] }
  0x37   :  { %1758 = vmatprep.subr.bf16.mxu1 %v3228_v44  ;;  %v73_v26 = vrot.slane %v3987_v24, %v3982_v23  ;;  %v77_v27 = vrot.slane %v3987_v24, %v3990_v25  ;;  %v3273_v44 = vld [vmem:[%s4812_s4 + $0x8] ss:$16 sps:$4 sm:$0xff]  }
  0x39   :  { %1786 = vmatpush1.bf16.msra.mxu0 %v3200_v39  ;;  %v81_v39 = vrot.slane %v3987_v24, %v80_v32 }
  0x3a   :  { %1787 = vmatprep.subr.bf16.mxu0 %v3208_v41  ;;  %1759 = vmatpush1.bf16.msra.mxu1 %v3233_v46  ;;  %v85_v41 = vrot.slane %v3987_v24, %v84_v35 }
  0x3b   :  { %1760 = vmatprep.subr.bf16.mxu1 %v3234_v48 }
  0x3d   :  { %1788 = vmatpush1.bf16.msra.mxu0 %v3206_v42 }
  0x3e   :  { %1789 = vmatprep.subr.bf16.mxu0 %v3214_v45  ;;  %1761 = vmatpush1.bf16.msra.mxu1 %v3239_v50  ;;  %v88_v50 = vsub.s32 4, %v3979_v22 }
  0x3f   :  { %1762 = vmatprep.subr.bf16.mxu1 %v3240_v52 }
  0x41   :  { %1790 = vmatpush1.bf16.msra.mxu0 %v3212_v47  ;;  %v3281_v47 = vld [vmem:[%s4812_s4 + $0x2c] ss:$16 sps:$4 sm:$0xff]  }
  0x42   :  { %1791 = vmatprep.subr.bf16.mxu0 %v3220_v49  ;;  %1763 = vmatpush1.bf16.msra.mxu1 %v3245_v54 }
  0x43   :  { %1764 = vmatprep.subr.bf16.mxu1 %v3246_v56 }
  0x45   :  { %1792 = vmatpush1.bf16.msra.mxu0 %v3218_v51 }
  0x46   :  { %1793 = vmatprep.subr.bf16.mxu0 %v3226_v53  ;;  %1765 = vmatpush1.bf16.msra.mxu1 %v3251_v58  ;;  %v92_v53 = vsub.s32 5, %v3979_v22  ;;  %v3287_v58 = vld [vmem:[%s4812_s4 + $0x4c] ss:$16 sps:$4 sm:$0xff]  }
  0x47   :  { %1766 = vmatprep.subr.bf16.mxu1 %v3252_v60  ;;  %v89_v60 = vrot.slane %v3987_v24, %v88_v50  ;;  %v3320_v50 = vld [vmem:[%s4812_s4 + $0x4c4] ss:$16 sps:$4 sm:$0xff]  }
  0x49   :  { %1794 = vmatpush1.bf16.msra.mxu0 %v3224_v55  ;;  %v3279_v55 = vld [vmem:[%s4812_s4 + $0x28] ss:$16 sps:$4 sm:$0xff]  }
  0x4a   :  { %1795 = vmatprep.subr.bf16.mxu0 %v3232_v57  ;;  %1767 = vmatpush1.bf16.msra.mxu1 %v3257_v62 }
  0x4b   :  { %1768 = vmatprep.subr.bf16.mxu1 %v3258_v7 }
  0x4d   :  { %1796 = vmatpush1.bf16.msra.mxu0 %v3230_v59 }
  0x4e   :  { %1797 = vmatprep.subr.bf16.mxu0 %v3238_v61  ;;  %1769 = vmatpush1.bf16.msra.mxu1 %v3263_v10 }
  0x4f   :  { %1770 = vmatprep.subr.bf16.mxu1 %v3264_v11 }
  0x51   :  { %1798 = vmatpush1.bf16.msra.mxu0 %v3236_v63  ;;  %v93_v63 = vrot.slane %v3987_v24, %v92_v53  ;;  %v3321_v53 = vld [vmem:[%s4812_s4 + $0x108] ss:$16 sps:$4 sm:$0xff]  }
  0x52   :  { %1799 = vmatprep.subr.bf16.mxu0 %v3244_v0  ;;  %1771 = vmatpush1.bf16.msra.mxu1 %v3269_v14 }
  0x53   :  { %1904 = vmatprep.subr.bf16.mxu1 %v3275_v16  ;;  %v3296_v16 = vld [vmem:[%s4812_s4 + $0x444] ss:$16 sps:$4 sm:$0xff]  }
  0x55   :  { %1800 = vmatpush1.bf16.msra.mxu0 %v3242_v1  ;;  %v3282_v1 = vld [vmem:[%s4812_s4 + $0x400] ss:$16 sps:$4 sm:$0xff]  }
  0x56   :  { %1801 = vmatprep.subr.bf16.mxu0 %v3250_v3  ;;  %v3285_v3 = vld [vmem:[%s4812_s4 + $0x48] ss:$16 sps:$4 sm:$0xff]  }
  0x59   :  { %1802 = vmatpush1.bf16.msra.mxu0 %v3248_v4  ;;  %v3290_v4 = vld [vmem:[%s4812_s4 + $0x424] ss:$16 sps:$4 sm:$0xff]  }
  0x5a   :  { %1803 = vmatprep.subr.bf16.mxu0 %v3256_v5  ;;  %v3293_v5 = vld [vmem:[%s4812_s4 + $0x6c] ss:$16 sps:$4 sm:$0xff]  }
  0x5d   :  { %1804 = vmatpush1.bf16.msra.mxu0 %v3254_v6 }
  0x5e   :  { %1805 = vmatprep.subr.bf16.mxu0 %v3262_v8 }
  0x61   :  { %1806 = vmatpush1.bf16.msra.mxu0 %v3260_v9  ;;  %v96_v9 = vsub.s32 6, %v3979_v22  ;;  %v3624_v22 = vld [vmem:[%s4816_s8 + $0x70] sm:$0xff]  }
  0x62   :  { %1807 = vmatprep.subr.bf16.mxu0 %v3268_v12  ;;  %v3288_v12 = vld [vmem:[%s4812_s4 + $0x420] ss:$16 sps:$4 sm:$0xff]  }
  0x65   :  { %1808 = vmatpush1.bf16.msra.mxu0 %v3266_v13  ;;  %v3291_v13 = vld [vmem:[%s4812_s4 + $0x68] ss:$16 sps:$4 sm:$0xff]  }
  0x66   :  { %1809 = vmatprep.subr.bf16.mxu0 %v3272_v15 }
  0x69   :  { %1810 = vmatpush1.bf16.msra.mxu0 %v3270_v17  ;;  %v3299_v17 = vld [vmem:[%s4812_s4 + $0x8c] ss:$16 sps:$4 sm:$0xff]  }
  0x6a   :  { %1811 = vmatprep.subr.bf16.mxu0 %v3278_v18 }
  0x6d   :  { %1812 = vmatpush1.bf16.msra.mxu0 %v3276_v19 }
  0x6e   :  { %1822 = vmatprep.subr.bf16.mxu0 %v3284_v20  ;;  %v97_v20 = vrot.slane %v3987_v24, %v96_v9  ;;  %v3305_v24 = vld [vmem:[%s4812_s4 + $0xac] ss:$16 sps:$4 sm:$0xff]   ;;  %v3350_v9 = vld [vmem:[%s4812_s4 + $0x564] ss:$16 sps:$4 sm:$0xff]  }
  0xeb   :  { %v215_v28 = vpop.f32.mrb[0].mxu0 }
  0xec   :  { %v216_v30 = vadd.f32 %v215_v28, %v73_v26  ;;  %v217_v31 = vpop.f32.mrb[1].mxu0  ;;  %v3294_v26 = vld [vmem:[%s4812_s4 + $0x440] ss:$16 sps:$4 sm:$0xff]  }
  0xed   :  { %v218_v33 = vadd.f32 %v217_v31, %v77_v27  ;;  %v219_v34 = vpop.f32.mrb[2].mxu0  ;;  %v3297_v27 = vld [vmem:[%s4812_s4 + $0x88] ss:$16 sps:$4 sm:$0xff]  }
  0xee   :  { %vm345_vm2 = vcmp.gt.f32.partialorder %v216_v30, 0.0  ;;  %v353_v36 = vmul.f32 %v3996_v29, %v216_v30  ;;  %v220_v37 = vpop.f32.mrb[3].mxu0 }
  0xef   :  { %v354_v38 = vmul.f32 %v3996_v29, %v218_v33  ;;  %vm346_vm3 = vcmp.gt.f32.partialorder %v218_v33, 0.0  ;;  %v3300_v37 = vld [vmem:[%s4812_s4 + $0x460] ss:$16 sps:$4 sm:$0xff]  }
  0xf0   :  { %v360_v40 = vsel %vm345_vm2, %v216_v30, %v353_v36  ;;  %v3302_v30 = vld [vmem:[%s4812_s4 + $0x464] ss:$16 sps:$4 sm:$0xff]  }
  0xf1   :  { %v361_v42 = vsel %vm346_vm3, %v218_v33, %v354_v38  ;;  %v4011_v46 = vpack.c.bf16 %v360_v40, %v360_v40  ;;  %v3303_v38 = vld [vmem:[%s4812_s4 + $0xa8] ss:$16 sps:$4 sm:$0xff]  }
  0xf2   :  { %v368_v43 = vpack.c.bf16 %v361_v42, %v361_v42  ;;  %v3311_v42 = vld [vmem:[%s4812_s4 + $0xcc] ss:$16 sps:$4 sm:$0xff]  }
  0xf3   :  { %v256_v45 = vpop.f32.mrb[4].mxu0 }
  0xf4   :  { %v257_v48 = vadd.f32 %v256_v45, %v81_v39  ;;  %v258_v49 = vpop.f32.mrb[5].mxu0  ;;  %1772 = vmatprep.mubr.bf16.mxu1 %v368_v43  ;;  %v3314_v45 = vld [vmem:[%s4812_s4 + $0x4a4] ss:$16 sps:$4 sm:$0xff]  }
  0xf5   :  { %v259_v51 = vadd.f32 %v258_v49, %v85_v41  ;;  %1773 = vmatmul.mubr.bf16.vlgmr.msra.gmra.mrb[0].mxu1 %v4011_v46  ;;  %v260_v52 = vpop.f32.mrb[6].mxu0  ;;  %v3308_v41 = vld [vmem:[%s4812_s4 + $0x484] ss:$16 sps:$4 sm:$0xff]   ;;  %v3315_v49 = vld [vmem:[%s4812_s4 + $0xe8] ss:$16 sps:$4 sm:$0xff]  }
  0xf6   :  { %vm347_vm4 = vcmp.gt.f32.partialorder %v257_v48, 0.0  ;;  %v355_v54 = vmul.f32 %v3996_v29, %v257_v48  ;;  %1905 = vmatpush1.bf16.msra.mxu1 %v3273_v44  ;;  %1936 = vmatprep.mubr.bf16.mxu1 %v368_v43  ;;  %v261_v56 = vpop.f32.mrb[7].mxu0  ;;  %v3306_v44 = vld [vmem:[%s4812_s4 + $0x480] ss:$16 sps:$4 sm:$0xff]  }
  0xf7   :  { %vm348_vm5 = vcmp.gt.f32.partialorder %v259_v51, 0.0  ;;  %v356_v57 = vmul.f32 %v3996_v29, %v259_v51  ;;  %1906 = vmatprep.subr.bf16.mxu1 %v3281_v47  ;;  %v3317_v47 = vld [vmem:[%s4812_s4 + $0xec] ss:$16 sps:$4 sm:$0xff]   ;;  %v3318_v52 = vld [vmem:[%s4812_s4 + $0x4c0] ss:$16 sps:$4 sm:$0xff]  }
  0xf8   :  { %v362_v59 = vsel %vm347_vm4, %v257_v48, %v355_v54  ;;  %v3312_v48 = vld [vmem:[%s4812_s4 + $0x4a0] ss:$16 sps:$4 sm:$0xff]   ;;  %v3326_v54 = vld [vmem:[%s4812_s4 + $0x4e4] ss:$16 sps:$4 sm:$0xff]  }
  0xf9   :  { %v4028_v61 = vpack.c.bf16 %v362_v59, %v362_v59  ;;  %v363_v62 = vsel %vm348_vm5, %v259_v51, %v356_v57  ;;  %v3323_v51 = vld [vmem:[%s4812_s4 + $0x10c] ss:$16 sps:$4 sm:$0xff]   ;;  %v3324_v56 = vld [vmem:[%s4812_s4 + $0x4e0] ss:$16 sps:$4 sm:$0xff]   ;;  %v3327_v57 = vld [vmem:[%s4812_s4 + $0x128] ss:$16 sps:$4 sm:$0xff]  }
  0xfa   :  { %1907 = vmatpush1.bf16.msra.mxu1 %v3279_v55  ;;  %v4031_v0 = vpack.c.bf16 %v363_v62, %v363_v62  ;;  %v3329_v55 = vld [vmem:[%s4812_s4 + $0x12c] ss:$16 sps:$4 sm:$0xff]   ;;  %v3333_v62 = vld [vmem:[%s4812_s4 + $0x148] ss:$16 sps:$4 sm:$0xff]  }
  0xfb   :  { %1908 = vmatprep.subr.bf16.mxu1 %v3287_v58  ;;  %v297_v6 = vpop.f32.mrb[8].mxu0  ;;  %v3332_v58 = vld [vmem:[%s4812_s4 + $0x504] ss:$16 sps:$4 sm:$0xff]   ;;  %v3335_v59 = vld [vmem:[%s4812_s4 + $0x14c] ss:$16 sps:$4 sm:$0xff]  }
  0xfc   :  { %1813 = vmatprep.mubr.bf16.mxu0 %v4031_v0  ;;  %v298_v7 = vadd.f32 %v297_v6, %v89_v60  ;;  %v299_v8 = vpop.f32.mrb[9].mxu0  ;;  %v3330_v60 = vld [vmem:[%s4812_s4 + $0x500] ss:$16 sps:$4 sm:$0xff]   ;;  %v3347_v6 = vld [vmem:[%s4812_s4 + $0x18c] ss:$16 sps:$4 sm:$0xff]  }
  0xfd   :  { %1814 = vmatmul.mubr.bf16.vlgmr.msra.gmra.mrb[16].mxu0 %v4028_v61  ;;  %v300_v10 = vadd.f32 %v299_v8, %v93_v63  ;;  %v301_v11 = vpop.f32.mrb[10].mxu0  ;;  %v3338_v63 = vld [vmem:[%s4812_s4 + $0x524] ss:$16 sps:$4 sm:$0xff]   ;;  %v3345_v8 = vld [vmem:[%s4812_s4 + $0x188] ss:$16 sps:$4 sm:$0xff]  }
  0xfe   :  { %1823 = vmatpush1.bf16.msra.mxu0 %v3282_v1  ;;  %1909 = vmatpush1.bf16.msra.mxu1 %v3285_v3  ;;  %vm349_vm6 = vcmp.gt.f32.partialorder %v298_v7, 0.0  ;;  %v357_v14 = vmul.f32 %v3996_v29, %v298_v7  ;;  %v302_v15 = vpop.f32.mrb[11].mxu0  ;;  %v3341_v1 = vld [vmem:[%s4812_s4 + $0x16c] ss:$16 sps:$4 sm:$0xff]   ;;  %v3336_v3 = vld [vmem:[%s4812_s4 + $0x520] ss:$16 sps:$4 sm:$0xff]  }
  0xff   :  { %1824 = vmatprep.subr.bf16.mxu0 %v3290_v4  ;;  %1910 = vmatprep.subr.bf16.mxu1 %v3293_v5  ;;  %vm350_vm7 = vcmp.gt.f32.partialorder %v300_v10, 0.0  ;;  %v358_v18 = vmul.f32 %v3996_v29, %v300_v10  ;;  %v3339_v4 = vld [vmem:[%s4812_s4 + $0x168] ss:$16 sps:$4 sm:$0xff]   ;;  %v3344_v5 = vld [vmem:[%s4812_s4 + $0x544] ss:$16 sps:$4 sm:$0xff]  }
 0x100   :  { %v4062_v19 = vsel %vm349_vm6, %v298_v7, %v357_v14  ;;  %v3342_v7 = vld [vmem:[%s4812_s4 + $0x540] ss:$16 sps:$4 sm:$0xff]   ;;  %v3359_v14 = vld [vmem:[%s4812_s4 + $0x1cc] ss:$16 sps:$4 sm:$0xff]  }
 0x101   :  { %v365_v21 = vsel %vm350_vm7, %v300_v10, %v358_v18  ;;  %v3353_v10 = vld [vmem:[%s4812_s4 + $0x1ac] ss:$16 sps:$4 sm:$0xff]   ;;  %v3348_v11 = vld [vmem:[%s4812_s4 + $0x560] ss:$16 sps:$4 sm:$0xff]  }
 0x102   :  { %1825 = vmatpush1.bf16.msra.mxu0 %v3288_v12  ;;  %1911 = vmatpush1.bf16.msra.mxu1 %v3291_v13  ;;  %v4071_v28 = vpack.c.bf16 %v365_v21, %v365_v21  ;;  %v3351_v12 = vld [vmem:[%s4812_s4 + $0x1a8] ss:$16 sps:$4 sm:$0xff]   ;;  %v3356_v13 = vld [vmem:[%s4812_s4 + $0x584] ss:$16 sps:$4 sm:$0xff]   ;;  %v3354_v15 = vld [vmem:[%s4812_s4 + $0x580] ss:$16 sps:$4 sm:$0xff]  }
 0x103   :  { %1826 = vmatprep.subr.bf16.mxu0 %v3296_v16  ;;  %1912 = vmatprep.subr.bf16.mxu1 %v3299_v17  ;;  %v338_v31 = vpop.f32.mrb[12].mxu0  ;;  %v3357_v16 = vld [vmem:[%s4812_s4 + $0x1c8] ss:$16 sps:$4 sm:$0xff]   ;;  %v3362_v17 = vld [vmem:[%s4812_s4 + $0x5a4] ss:$16 sps:$4 sm:$0xff]  }
 0x104   :  { %1854 = vmatprep.mubr.bf16.mxu0 %v4071_v28  ;;  %v339_v33 = vadd.f32 %v338_v31, %v97_v20  ;;  %v3121_v34 = vpop.f32.mrb[13].mxu0  ;;  %v3365_v18 = vld [vmem:[%s4812_s4 + $0x1ec] ss:$16 sps:$4 sm:$0xff]   ;;  %v3360_v20 = vld [vmem:[%s4812_s4 + $0x5a0] ss:$16 sps:$4 sm:$0xff]  }
 0x105   :  { %v341_v36 = vpop.f32.mrb[14].mxu0  ;;  %v3363_v21 = vld [vmem:[%s4812_s4 + $0x1e8] ss:$16 sps:$4 sm:$0xff]   ;;  %v3374_v31 = vld [vmem:[%s4812_s4 + $0x5e4] ss:$16 sps:$4 sm:$0xff]  }
 0x106   :  { %1827 = vmatpush1.bf16.msra.mxu0 %v3294_v26  ;;  %1913 = vmatpush1.bf16.msra.mxu1 %v3297_v27  ;;  %vm351_vm8 = vcmp.gt.f32.partialorder %v339_v33, 0.0  ;;  %v359_v39 = vmul.f32 %v3996_v29, %v339_v33  ;;  %v3122_v40 = vpop.f32.mrb[15].mxu0  ;;  %v3309_v29 = vld [vmem:[%s4812_s4 + $0xc8] ss:$16 sps:$4 sm:$0xff]   ;;  %v3368_v26 = vld [vmem:[%s4812_s4 + $0x5c4] ss:$16 sps:$4 sm:$0xff]  }
 0x107   :  { %1828 = vmatprep.subr.bf16.mxu0 %v3302_v30  ;;  %1914 = vmatprep.subr.bf16.mxu1 %v3305_v24  ;;  %v3371_v27 = vld [vmem:[%s4812_s4 + $0x20c] ss:$16 sps:$4 sm:$0xff]   ;;  %v3366_v30 = vld [vmem:[%s4812_s4 + $0x5c0] ss:$16 sps:$4 sm:$0xff]   ;;  %v3369_v24 = vld [vmem:[%s4812_s4 + $0x208] ss:$16 sps:$4 sm:$0xff]  }
 0x108   :  { %v4093_v43 = vsel %vm351_vm8, %v339_v33, %v359_v39  ;;  %v3377_v33 = vld [vmem:[%s4812_s4 + $0x22c] ss:$16 sps:$4 sm:$0xff]   ;;  %v3372_v34 = vld [vmem:[%s4812_s4 + $0x5e0] ss:$16 sps:$4 sm:$0xff]   ;;  %v3375_v36 = vld [vmem:[%s4812_s4 + $0x228] ss:$16 sps:$4 sm:$0xff]  }
 0x109   :  { %v3381_v39 = vld [vmem:[%s4812_s4 + $0x248] ss:$16 sps:$4 sm:$0xff]   ;;  %v3386_v40 = vld [vmem:[%s4812_s4 + $0x624] ss:$16 sps:$4 sm:$0xff]  }
 0x10a   :  { %1829 = vmatpush1.bf16.msra.mxu0 %v3300_v37  ;;  %1915 = vmatpush1.bf16.msra.mxu1 %v3303_v38  ;;  %v3380_v37 = vld [vmem:[%s4812_s4 + $0x604] ss:$16 sps:$4 sm:$0xff]   ;;  %v4243_v38 = vpack.c.bf16 %v4062_v19, %v4062_v19  ;;  %v3389_v19 = vld [vmem:[%s4812_s4 + $0x26c] ss:$16 sps:$4 sm:$0xff]  }
 0x10b   :  { %1830 = vmatprep.subr.bf16.mxu0 %v3308_v41  ;;  %1916 = vmatprep.subr.bf16.mxu1 %v3311_v42  ;;  %v3384_v41 = vld [vmem:[%s4812_s4 + $0x620] ss:$16 sps:$4 sm:$0xff]   ;;  %v3387_v42 = vld [vmem:[%s4812_s4 + $0x268] ss:$16 sps:$4 sm:$0xff]  }
 0x10e   :  { %1831 = vmatpush1.bf16.msra.mxu0 %v3306_v44  ;;  %1917 = vmatpush1.bf16.msra.mxu1 %v3309_v29  ;;  %v3392_v44 = vld [vmem:[%s4812_s4 + $0x644] ss:$16 sps:$4 sm:$0xff]   ;;  %v3395_v29 = vld [vmem:[%s4812_s4 + $0x28c] ss:$16 sps:$4 sm:$0xff]  }
 0x10f   :  { %1832 = vmatprep.subr.bf16.mxu0 %v3314_v45  ;;  %1918 = vmatprep.subr.bf16.mxu1 %v3317_v47  ;;  %v3390_v45 = vld [vmem:[%s4812_s4 + $0x640] ss:$16 sps:$4 sm:$0xff]   ;;  %v3393_v47 = vld [vmem:[%s4812_s4 + $0x288] ss:$16 sps:$4 sm:$0xff]  }
 0x112   :  { %1833 = vmatpush1.bf16.msra.mxu0 %v3312_v48  ;;  %1919 = vmatpush1.bf16.msra.mxu1 %v3315_v49  ;;  %v3398_v48 = vld [vmem:[%s4812_s4 + $0x664] ss:$16 sps:$4 sm:$0xff]   ;;  %v3401_v49 = vld [vmem:[%s4812_s4 + $0x2ac] ss:$16 sps:$4 sm:$0xff]  }
 0x113   :  { %1834 = vmatprep.subr.bf16.mxu0 %v3320_v50  ;;  %1920 = vmatprep.subr.bf16.mxu1 %v3323_v51  ;;  %v3396_v50 = vld [vmem:[%s4812_s4 + $0x660] ss:$16 sps:$4 sm:$0xff]   ;;  %v3399_v51 = vld [vmem:[%s4812_s4 + $0x2a8] ss:$16 sps:$4 sm:$0xff]  }
 0x116   :  { %1835 = vmatpush1.bf16.msra.mxu0 %v3318_v52  ;;  %1921 = vmatpush1.bf16.msra.mxu1 %v3321_v53  ;;  %v3404_v52 = vld [vmem:[%s4812_s4 + $0x684] ss:$16 sps:$4 sm:$0xff]   ;;  %v3407_v53 = vld [vmem:[%s4812_s4 + $0x2cc] ss:$16 sps:$4 sm:$0xff]  }
 0x117   :  { %1836 = vmatprep.subr.bf16.mxu0 %v3326_v54  ;;  %1922 = vmatprep.subr.bf16.mxu1 %v3329_v55  ;;  %v3402_v54 = vld [vmem:[%s4812_s4 + $0x680] ss:$16 sps:$4 sm:$0xff]   ;;  %v3405_v55 = vld [vmem:[%s4812_s4 + $0x2c8] ss:$16 sps:$4 sm:$0xff]  }
 0x11a   :  { %1837 = vmatpush1.bf16.msra.mxu0 %v3324_v56  ;;  %1923 = vmatpush1.bf16.msra.mxu1 %v3327_v57  ;;  %v3410_v56 = vld [vmem:[%s4812_s4 + $0x6a4] ss:$16 sps:$4 sm:$0xff]   ;;  %v3413_v57 = vld [vmem:[%s4812_s4 + $0x2ec] ss:$16 sps:$4 sm:$0xff]  }
 0x11b   :  { %1838 = vmatprep.subr.bf16.mxu0 %v3332_v58  ;;  %1924 = vmatprep.subr.bf16.mxu1 %v3335_v59  ;;  %v3408_v58 = vld [vmem:[%s4812_s4 + $0x6a0] ss:$16 sps:$4 sm:$0xff]   ;;  %v3411_v59 = vld [vmem:[%s4812_s4 + $0x2e8] ss:$16 sps:$4 sm:$0xff]  }
 0x11e   :  { %1839 = vmatpush1.bf16.msra.mxu0 %v3330_v60  ;;  %1925 = vmatpush1.bf16.msra.mxu1 %v3333_v62  ;;  %v3416_v60 = vld [vmem:[%s4812_s4 + $0x6c4] ss:$16 sps:$4 sm:$0xff]   ;;  %v3419_v62 = vld [vmem:[%s4812_s4 + $0x30c] ss:$16 sps:$4 sm:$0xff]  }
 0x11f   :  { %1840 = vmatprep.subr.bf16.mxu0 %v3338_v63  ;;  %1926 = vmatprep.subr.bf16.mxu1 %v3341_v1  ;;  %v3414_v63 = vld [vmem:[%s4812_s4 + $0x6c0] ss:$16 sps:$4 sm:$0xff]   ;;  %v3417_v1 = vld [vmem:[%s4812_s4 + $0x308] ss:$16 sps:$4 sm:$0xff]  }
 0x122   :  { %1841 = vmatpush1.bf16.msra.mxu0 %v3336_v3  ;;  %1927 = vmatpush1.bf16.msra.mxu1 %v3339_v4  ;;  %v3422_v3 = vld [vmem:[%s4812_s4 + $0x6e4] ss:$16 sps:$4 sm:$0xff]   ;;  %v3425_v4 = vld [vmem:[%s4812_s4 + $0x32c] ss:$16 sps:$4 sm:$0xff]  }
 0x123   :  { %1842 = vmatprep.subr.bf16.mxu0 %v3344_v5  ;;  %1928 = vmatprep.subr.bf16.mxu1 %v3347_v6  ;;  %v3420_v5 = vld [vmem:[%s4812_s4 + $0x6e0] ss:$16 sps:$4 sm:$0xff]   ;;  %v3423_v6 = vld [vmem:[%s4812_s4 + $0x328] ss:$16 sps:$4 sm:$0xff]  }
 0x126   :  { %1843 = vmatpush1.bf16.msra.mxu0 %v3342_v7  ;;  %1929 = vmatpush1.bf16.msra.mxu1 %v3345_v8  ;;  %v3428_v7 = vld [vmem:[%s4812_s4 + $0x34c] ss:$16 sps:$4 sm:$0xff]  }
 0x127   :  { %1844 = vmatprep.subr.bf16.mxu0 %v3350_v9  ;;  %1930 = vmatprep.subr.bf16.mxu1 %v3353_v10  ;;  %v3518_v8 = vld [vmem:[%s4814_s6 + $0x4] ss:$8 sps:$4 sm:$0xff]   ;;  %v4345_v9 = vpack.c.bf16 %v4093_v43, %v4093_v43  ;;  %v3426_v10 = vld [vmem:[%s4812_s4 + $0x348] ss:$16 sps:$4 sm:$0xff]   ;;  %v3521_v43 = vld [vmem:[%s4814_s6 + $0x14] ss:$8 sps:$4 sm:$0xff]  }
 0x12a   :  { %1845 = vmatpush1.bf16.msra.mxu0 %v3348_v11  ;;  %1931 = vmatpush1.bf16.msra.mxu1 %v3351_v12  ;;  %v3516_v11 = vld [vmem:[%s4814_s6] ss:$8 sps:$4 sm:$0xff]   ;;  %v3431_v12 = vld [vmem:[%s4812_s4 + $0x36c] ss:$16 sps:$4 sm:$0xff]  }
 0x12b   :  { %1846 = vmatprep.subr.bf16.mxu0 %v3356_v13  ;;  %1932 = vmatprep.subr.bf16.mxu1 %v3359_v14  ;;  %v3429_v13 = vld [vmem:[%s4812_s4 + $0x368] ss:$16 sps:$4 sm:$0xff]  }
 0x12c   :  { %v3519_v14 = vld [vmem:[%s4814_s6 + $0x10] ss:$8 sps:$4 sm:$0xff]  }
 0x12e   :  { %1847 = vmatpush1.bf16.msra.mxu0 %v3354_v15  ;;  %1933 = vmatpush1.bf16.msra.mxu1 %v3357_v16  ;;  %v3434_v15 = vld [vmem:[%s4812_s4 + $0x38c] ss:$16 sps:$4 sm:$0xff]  }
 0x12f   :  { %1848 = vmatprep.subr.bf16.mxu0 %v3362_v17  ;;  %1934 = vmatprep.subr.bf16.mxu1 %v3365_v18  ;;  %v3524_v16 = vld [vmem:[%s4814_s6 + $0x24] ss:$8 sps:$4 sm:$0xff]   ;;  %v3432_v17 = vld [vmem:[%s4812_s4 + $0x388] ss:$16 sps:$4 sm:$0xff]  }
 0x130   :  { %v3522_v18 = vld [vmem:[%s4814_s6 + $0x20] ss:$8 sps:$4 sm:$0xff]  }
 0x132   :  { %1849 = vmatpush1.bf16.msra.mxu0 %v3360_v20  ;;  %1935 = vmatpush1.bf16.msra.mxu1 %v3363_v21  ;;  %v3437_v20 = vld [vmem:[%s4812_s4 + $0x3ac] ss:$16 sps:$4 sm:$0xff]  }
 0x133   :  { %1850 = vmatprep.subr.bf16.mxu0 %v3368_v26  ;;  %1945 = vmatprep.subr.bf16.mxu1 %v3371_v27  ;;  %v3527_v21 = vld [vmem:[%s4814_s6 + $0x34] ss:$8 sps:$4 sm:$0xff]   ;;  %v3435_v26 = vld [vmem:[%s4812_s4 + $0x3a8] ss:$16 sps:$4 sm:$0xff]  }
 0x134   :  { %v3525_v27 = vld [vmem:[%s4814_s6 + $0x30] ss:$8 sps:$4 sm:$0xff]  }
 0x135   :  { %1937 = vmatmul.mubr.bf16.vlgmr.msra.gmra.mrb[4].mxu1 %v4011_v46  ;;  %v3383_v46 = vld [vmem:[%s4812_s4 + $0x24c] ss:$16 sps:$4 sm:$0xff]  }
 0x136   :  { %1851 = vmatpush1.bf16.msra.mxu0 %v3366_v30  ;;  %1946 = vmatpush1.bf16.msra.mxu1 %v3369_v24  ;;  %v3440_v30 = vld [vmem:[%s4812_s4 + $0x3cc] ss:$16 sps:$4 sm:$0xff]  }
 0x137   :  { %1977 = vmatprep.mubr.bf16.mxu1 %v4031_v0  ;;  %1852 = vmatprep.subr.bf16.mxu0 %v3374_v31  ;;  %v3378_v0 = vld [vmem:[%s4812_s4 + $0x600] ss:$16 sps:$4 sm:$0xff]   ;;  %v3530_v24 = vld [vmem:[%s4814_s6 + $0x44] ss:$8 sps:$4 sm:$0xff]   ;;  %v3438_v31 = vld [vmem:[%s4812_s4 + $0x3c8] ss:$16 sps:$4 sm:$0xff]  }
 0x138   :  { %1947 = vmatprep.subr.bf16.mxu1 %v3377_v33  ;;  %v3528_v33 = vld [vmem:[%s4814_s6 + $0x40] ss:$8 sps:$4 sm:$0xff]  }
 0x13a   :  { %1853 = vmatpush1.bf16.msra.mxu0 %v3372_v34  ;;  %1948 = vmatpush1.bf16.msra.mxu1 %v3375_v36  ;;  %v3443_v34 = vld [vmem:[%s4812_s4 + $0x3ec] ss:$16 sps:$4 sm:$0xff]  }
 0x13b   :  { %1863 = vmatprep.subr.bf16.mxu0 %v3380_v37  ;;  %1949 = vmatprep.subr.bf16.mxu1 %v3383_v46  ;;  %v3533_v36 = vld [vmem:[%s4814_s6 + $0x54] ss:$8 sps:$4 sm:$0xff]   ;;  %v3441_v37 = vld [vmem:[%s4812_s4 + $0x3e8] ss:$16 sps:$4 sm:$0xff]  }
 0x13c   :  { %v3531_v46 = vld [vmem:[%s4814_s6 + $0x50] ss:$8 sps:$4 sm:$0xff]  }
 0x13d   :  { %1855 = vmatmul.mubr.bf16.vlgmr.msra.gmra.mrb[16].mxu0 %v4243_v38 }
 0x13e   :  { %1864 = vmatpush1.bf16.msra.mxu0 %v3378_v0  ;;  %1950 = vmatpush1.bf16.msra.mxu1 %v3381_v39  ;;  %v3446_v0 = vld [vmem:[%s4812_s4 + $0x40c] ss:$16 sps:$4 sm:$0xff]  }
 0x13f   :  { %1865 = vmatprep.subr.bf16.mxu0 %v3386_v40  ;;  %1951 = vmatprep.subr.bf16.mxu1 %v3389_v19  ;;  %v3536_v39 = vld [vmem:[%s4814_s6 + $0x64] ss:$8 sps:$4 sm:$0xff]   ;;  %v3444_v40 = vld [vmem:[%s4812_s4 + $0x408] ss:$16 sps:$4 sm:$0xff]  }
 0x140   :  { %1895 = vmatprep.mubr.bf16.mxu0 %v3667_v2  ;;  %v3449_v19 = vld [vmem:[%s4812_s4 + $0x42c] ss:$16 sps:$4 sm:$0xff]  }
 0x142   :  { %1866 = vmatpush1.bf16.msra.mxu0 %v3384_v41  ;;  %1952 = vmatpush1.bf16.msra.mxu1 %v3387_v42  ;;  %v3534_v41 = vld [vmem:[%s4814_s6 + $0x60] ss:$8 sps:$4 sm:$0xff]   ;;  %v3539_v42 = vld [vmem:[%s4814_s6 + $0x74] ss:$8 sps:$4 sm:$0xff]  }
 0x143   :  { %1867 = vmatprep.subr.bf16.mxu0 %v3392_v44  ;;  %1953 = vmatprep.subr.bf16.mxu1 %v3395_v29  ;;  %v3447_v44 = vld [vmem:[%s4812_s4 + $0x428] ss:$16 sps:$4 sm:$0xff]   ;;  %v3452_v29 = vld [vmem:[%s4812_s4 + $0x44c] ss:$16 sps:$4 sm:$0xff]  }
 0x146   :  { %1868 = vmatpush1.bf16.msra.mxu0 %v3390_v45  ;;  %1954 = vmatpush1.bf16.msra.mxu1 %v3393_v47  ;;  %v3537_v45 = vld [vmem:[%s4814_s6 + $0x70] ss:$8 sps:$4 sm:$0xff]   ;;  %v3455_v47 = vld [vmem:[%s4812_s4 + $0x46c] ss:$16 sps:$4 sm:$0xff]  }
 0x147   :  { %1869 = vmatprep.subr.bf16.mxu0 %v3398_v48  ;;  %1955 = vmatprep.subr.bf16.mxu1 %v3401_v49  ;;  %v3540_v48 = vld [vmem:[%s4814_s6 + $0x80] ss:$8 sps:$4 sm:$0xff]   ;;  %v3545_v49 = vld [vmem:[%s4814_s6 + $0x94] ss:$8 sps:$4 sm:$0xff]  }
 0x14a   :  { %1870 = vmatpush1.bf16.msra.mxu0 %v3396_v50  ;;  %1956 = vmatpush1.bf16.msra.mxu1 %v3399_v51  ;;  %v3453_v50 = vld [vmem:[%s4812_s4 + $0x468] ss:$16 sps:$4 sm:$0xff]   ;;  %v3458_v51 = vld [vmem:[%s4812_s4 + $0x48c] ss:$16 sps:$4 sm:$0xff]  }
 0x14b   :  { %1871 = vmatprep.subr.bf16.mxu0 %v3404_v52  ;;  %1957 = vmatprep.subr.bf16.mxu1 %v3407_v53  ;;  %v3543_v52 = vld [vmem:[%s4814_s6 + $0x90] ss:$8 sps:$4 sm:$0xff]   ;;  %v3548_v53 = vld [vmem:[%s4814_s6 + $0xa4] ss:$8 sps:$4 sm:$0xff]  }
 0x14e   :  { %1872 = vmatpush1.bf16.msra.mxu0 %v3402_v54  ;;  %1958 = vmatpush1.bf16.msra.mxu1 %v3405_v55  ;;  %v3456_v54 = vld [vmem:[%s4812_s4 + $0x488] ss:$16 sps:$4 sm:$0xff]   ;;  %v3461_v55 = vld [vmem:[%s4812_s4 + $0x4ac] ss:$16 sps:$4 sm:$0xff]  }
 0x14f   :  { %1873 = vmatprep.subr.bf16.mxu0 %v3410_v56  ;;  %1959 = vmatprep.subr.bf16.mxu1 %v3413_v57  ;;  %v3546_v56 = vld [vmem:[%s4814_s6 + $0xa0] ss:$8 sps:$4 sm:$0xff]   ;;  %v3551_v57 = vld [vmem:[%s4814_s6 + $0xb4] ss:$8 sps:$4 sm:$0xff]  }
 0x152   :  { %1874 = vmatpush1.bf16.msra.mxu0 %v3408_v58  ;;  %1960 = vmatpush1.bf16.msra.mxu1 %v3411_v59  ;;  %v3459_v58 = vld [vmem:[%s4812_s4 + $0x4a8] ss:$16 sps:$4 sm:$0xff]   ;;  %v3464_v59 = vld [vmem:[%s4812_s4 + $0x4cc] ss:$16 sps:$4 sm:$0xff]  }
 0x153   :  { %1875 = vmatprep.subr.bf16.mxu0 %v3416_v60  ;;  %1961 = vmatprep.subr.bf16.mxu1 %v3419_v62  ;;  %v3549_v60 = vld [vmem:[%s4814_s6 + $0xb0] ss:$8 sps:$4 sm:$0xff]   ;;  %v3554_v62 = vld [vmem:[%s4814_s6 + $0xc4] ss:$8 sps:$4 sm:$0xff]  }
 0x156   :  { %1876 = vmatpush1.bf16.msra.mxu0 %v3414_v63  ;;  %1962 = vmatpush1.bf16.msra.mxu1 %v3417_v1  ;;  %v3462_v63 = vld [vmem:[%s4812_s4 + $0x4c8] ss:$16 sps:$4 sm:$0xff]   ;;  %v3467_v1 = vld [vmem:[%s4812_s4 + $0x4ec] ss:$16 sps:$4 sm:$0xff]  }
 0x157   :  { %1877 = vmatprep.subr.bf16.mxu0 %v3422_v3  ;;  %1963 = vmatprep.subr.bf16.mxu1 %v3425_v4  ;;  %v3552_v3 = vld [vmem:[%s4814_s6 + $0xc0] ss:$8 sps:$4 sm:$0xff]   ;;  %v3557_v4 = vld [vmem:[%s4814_s6 + $0xd4] ss:$8 sps:$4 sm:$0xff]  }
 0x15a   :  { %1878 = vmatpush1.bf16.msra.mxu0 %v3420_v5  ;;  %1964 = vmatpush1.bf16.msra.mxu1 %v3423_v6  ;;  %v3465_v5 = vld [vmem:[%s4812_s4 + $0x4e8] ss:$16 sps:$4 sm:$0xff]   ;;  %v3470_v6 = vld [vmem:[%s4812_s4 + $0x50c] ss:$16 sps:$4 sm:$0xff]  }
 0x15b   :  { %1965 = vmatprep.subr.bf16.mxu1 %v3428_v7  ;;  %2482 = vmatprep.subr.bf16.mxu0 %v3518_v8  ;;  %v3555_v7 = vld [vmem:[%s4814_s6 + $0xd0] ss:$8 sps:$4 sm:$0xff]  }
 0x15c   :  { %v3468_v8 = vld [vmem:[%s4812_s4 + $0x508] ss:$16 sps:$4 sm:$0xff]  }
 0x15d   :  { %1896 = vmatmul.mubr.bf16.vlgmr.msra.gmra.mrb[16].mxu0 %v4345_v9 }
 0x15e   :  { %1966 = vmatpush1.bf16.msra.mxu1 %v3426_v10  ;;  %2483 = vmatpush1.bf16.msra.mxu0 %v3516_v11  ;;  %v3473_v10 = vld [vmem:[%s4812_s4 + $0x52c] ss:$16 sps:$4 sm:$0xff]   ;;  %v3471_v11 = vld [vmem:[%s4812_s4 + $0x528] ss:$16 sps:$4 sm:$0xff]  }
 0x15f   :  { %1967 = vmatprep.subr.bf16.mxu1 %v3431_v12  ;;  %2484 = vmatprep.subr.bf16.mxu0 %v3521_v43  ;;  %v3476_v12 = vld [vmem:[%s4812_s4 + $0x54c] ss:$16 sps:$4 sm:$0xff]   ;;  %v3474_v43 = vld [vmem:[%s4812_s4 + $0x548] ss:$16 sps:$4 sm:$0xff]  }
 0x162   :  { %1968 = vmatpush1.bf16.msra.mxu1 %v3429_v13  ;;  %2485 = vmatpush1.bf16.msra.mxu0 %v3519_v14  ;;  %v3479_v13 = vld [vmem:[%s4812_s4 + $0x56c] ss:$16 sps:$4 sm:$0xff]   ;;  %v3477_v14 = vld [vmem:[%s4812_s4 + $0x568] ss:$16 sps:$4 sm:$0xff]  }
 0x163   :  { %1969 = vmatprep.subr.bf16.mxu1 %v3434_v15  ;;  %2486 = vmatprep.subr.bf16.mxu0 %v3524_v16  ;;  %v3482_v15 = vld [vmem:[%s4812_s4 + $0x58c] ss:$16 sps:$4 sm:$0xff]   ;;  %v3480_v16 = vld [vmem:[%s4812_s4 + $0x588] ss:$16 sps:$4 sm:$0xff]  }
 0x166   :  { %1970 = vmatpush1.bf16.msra.mxu1 %v3432_v17  ;;  %2487 = vmatpush1.bf16.msra.mxu0 %v3522_v18  ;;  %v3485_v17 = vld [vmem:[%s4812_s4 + $0x5ac] ss:$16 sps:$4 sm:$0xff]   ;;  %v3483_v18 = vld [vmem:[%s4812_s4 + $0x5a8] ss:$16 sps:$4 sm:$0xff]  }
 0x167   :  { %1971 = vmatprep.subr.bf16.mxu1 %v3437_v20  ;;  %2488 = vmatprep.subr.bf16.mxu0 %v3527_v21  ;;  %v3488_v20 = vld [vmem:[%s4812_s4 + $0x5cc] ss:$16 sps:$4 sm:$0xff]   ;;  %v3486_v21 = vld [vmem:[%s4812_s4 + $0x5c8] ss:$16 sps:$4 sm:$0xff]  }
 0x16a   :  { %1972 = vmatpush1.bf16.msra.mxu1 %v3435_v26  ;;  %2489 = vmatpush1.bf16.msra.mxu0 %v3525_v27  ;;  %v3491_v26 = vld [vmem:[%s4812_s4 + $0x5ec] ss:$16 sps:$4 sm:$0xff]   ;;  %v3489_v27 = vld [vmem:[%s4812_s4 + $0x5e8] ss:$16 sps:$4 sm:$0xff]  }
 0x16b   :  { %1973 = vmatprep.subr.bf16.mxu1 %v3440_v30  ;;  %2490 = vmatprep.subr.bf16.mxu0 %v3530_v24  ;;  %v3494_v30 = vld [vmem:[%s4812_s4 + $0x60c] ss:$16 sps:$4 sm:$0xff]  }
 0x16c   :  { %v3560_v24 = vld [vmem:[%s4814_s6 + $0xe4] ss:$8 sps:$4 sm:$0xff]  }
 0x16e   :  { %1974 = vmatpush1.bf16.msra.mxu1 %v3438_v31  ;;  %2491 = vmatpush1.bf16.msra.mxu0 %v3528_v33  ;;  %v3492_v31 = vld [vmem:[%s4812_s4 + $0x608] ss:$16 sps:$4 sm:$0xff]  }
 0x16f   :  { %1975 = vmatprep.subr.bf16.mxu1 %v3443_v34  ;;  %2492 = vmatprep.subr.bf16.mxu0 %v3533_v36  ;;  %v3558_v33 = vld [vmem:[%s4814_s6 + $0xe0] ss:$8 sps:$4 sm:$0xff]   ;;  %v3497_v34 = vld [vmem:[%s4812_s4 + $0x62c] ss:$16 sps:$4 sm:$0xff]  }
 0x170   :  { %v3563_v36 = vld [vmem:[%s4814_s6 + $0xf4] ss:$8 sps:$4 sm:$0xff]  }
 0x172   :  { %1976 = vmatpush1.bf16.msra.mxu1 %v3441_v37  ;;  %2493 = vmatpush1.bf16.msra.mxu0 %v3531_v46  ;;  %v3495_v37 = vld [vmem:[%s4812_s4 + $0x628] ss:$16 sps:$4 sm:$0xff]  }
 0x173   :  { %1986 = vmatprep.subr.bf16.mxu1 %v3446_v0  ;;  %2494 = vmatprep.subr.bf16.mxu0 %v3536_v39  ;;  %v3561_v46 = vld [vmem:[%s4814_s6 + $0xf0] ss:$8 sps:$4 sm:$0xff]   ;;  %v3503_v39 = vld [vmem:[%s4812_s4 + $0x66c] ss:$16 sps:$4 sm:$0xff]  }
 0x174   :  { %v3498_v0 = vld [vmem:[%s4812_s4 + $0x648] ss:$16 sps:$4 sm:$0xff]  }
 0x175   :  { %1978 = vmatmul.mubr.bf16.vlgmr.msra.gmra.mrb[4].mxu1 %v4028_v61  ;;  %v3542_v61 = vld [vmem:[%s4814_s6 + $0x84] ss:$8 sps:$4 sm:$0xff]  }
 0x176   :  { %1987 = vmatpush1.bf16.msra.mxu1 %v3444_v40  ;;  %2018 = vmatprep.mubr.bf16.mxu1 %v4071_v28  ;;  %v3450_v28 = vld [vmem:[%s4812_s4 + $0x448] ss:$16 sps:$4 sm:$0xff]  }
 0x177   :  { %1988 = vmatprep.subr.bf16.mxu1 %v3449_v19  ;;  %2495 = vmatpush1.bf16.msra.mxu0 %v3534_v41  ;;  %v3501_v40 = vld [vmem:[%s4812_s4 + $0x668] ss:$16 sps:$4 sm:$0xff]   ;;  %v3506_v19 = vld [vmem:[%s4812_s4 + $0x68c] ss:$16 sps:$4 sm:$0xff]  }
 0x178   :  { %2496 = vmatprep.subr.bf16.mxu0 %v3539_v42  ;;  %v3504_v41 = vld [vmem:[%s4812_s4 + $0x688] ss:$16 sps:$4 sm:$0xff]   ;;  %v3509_v42 = vld [vmem:[%s4812_s4 + $0x6ac] ss:$16 sps:$4 sm:$0xff]  }
 0x17a   :  { %1989 = vmatpush1.bf16.msra.mxu1 %v3447_v44  ;;  %v3507_v44 = vld [vmem:[%s4812_s4 + $0x6a8] ss:$16 sps:$4 sm:$0xff]  }
 0x17b   :  { %1990 = vmatprep.subr.bf16.mxu1 %v3452_v29  ;;  %2497 = vmatpush1.bf16.msra.mxu0 %v3537_v45  ;;  %v3512_v29 = vld [vmem:[%s4812_s4 + $0x6cc] ss:$16 sps:$4 sm:$0xff]  }
 0x17c   :  { %2498 = vmatprep.subr.bf16.mxu0 %v3542_v61 }
 0x17e   :  { %1991 = vmatpush1.bf16.msra.mxu1 %v3450_v28 }
 0x17f   :  { %1992 = vmatprep.subr.bf16.mxu1 %v3455_v47  ;;  %2499 = vmatpush1.bf16.msra.mxu0 %v3540_v48  ;;  %v3510_v47 = vld [vmem:[%s4812_s4 + $0x6c8] ss:$16 sps:$4 sm:$0xff]  }
 0x180   :  { %2500 = vmatprep.subr.bf16.mxu0 %v3545_v49  ;;  %v3515_v49 = vld [vmem:[%s4812_s4 + $0x6ec] ss:$16 sps:$4 sm:$0xff]  }
 0x182   :  { %1993 = vmatpush1.bf16.msra.mxu1 %v3453_v50  ;;  %v3513_v50 = vld [vmem:[%s4812_s4 + $0x6e8] ss:$16 sps:$4 sm:$0xff]  }
 0x183   :  { %1994 = vmatprep.subr.bf16.mxu1 %v3458_v51  ;;  %2501 = vmatpush1.bf16.msra.mxu0 %v3543_v52  ;;  %v4629_v51 = vld [vmem:[%s4813_s5] sm:$0xf] }
 0x184   :  { %2502 = vmatprep.subr.bf16.mxu0 %v3548_v53  ;;  %v603_v52 = vrot.slane %v4629_v51, %v3982_v23  ;;  %v607_v53 = vrot.slane %v4629_v51, %v3990_v25 }
 0x186   :  { %1995 = vmatpush1.bf16.msra.mxu1 %v3456_v54 }
 0x187   :  { %1996 = vmatprep.subr.bf16.mxu1 %v3461_v55  ;;  %2503 = vmatpush1.bf16.msra.mxu0 %v3546_v56 }
 0x188   :  { %2504 = vmatprep.subr.bf16.mxu0 %v3551_v57  ;;  %v4635_v57 = vstv %s3007_s3 }
 0x18a   :  { %1997 = vmatpush1.bf16.msra.mxu1 %v3459_v58 }
 0x18b   :  { %1998 = vmatprep.subr.bf16.mxu1 %v3464_v59  ;;  %2505 = vmatpush1.bf16.msra.mxu0 %v3549_v60 }
 0x18c   :  { %2506 = vmatprep.subr.bf16.mxu0 %v3554_v62  ;;  %v3612_v62 = vld [vmem:[%s4816_s8 + $0x40] sm:$0xff]  }
 0x18e   :  { %1999 = vmatpush1.bf16.msra.mxu1 %v3462_v63  ;;  %v3613_v63 = vld [vmem:[%s4816_s8] sm:$0xff]  }
 0x18f   :  { %2000 = vmatprep.subr.bf16.mxu1 %v3467_v1  ;;  %2507 = vmatpush1.bf16.msra.mxu0 %v3552_v3  ;;  %v3614_v1 = vld [vmem:[%s4816_s8 + $0x48] sm:$0xff]  }
 0x190   :  { %2508 = vmatprep.subr.bf16.mxu0 %v3557_v4 }
 0x192   :  { %2001 = vmatpush1.bf16.msra.mxu1 %v3465_v5 }
 0x193   :  { %2002 = vmatprep.subr.bf16.mxu1 %v3470_v6  ;;  %2509 = vmatpush1.bf16.msra.mxu0 %v3555_v7  ;;  %v3615_v7 = vld [vmem:[%s4816_s8 + $0x8] sm:$0xff]  }
 0x194   :  { %2510 = vmatprep.subr.bf16.mxu0 %v3560_v24  ;;  %v3573_v24 = vld [vmem:[%s4814_s6 + $0x130] ss:$8 sps:$4 sm:$0xff]  }
 0x196   :  { %2003 = vmatpush1.bf16.msra.mxu1 %v3468_v8 }
 0x197   :  { %2004 = vmatprep.subr.bf16.mxu1 %v3473_v10  ;;  %2511 = vmatpush1.bf16.msra.mxu0 %v3558_v33  ;;  %v3616_v10 = vld [vmem:[%s4816_s8 + $0x50] sm:$0xff]   ;;  %v3623_v33 = vld [vmem:[%s4816_s8 + $0x28] sm:$0xff]  }
 0x198   :  { %2512 = vmatprep.subr.bf16.mxu0 %v3563_v36  ;;  %v3581_v36 = vld [vmem:[%s4814_s6 + $0x154] ss:$8 sps:$4 sm:$0xff]  }
 0x19a   :  { %2005 = vmatpush1.bf16.msra.mxu1 %v3471_v11 }
 0x19b   :  { %2006 = vmatprep.subr.bf16.mxu1 %v3476_v12  ;;  %2513 = vmatpush1.bf16.msra.mxu0 %v3561_v46  ;;  %v3564_v12 = vld [vmem:[%s4814_s6 + $0x100] ss:$8 sps:$4 sm:$0xff]   ;;  %v3584_v46 = vld [vmem:[%s4814_s6 + $0x164] ss:$8 sps:$4 sm:$0xff]  }
 0x19e   :  { %2007 = vmatpush1.bf16.msra.mxu1 %v3474_v43 }
 0x19f   :  { %2008 = vmatprep.subr.bf16.mxu1 %v3479_v13  ;;  %v3569_v13 = vld [vmem:[%s4814_s6 + $0x114] ss:$8 sps:$4 sm:$0xff]  }
 0x1a2   :  { %2009 = vmatpush1.bf16.msra.mxu1 %v3477_v14  ;;  %v3617_v14 = vld [vmem:[%s4816_s8 + $0x10] sm:$0xff]  }
 0x1a3   :  { %2010 = vmatprep.subr.bf16.mxu1 %v3482_v15  ;;  %v3618_v15 = vld [vmem:[%s4816_s8 + $0x58] sm:$0xff]  }
 0x1a6   :  { %2011 = vmatpush1.bf16.msra.mxu1 %v3480_v16  ;;  %v3567_v16 = vld [vmem:[%s4814_s6 + $0x110] ss:$8 sps:$4 sm:$0xff]  }
 0x1a7   :  { %2012 = vmatprep.subr.bf16.mxu1 %v3485_v17  ;;  %v3572_v17 = vld [vmem:[%s4814_s6 + $0x124] ss:$8 sps:$4 sm:$0xff]  }
 0x1aa   :  { %2013 = vmatpush1.bf16.msra.mxu1 %v3483_v18  ;;  %v3619_v18 = vld [vmem:[%s4816_s8 + $0x18] sm:$0xff]  }
 0x1ab   :  { %2014 = vmatprep.subr.bf16.mxu1 %v3488_v20  ;;  %v3620_v20 = vld [vmem:[%s4816_s8 + $0x60] sm:$0xff]  }
 0x1ae   :  { %2015 = vmatpush1.bf16.msra.mxu1 %v3486_v21  ;;  %v3570_v21 = vld [vmem:[%s4814_s6 + $0x120] ss:$8 sps:$4 sm:$0xff]  }
 0x1af   :  { %2016 = vmatprep.subr.bf16.mxu1 %v3491_v26  ;;  %v3575_v26 = vld [vmem:[%s4814_s6 + $0x134] ss:$8 sps:$4 sm:$0xff]  }
 0x1b2   :  { %2017 = vmatpush1.bf16.msra.mxu1 %v3489_v27  ;;  %v3621_v27 = vld [vmem:[%s4816_s8 + $0x20] sm:$0xff]  }
 0x1b3   :  { %2027 = vmatprep.subr.bf16.mxu1 %v3494_v30  ;;  %v3622_v30 = vld [vmem:[%s4816_s8 + $0x68] sm:$0xff]  }
 0x1b5   :  { %2019 = vmatmul.mubr.bf16.vlgmr.msra.gmra.mrb[4].mxu1 %v4243_v38  ;;  %v3500_v38 = vld [vmem:[%s4812_s4 + $0x64c] ss:$16 sps:$4 sm:$0xff]  }
 0x1b6   :  { %2028 = vmatpush1.bf16.msra.mxu1 %v3492_v31  ;;  %2059 = vmatprep.mubr.bf16.mxu1 %v3667_v2  ;;  %v3566_v2 = vld [vmem:[%s4814_s6 + $0x104] ss:$8 sps:$4 sm:$0xff]  }
 0x1b7   :  { %2029 = vmatprep.subr.bf16.mxu1 %v3497_v34  ;;  %2523 = vmatprep.subr.bf16.mxu0 %v3566_v2  ;;  %v3578_v31 = vld [vmem:[%s4814_s6 + $0x144] ss:$8 sps:$4 sm:$0xff]   ;;  %v3576_v34 = vld [vmem:[%s4814_s6 + $0x140] ss:$8 sps:$4 sm:$0xff]   ;;  %v3585_v2 = vld [vmem:[%s4814_s6 + $0x170] ss:$8 sps:$4 sm:$0xff]  }
 0x1ba   :  { %2030 = vmatpush1.bf16.msra.mxu1 %v3495_v37  ;;  %v3579_v37 = vld [vmem:[%s4814_s6 + $0x150] ss:$8 sps:$4 sm:$0xff]  }
 0x1bb   :  { %2031 = vmatprep.subr.bf16.mxu1 %v3500_v38  ;;  %v3582_v38 = vld [vmem:[%s4814_s6 + $0x160] ss:$8 sps:$4 sm:$0xff]  }
 0x1be   :  { %2032 = vmatpush1.bf16.msra.mxu1 %v3498_v0  ;;  %v3587_v0 = vld [vmem:[%s4814_s6 + $0x174] ss:$8 sps:$4 sm:$0xff]  }
 0x1bf   :  { %2033 = vmatprep.subr.bf16.mxu1 %v3503_v39  ;;  %v3590_v39 = vld [vmem:[%s4814_s6 + $0x184] ss:$8 sps:$4 sm:$0xff]  }
 0x1c2   :  { %2034 = vmatpush1.bf16.msra.mxu1 %v3501_v40  ;;  %v3588_v40 = vld [vmem:[%s4814_s6 + $0x180] ss:$8 sps:$4 sm:$0xff]  }
 0x1c3   :  { %2035 = vmatprep.subr.bf16.mxu1 %v3506_v19  ;;  %v3593_v19 = vld [vmem:[%s4814_s6 + $0x194] ss:$8 sps:$4 sm:$0xff]  }
 0x1c6   :  { %2036 = vmatpush1.bf16.msra.mxu1 %v3504_v41  ;;  %v3591_v41 = vld [vmem:[%s4814_s6 + $0x190] ss:$8 sps:$4 sm:$0xff]  }
 0x1c7   :  { %2037 = vmatprep.subr.bf16.mxu1 %v3509_v42  ;;  %v3596_v42 = vld [vmem:[%s4814_s6 + $0x1a4] ss:$8 sps:$4 sm:$0xff]  }
 0x1c8   :  { %v1774_v45 = vpop.f32.mrb[0].mxu1 }
 0x1c9   :  { %v1776_v61 = vpop.f32.mrb[1].mxu1  ;;  %v1775_v54 = vadd.f32 %v1774_v45, %v603_v52  ;;  %v3597_v45 = vld [vmem:[%s4814_s6 + $0x1b0] ss:$8 sps:$4 sm:$0xff]   ;;  %v3611_v52 = vld [vmem:[%s4814_s6 + $0x1f4] ss:$8 sps:$4 sm:$0xff]  }
 0x1ca   :  { %2038 = vmatpush1.bf16.msra.mxu1 %v3507_v44  ;;  %v1778_v28 = vpop.f32.mrb[2].mxu1  ;;  %v1777_v55 = vadd.f32 %v1776_v61, %v607_v53  ;;  %v3594_v44 = vld [vmem:[%s4814_s6 + $0x1a0] ss:$8 sps:$4 sm:$0xff]   ;;  %v3602_v61 = vld [vmem:[%s4814_s6 + $0x1c4] ss:$8 sps:$4 sm:$0xff]  }
 0x1cb   :  { %v1779_v48 = vpop.f32.mrb[3].mxu1  ;;  %2039 = vmatprep.subr.bf16.mxu1 %v3512_v29  ;;  %v3599_v29 = vld [vmem:[%s4814_s6 + $0x1b4] ss:$8 sps:$4 sm:$0xff]   ;;  %v3600_v28 = vld [vmem:[%s4814_s6 + $0x1c0] ss:$8 sps:$4 sm:$0xff]  }
 0x1cc   :  { %v3603_v48 = vld [vmem:[%s4814_s6 + $0x1d0] ss:$8 sps:$4 sm:$0xff]  }
 0x1cd   :  { %v3609_v53 = vld [vmem:[%s4814_s6 + $0x1f0] ss:$8 sps:$4 sm:$0xff]  }
 0x1ce   :  { %2040 = vmatpush1.bf16.msra.mxu1 %v3510_v47  ;;  %v3605_v47 = vld [vmem:[%s4814_s6 + $0x1d4] ss:$8 sps:$4 sm:$0xff]  }
 0x1cf   :  { %2041 = vmatprep.subr.bf16.mxu1 %v3515_v49  ;;  %v3608_v49 = vld [vmem:[%s4814_s6 + $0x1e4] ss:$8 sps:$4 sm:$0xff]  }
 0x1d2   :  { %2042 = vmatpush1.bf16.msra.mxu1 %v3513_v50  ;;  %v3606_v50 = vld [vmem:[%s4814_s6 + $0x1e0] ss:$8 sps:$4 sm:$0xff]  }
 0x1d3   :  { %3093 = vmatprep.subr.bf16.mxu1 %v3612_v62 }
 0x1d5   :  { %2060 = vmatmul.mubr.bf16.vlgmr.msra.gmra.mrb[4].mxu1 %v4345_v9 }
 0x1d6   :  { %3094 = vmatpush3.bf16.msra.mxu1 %v3613_v63 }
 0x1d7   :  { %3095 = vmatprep.subr.bf16.mxu1 %v3614_v1 }
 0x1da   :  { %3096 = vmatpush3.bf16.msra.mxu1 %v3615_v7 }
 0x1db   :  { %3097 = vmatprep.subr.bf16.mxu1 %v3616_v10 }
 0x1de   :  { %3098 = vmatpush3.bf16.msra.mxu1 %v3617_v14 }
 0x1df   :  { %3099 = vmatprep.subr.bf16.mxu1 %v3618_v15 }
 0x1e2   :  { %3100 = vmatpush3.bf16.msra.mxu1 %v3619_v18 }
 0x1e3   :  { %3101 = vmatprep.subr.bf16.mxu1 %v3620_v20 }
 0x1e6   :  { %3102 = vmatpush3.bf16.msra.mxu1 %v3621_v27 }
 0x1e7   :  { %3103 = vmatprep.subr.bf16.mxu1 %v3622_v30 }
 0x1ea   :  { %3104 = vmatpush3.bf16.msra.mxu1 %v3623_v33 }
 0x1eb   :  { %3105 = vmatprep.subr.bf16.mxu1 %v3624_v22 }
 0x230   :  { %v1897_v56 = vpop.f32.mrb[16].mxu0 }
 0x231   :  { %v3124_v58 = vadd.f32 %v1897_v56, %v1775_v54  ;;  %v1899_v59 = vpop.f32.mrb[17].mxu0  ;;  %v611_v54 = vrot.slane %v4629_v51, %v80_v32 }
 0x232   :  { %v3126_v9 = vadd.f32 %v1899_v59, %v1777_v55  ;;  %v1901_v60 = vpop.f32.mrb[18].mxu0  ;;  %v615_v55 = vrot.slane %v4629_v51, %v84_v35  ;;  %v3625_v35 = vld [vmem:[%s4816_s8 + $0x30] sm:$0xff]   ;;  %v3626_v51 = vld [vmem:[%s4816_s8 + $0x78] sm:$0xff]  }
 0x233   :  { %vm2069_vm9 = vcmp.gt.f32.partialorder %v3124_v58, 0.0  ;;  %v2074_v3 = vmul.f32 %v3124_v58, %v4635_v57  ;;  %v1902_v4 = vpop.f32.mrb[19].mxu0  ;;  %3106 = vmatpush3.bf16.msra.mxu1 %v3625_v35 }
 0x234   :  { %vm2070_vm10 = vcmp.gt.f32.partialorder %v3126_v9, 0.0  ;;  %v2075_v5 = vmul.f32 %v3126_v9, %v4635_v57  ;;  %3107 = vmatprep.subr.bf16.mxu1 %v3626_v51 }
 0x235   :  { %v2078_v6 = vsel %vm2069_vm9, %v3124_v58, %v2074_v3 }
 0x236   :  { %v2079_v8 = vsel %vm2070_vm10, %v3126_v9, %v2075_v5  ;;  %v2082_v43 = vpack.c.bf16 %v2078_v6, %v2078_v6  ;;  %v2150_v6 = vld [vmem:[%s4815_s7] sm:$0x3] }
 0x237   :  { %v2083_v11 = vpack.c.bf16 %v2079_v8, %v2079_v8  ;;  %v2155_v7 = vrot.slane %v2150_v6, %v3982_v23  ;;  %v2159_v8 = vrot.slane %v2150_v6, %v3990_v25  ;;  %v3073_v25 = vld [vmem:[%s4817_s9] ss:$0 sm:$0xff] }
 0x239   :  { %2514 = vmatprep.mubr.bf16.mxu0 %v2083_v11  ;;  %v2567_v11 = vstv %s3072_s14 }
 0x23a   :  { %2515 = vmatmul.mubr.bf16.vlgmr.msra.gmra.mrb[20].mxu0 %v2082_v43 }
 0x23b   :  { %2524 = vmatpush1.bf16.msra.mxu0 %v3564_v12 }
 0x23c   :  { %2525 = vmatprep.subr.bf16.mxu0 %v3569_v13 }
 0x23f   :  { %2526 = vmatpush1.bf16.msra.mxu0 %v3567_v16 }
 0x240   :  { %2527 = vmatprep.subr.bf16.mxu0 %v3572_v17 }
 0x243   :  { %2528 = vmatpush1.bf16.msra.mxu0 %v3570_v21 }
 0x244   :  { %2529 = vmatprep.subr.bf16.mxu0 %v3575_v26 }
 0x247   :  { %2530 = vmatpush1.bf16.msra.mxu0 %v3573_v24 }
 0x248   :  { %2531 = vmatprep.subr.bf16.mxu0 %v3578_v31 }
 0x24b   :  { %2532 = vmatpush1.bf16.msra.mxu0 %v3576_v34 }
 0x24c   :  { %2533 = vmatprep.subr.bf16.mxu0 %v3581_v36 }
 0x24f   :  { %2534 = vmatpush1.bf16.msra.mxu0 %v3579_v37 }
 0x250   :  { %2535 = vmatprep.subr.bf16.mxu0 %v3584_v46 }
 0x253   :  { %2536 = vmatpush1.bf16.msra.mxu0 %v3582_v38 }
 0x254   :  { %2537 = vmatprep.subr.bf16.mxu0 %v3587_v0 }
 0x257   :  { %2538 = vmatpush1.bf16.msra.mxu0 %v3585_v2 }
 0x258   :  { %2539 = vmatprep.subr.bf16.mxu0 %v3590_v39 }
 0x25b   :  { %2540 = vmatpush1.bf16.msra.mxu0 %v3588_v40 }
 0x25c   :  { %2541 = vmatprep.subr.bf16.mxu0 %v3593_v19 }
 0x25f   :  { %2542 = vmatpush1.bf16.msra.mxu0 %v3591_v41 }
 0x260   :  { %2543 = vmatprep.subr.bf16.mxu0 %v3596_v42 }
 0x263   :  { %2544 = vmatpush1.bf16.msra.mxu0 %v3594_v44 }
 0x264   :  { %2545 = vmatprep.subr.bf16.mxu0 %v3599_v29 }
 0x267   :  { %2546 = vmatpush1.bf16.msra.mxu0 %v3597_v45 }
 0x268   :  { %2547 = vmatprep.subr.bf16.mxu0 %v3602_v61 }
 0x26b   :  { %2548 = vmatpush1.bf16.msra.mxu0 %v3600_v28 }
 0x26c   :  { %2549 = vmatprep.subr.bf16.mxu0 %v3605_v47 }
 0x26f   :  { %2550 = vmatpush1.bf16.msra.mxu0 %v3603_v48 }
 0x270   :  { %2551 = vmatprep.subr.bf16.mxu0 %v3608_v49 }
 0x273   :  { %2552 = vmatpush1.bf16.msra.mxu0 %v3606_v50 }
 0x274   :  { %2553 = vmatprep.subr.bf16.mxu0 %v3611_v52 }
 0x277   :  { %2554 = vmatpush1.bf16.msra.mxu0 %v3609_v53 }
 0x2a8   :  { %v2061_v56 = vpop.f32.mrb[4].mxu1 }
 0x2a9   :  { %v3127_v58 = vadd.f32 %v2061_v56, %v611_v54  ;;  %v2063_v59 = vpop.f32.mrb[5].mxu1 }
 0x2aa   :  { %v3128_v9 = vadd.f32 %v2063_v59, %v615_v55  ;;  %v2065_v60 = vpop.f32.mrb[6].mxu1 }
 0x2ab   :  { %vm2071_vm11 = vcmp.gt.f32.partialorder %v3127_v58, 0.0  ;;  %v2076_v62 = vmul.f32 %v3127_v58, %v4635_v57  ;;  %v2066_v63 = vpop.f32.mrb[7].mxu1 }
 0x2ac   :  { %vm2072_vm12 = vcmp.gt.f32.partialorder %v3128_v9, 0.0  ;;  %v2077_v1 = vmul.f32 %v3128_v9, %v4635_v57  ;;  %v3627_v57 = vld [vmem:[%s4816_s8 + $0x38] sm:$0xff]  }
 0x2ad   :  { %v2080_v3 = vsel %vm2071_vm11, %v3127_v58, %v2076_v62  ;;  %3108 = vmatpush3.bf16.msra.mxu1 %v3627_v57 }
 0x2ae   :  { %v2081_v4 = vsel %vm2072_vm12, %v3128_v9, %v2077_v1  ;;  %v2084_v32 = vpack.c.bf16 %v2080_v3, %v2080_v3 }
 0x2af   :  { %v2085_v5 = vpack.c.bf16 %v2081_v4, %v2081_v4 }
 0x2b1   :  { %2555 = vmatprep.mubr.bf16.mxu0 %v2085_v5 }
 0x2b2   :  { %2556 = vmatmul.mubr.bf16.vlgmr.msra.gmra.mrb[20].mxu0 %v2084_v32 }
 0x385   :  { %v2557_v10 = vpop.f32.mrb[20].mxu0 }
 0x386   :  { %v3129_v12 = vadd.f32 %v2557_v10, %v2155_v7  ;;  %v2559_v43 = vpop.f32.mrb[21].mxu0 }
 0x387   :  { %v3130_v13 = vadd.f32 %v2559_v43, %v2159_v8  ;;  %v2561_v14 = vpop.f32.mrb[22].mxu0 }
 0x388   :  { %vm2565_vm13 = vcmp.gt.f32.partialorder %v3129_v12, 0.0  ;;  %v2568_v15 = vmul.f32 %v3129_v12, %v2567_v11  ;;  %v2562_v16 = vpop.f32.mrb[23].mxu0 }
 0x389   :  { %vm2566_vm14 = vcmp.gt.f32.partialorder %v3130_v13, 0.0  ;;  %v2569_v17 = vmul.f32 %v3130_v13, %v2567_v11 }
 0x38a   :  { %v2570_v18 = vsel %vm2565_vm13, %v3129_v12, %v2568_v15 }
 0x38b   :  { %v2571_v20 = vsel %vm2566_vm14, %v3130_v13, %v2569_v17  ;;  %v2572_v26 = vpack.c.bf16 %v2570_v18, %v2570_v18 }
 0x38c   :  { %v2573_v21 = vpack.c.bf16 %v2571_v20, %v2571_v20 }
 0x38e   :  { %2741 = vmatprep.mubr.bf16.mxu1 %v2573_v21 }
 0x38f   :  { %2742 = vmatmul.mubr.bf16.vlgmr.msra.gmra.mrb[8].mxu1 %v2572_v26 }
 0x462   :  { %v3109_v23 = vpop.f32.mrb[8].mxu1 }
 0x463   :  { %v3110_v27 = vpop.f32.mrb[9].mxu1 }
 0x464   :  { %v3111_v30 = vadd.f32 %v3110_v27, %v3109_v23  ;;  %v3112_v24 = vpop.f32.mrb[10].mxu1 }
 0x465   :  { %v3113_v31 = vpop.f32.mrb[11].mxu1 }
 0x466   :  { %v2744_v33 = vadd.f32 %v3111_v30, %v3073_v25 }
 0x468   :  { %2749 = vst [vmem:[#allocation5] sm:$0xff] %v2744_v33 }
 0x469   :  { %3651 = shalt.err (!%p3648_p9)
}
 0x46a   :  { %s3652_s0 = scalar_lea.hbm %s4818_s10, 128 }
 0x46b   :  { %p3653_p10 = scmp.ne.s32.totalorder %s4818_s10, %s3652_s0  ;;  %p3656_p11 = scmp.lt.u32.totalorder %s3652_s0, %s4818_s10 }
 0x46d   :  { %p3658_p12 = pnand %p3656_p11, %p3653_p10 }
 0x46f   :  { %3661 = shalt.err (!%p3658_p12)
}
 0x470   :  { %2759 = dma.vmem_to_hbm [thread:$0]  %s2757_s18, 128, %s4818_s10, [#allocation3]  }
 0x471   :  { %3664 = dma.done.wait [#allocation3], 128  }
 0x472   :  { %3665 = vsyncadd [#allocation3], 4294967168 }
 0x473   :  { %2763 = vsyncpa [#allocation3], 1 }
 0x474   :  { %2764 = vsyncpa [#allocation4], 1 }

// kernel: _encoder_pallas.1
= control target key start
LH: loop header
LB: loop body
LE: loop exit
PB: predicated region body
PF: predicated region fallthrough
CT: control target
= control target key end

     0   :  { %15 = vsyncpa [#allocation4], 0  ;;  %s4808_s0 = inlined_call_operand.vmem [shape: f32[3], index: 0, kind: input, shape index: {}]   ;;  %s4809_s1 = inlined_call_operand.vmem [shape: f32[8,32], index: 1, kind: input, shape index: {}]   ;;  %s4810_s2 = inlined_call_operand.vmem [shape: bf16[32,896], index: 2, kind: input, shape index: {}]   ;;  %s4811_s3 = inlined_call_operand.vmem [shape: f32[1,896], index: 3, kind: input, shape index: {}]   ;;  %s4812_s4 = inlined_call_operand.vmem [shape: bf16[896,512], index: 4, kind: input, shape index: {}]   ;;  %s4813_s5 = inlined_call_operand.vmem [shape: f32[1,512], index: 5, kind: input, shape index: {}]   ;;  %s4814_s6 = inlined_call_operand.vmem [shape: bf16[512,256], index: 6, kind: input, shape index: {}]   ;;  %s4815_s7 = inlined_call_operand.vmem [shape: f32[1,256], index: 7, kind: input, shape index: {}]   ;;  %s4816_s8 = inlined_call_operand.vmem [shape: bf16[256,128], index: 8, kind: input, shape index: {}]   ;;  %s4817_s9 = inlined_call_operand.vmem [shape: f32[1,128], index: 9, kind: input, shape index: {}]   ;;  %s4818_s10 = inlined_call_operand.hbm [shape: f32[8,128], index: 10, kind: output, shape index: {}]  }
   0x1   :  { %16 = vsyncpa [#allocation3], 0  ;;  %s23_s15 = sshll.u32 %s4808_s0, 4  ;;  %s24_s15 = int_to_ptr.vmem [resolvable:$true] %s23_s15 }
   0x2   :  { %s3628_s16 = scalar_lea.vmem %s24_s15, 16  ;;  %p3633_p1 = scmp.lt.s32.totalorder %s24_s15, %s24_s15 }
   0x3   :  { %p3629_p0 = scmp.ne.s32.totalorder %s24_s15, %s3628_s16  ;;  %p3634_p2 = scmp.lt.s32.totalorder %s3628_s16, %s3628_s16 }
   0x5   :  { %p3635_p3 = por %p3634_p2, %p3633_p1 }
   0x7   :  { %p3636_p4 = pnand %p3635_p3, %p3629_p0 }
   0x9   :  { %3639 = shalt.err (!%p3636_p4)
}
   0xa   :  { %s3666_s17 = smov [#allocation2]  }
   0xb   :  { %26 = dma.vmem_to_smem %s24_s15, 16, %s3666_s17, [#allocation4]  }
   0xc   :  { %3662 = dma.done.wait [#allocation4], 16  }
   0xd   :  { %3663 = vsyncadd [#allocation4], 4294967280 }
   0xe   :  { %48 = sfence }
   0xf   :  { %v3160_v0 = vld [vmem:[%s4810_s2 + $0x4] ss:$28 sps:$4 sm:$0xff]   ;;  %v3667_v2 = vmov 0   ;;  %v3163_v3 = vld [vmem:[%s4810_s2 + $0x3c] ss:$28 sps:$4 sm:$0xff]   ;;  %vm177_vm0 = vcmask 261120  }
  0x10   :  { %v3162_v1 = vld [vmem:[%s4810_s2] ss:$28 sps:$4 sm:$0xff]   ;;  %213 = vmatprep.mubr.bf16.mxu0 %v3667_v2  ;;  %181 = vmatprep.subr.bf16.mxu0 %v3160_v0  ;;  %v3165_v4 = vld [vmem:[%s4810_s2 + $0x38] ss:$28 sps:$4 sm:$0xff]   ;;  %v3168_v6 = vld [vmem:[%s4810_s2 + $0xc] ss:$28 sps:$4 sm:$0xff]  }
  0x11   :  { %182 = vmatpush1.bf16.msra.mxu0 %v3162_v1  ;;  %v50_v5 = vld [vmem:[%s4809_s1] sm:$0xff]  ;;  %v3174_v13 = vld [vmem:[%s4810_s2 + $0x14] ss:$28 sps:$4 sm:$0xff]   ;;  %v3177_v17 = vld [vmem:[%s4810_s2 + $0x4c] ss:$28 sps:$4 sm:$0xff]   ;;  %v3668_v24 = vmov 0.0  }
  0x12   :  { %183 = vmatprep.subr.bf16.mxu0 %v3163_v3  ;;  %v51_v7 = vpack.c.bf16 %v50_v5, %v50_v5  ;;  %v3166_v8 = vld [vmem:[%s4810_s2 + $0x8] ss:$28 sps:$4 sm:$0xff]   ;;  %v3169_v10 = vld [vmem:[%s4810_s2 + $0x40] ss:$28 sps:$4 sm:$0xff]   ;;  %v3172_v16 = vld [vmem:[%s4810_s2 + $0x10] ss:$28 sps:$4 sm:$0xff]  }
  0x13   :  { %v3171_v9 = vld [vmem:[%s4810_s2 + $0x44] ss:$28 sps:$4 sm:$0xff]   ;;  %v3178_v23 = vld [vmem:[%s4810_s2 + $0x18] ss:$28 sps:$4 sm:$0xff]   ;;  %v3179_v26 = vld [vmem:[%s4810_s2 + $0x50] ss:$28 sps:$4 sm:$0xff]  }
  0x14   :  { %v3180_v11 = vld [vmem:[%s4812_s4 + $0x4] ss:$16 sps:$4 sm:$0xff]   ;;  %v3182_v12 = vld [vmem:[%s4812_s4] ss:$16 sps:$4 sm:$0xff]   ;;  %vm3669_vm1 = vmmov 0   ;;  %s344_s21 = sld [smem:[#allocation2]] }
  0x15   :  { %184 = vmatpush1.bf16.msra.mxu0 %v3165_v4  ;;  %v3183_v14 = vld [vmem:[%s4812_s4 + $0x24] ss:$16 sps:$4 sm:$0xff]   ;;  %1740 = vmatprep.subr.bf16.mxu1 %v3180_v11  ;;  %v3185_v15 = vld [vmem:[%s4812_s4 + $0x20] ss:$16 sps:$4 sm:$0xff]   ;;  %s3072_s14 = sld [smem:[#allocation2 + $0x2]]  ;;  %s3670_s17 = smov [#allocation5]  }
  0x16   :  { %222 = vmatprep.subr.bf16.mxu0 %v3168_v6  ;;  %1741 = vmatpush1.bf16.msra.mxu1 %v3182_v12  ;;  %v3186_v18 = vld [vmem:[%s4812_s4 + $0x44] ss:$16 sps:$4 sm:$0xff]   ;;  %v3191_v20 = vld [vmem:[%s4812_s4 + $0x40] ss:$16 sps:$4 sm:$0xff]   ;;  %s2756_s18 = sshll.u32 %s3670_s17, 4  ;;  %s2757_s18 = int_to_ptr.vmem [resolvable:$true] %s2756_s18 }
  0x17   :  { %1742 = vmatprep.subr.bf16.mxu1 %v3183_v14  ;;  %v3175_v19 = vld [vmem:[%s4810_s2 + $0x48] ss:$28 sps:$4 sm:$0xff]   ;;  %v3197_v22 = vld [vmem:[%s4812_s4 + $0x60] ss:$16 sps:$4 sm:$0xff]   ;;  %s3640_s19 = scalar_lea.vmem %s2757_s18, 128  ;;  %p3645_p6 = scmp.lt.s32.totalorder %s2757_s18, %s2757_s18 }
  0x18   :  { %2779 = vmatmul.mubr.msk.bf16.vlgmr.msra.gmra.mrb[0].mxu0 %vm177_vm0, %v51_v7  ;;  %v3192_v21 = vld [vmem:[%s4812_s4 + $0x64] ss:$16 sps:$4 sm:$0xff]   ;;  %v3203_v27 = vld [vmem:[%s4812_s4 + $0x80] ss:$16 sps:$4 sm:$0xff]   ;;  %p3641_p5 = scmp.ne.s32.totalorder %s2757_s18, %s3640_s19  ;;  %p3646_p7 = scmp.lt.s32.totalorder %s3640_s19, %s3640_s19 }
  0x19   :  { %223 = vmatpush1.bf16.msra.mxu0 %v3166_v8  ;;  %254 = vmatprep.mubr.bf16.mxu0 %v3667_v2  ;;  %v3198_v25 = vld [vmem:[%s4812_s4 + $0x84] ss:$16 sps:$4 sm:$0xff]   ;;  %v3209_v30 = vld [vmem:[%s4812_s4 + $0xa0] ss:$16 sps:$4 sm:$0xff]  }
  0x1a   :  { %224 = vmatprep.subr.bf16.mxu0 %v3171_v9  ;;  %1743 = vmatpush1.bf16.msra.mxu1 %v3185_v15  ;;  %v3204_v28 = vld [vmem:[%s4812_s4 + $0xa4] ss:$16 sps:$4 sm:$0xff]   ;;  %v3188_v31 = vld [vmem:[%s4812_s4 + $0x200] ss:$16 sps:$4 sm:$0xff]   ;;  %p3647_p8 = por %p3646_p7, %p3645_p6 }
  0x1b   :  { %1744 = vmatprep.subr.bf16.mxu1 %v3186_v18  ;;  %v3190_v29 = vld [vmem:[%s4812_s4 + $0x204] ss:$16 sps:$4 sm:$0xff]   ;;  %v3194_v34 = vld [vmem:[%s4812_s4 + $0x220] ss:$16 sps:$4 sm:$0xff]  }
  0x1c   :  { %v3210_v32 = vld [vmem:[%s4812_s4 + $0xc4] ss:$16 sps:$4 sm:$0xff]   ;;  %v3215_v35 = vld [vmem:[%s4812_s4 + $0xc0] ss:$16 sps:$4 sm:$0xff]   ;;  %p3648_p9 = pnand %p3647_p8, %p3641_p5 }
  0x1d   :  { %225 = vmatpush1.bf16.msra.mxu0 %v3169_v10  ;;  %v3196_v33 = vld [vmem:[%s4812_s4 + $0x224] ss:$16 sps:$4 sm:$0xff]   ;;  %v3221_v38 = vld [vmem:[%s4812_s4 + $0xe0] ss:$16 sps:$4 sm:$0xff]  }
  0x1e   :  { %263 = vmatprep.subr.bf16.mxu0 %v3174_v13  ;;  %1745 = vmatpush1.bf16.msra.mxu1 %v3191_v20  ;;  %v3216_v36 = vld [vmem:[%s4812_s4 + $0xe4] ss:$16 sps:$4 sm:$0xff]   ;;  %v3200_v39 = vld [vmem:[%s4812_s4 + $0x240] ss:$16 sps:$4 sm:$0xff]  }
  0x1f   :  { %1746 = vmatprep.subr.bf16.mxu1 %v3192_v21  ;;  %v3202_v37 = vld [vmem:[%s4812_s4 + $0x244] ss:$16 sps:$4 sm:$0xff]   ;;  %v3206_v42 = vld [vmem:[%s4812_s4 + $0x260] ss:$16 sps:$4 sm:$0xff]   ;;  %v70_v21 = vlaneseq }
  0x20   :  { %2780 = vmatmul.mubr.msk.bf16.vlgmr.msra.gmra.mrb[4].mxu0 %vm177_vm0, %v51_v7  ;;  %v3222_v40 = vld [vmem:[%s4812_s4 + $0x104] ss:$16 sps:$4 sm:$0xff]   ;;  %v3227_v43 = vld [vmem:[%s4812_s4 + $0x100] ss:$16 sps:$4 sm:$0xff]  }
  0x21   :  { %264 = vmatpush1.bf16.msra.mxu0 %v3172_v16  ;;  %295 = vmatprep.mubr.bf16.mxu0 %v3667_v2  ;;  %v3208_v41 = vld [vmem:[%s4812_s4 + $0x264] ss:$16 sps:$4 sm:$0xff]   ;;  %v3233_v46 = vld [vmem:[%s4812_s4 + $0x120] ss:$16 sps:$4 sm:$0xff]   ;;  %v3275_v16 = vld [vmem:[%s4812_s4 + $0xc] ss:$16 sps:$4 sm:$0xff]  }
  0x22   :  { %265 = vmatprep.subr.bf16.mxu0 %v3177_v17  ;;  %1747 = vmatpush1.bf16.msra.mxu1 %v3197_v22  ;;  %v3228_v44 = vld [vmem:[%s4812_s4 + $0x124] ss:$16 sps:$4 sm:$0xff]   ;;  %v3212_v47 = vld [vmem:[%s4812_s4 + $0x280] ss:$16 sps:$4 sm:$0xff]   ;;  %v3979_v22 = vshrl.u32 %v70_v21, 7 }
  0x23   :  { %1748 = vmatprep.subr.bf16.mxu1 %v3198_v25  ;;  %v3214_v45 = vld [vmem:[%s4812_s4 + $0x284] ss:$16 sps:$4 sm:$0xff]   ;;  %v3239_v50 = vld [vmem:[%s4812_s4 + $0x140] ss:$16 sps:$4 sm:$0xff]  }
  0x24   :  { %v3234_v48 = vld [vmem:[%s4812_s4 + $0x144] ss:$16 sps:$4 sm:$0xff]   ;;  %v3218_v51 = vld [vmem:[%s4812_s4 + $0x2a0] ss:$16 sps:$4 sm:$0xff]   ;;  %v3990_v25 = vsub.s32 1, %v3979_v22 }
  0x25   :  { %266 = vmatpush1.bf16.msra.mxu0 %v3175_v19  ;;  %v3220_v49 = vld [vmem:[%s4812_s4 + $0x2a4] ss:$16 sps:$4 sm:$0xff]   ;;  %v3245_v54 = vld [vmem:[%s4812_s4 + $0x160] ss:$16 sps:$4 sm:$0xff]  }
  0x26   :  { %3115 = vmatprep.subr.bf16.mxu0 %v3668_v24  ;;  %1749 = vmatpush1.bf16.msra.mxu1 %v3203_v27  ;;  %v3240_v52 = vld [vmem:[%s4812_s4 + $0x164] ss:$16 sps:$4 sm:$0xff]   ;;  %v3224_v55 = vld [vmem:[%s4812_s4 + $0x2c0] ss:$16 sps:$4 sm:$0xff]  }
  0x27   :  { %1750 = vmatprep.subr.bf16.mxu1 %v3204_v28  ;;  %v3226_v53 = vld [vmem:[%s4812_s4 + $0x2c4] ss:$16 sps:$4 sm:$0xff]   ;;  %v3251_v58 = vld [vmem:[%s4812_s4 + $0x180] ss:$16 sps:$4 sm:$0xff]  }
  0x28   :  { %2781 = vmatmul.mubr.msk.bf16.vlgmr.msra.gmra.mrb[8].mxu0 %vm177_vm0, %v51_v7  ;;  %v3246_v56 = vld [vmem:[%s4812_s4 + $0x184] ss:$16 sps:$4 sm:$0xff]   ;;  %v3230_v59 = vld [vmem:[%s4812_s4 + $0x2e0] ss:$16 sps:$4 sm:$0xff]  }
  0x29   :  { %3116 = vmatpush3.bf16.msra.mxu0 %v3178_v23  ;;  %3119 = vmatprep.mubr.msk.bf16.mxu0 %vm3669_vm1, %v3668_v24  ;;  %v3232_v57 = vld [vmem:[%s4812_s4 + $0x2e4] ss:$16 sps:$4 sm:$0xff]   ;;  %v3257_v62 = vld [vmem:[%s4812_s4 + $0x1a0] ss:$16 sps:$4 sm:$0xff]   ;;  %v3982_v23 = vsub.s32 0, %v3979_v22 }
  0x2a   :  { %3117 = vmatprep.subr.bf16.mxu0 %v3668_v24  ;;  %1751 = vmatpush1.bf16.msra.mxu1 %v3209_v30  ;;  %v3252_v60 = vld [vmem:[%s4812_s4 + $0x1a4] ss:$16 sps:$4 sm:$0xff]   ;;  %v3236_v63 = vld [vmem:[%s4812_s4 + $0x300] ss:$16 sps:$4 sm:$0xff]  }
  0x2b   :  { %1752 = vmatprep.subr.bf16.mxu1 %v3210_v32  ;;  %v3238_v61 = vld [vmem:[%s4812_s4 + $0x304] ss:$16 sps:$4 sm:$0xff]   ;;  %v3242_v1 = vld [vmem:[%s4812_s4 + $0x320] ss:$16 sps:$4 sm:$0xff]   ;;  %v80_v32 = vsub.s32 2, %v3979_v22 }
  0x2c   :  { %v3244_v0 = vld [vmem:[%s4812_s4 + $0x324] ss:$16 sps:$4 sm:$0xff]   ;;  %v3248_v4 = vld [vmem:[%s4812_s4 + $0x340] ss:$16 sps:$4 sm:$0xff]  }
  0x2d   :  { %3118 = vmatpush3.bf16.msra.mxu0 %v3179_v26  ;;  %v3250_v3 = vld [vmem:[%s4812_s4 + $0x344] ss:$16 sps:$4 sm:$0xff]   ;;  %v3254_v6 = vld [vmem:[%s4812_s4 + $0x360] ss:$16 sps:$4 sm:$0xff]  }
  0x2e   :  { %1781 = vmatprep.subr.bf16.mxu0 %v3190_v29  ;;  %1753 = vmatpush1.bf16.msra.mxu1 %v3215_v35  ;;  %v3256_v5 = vld [vmem:[%s4812_s4 + $0x364] ss:$16 sps:$4 sm:$0xff]   ;;  %v3260_v9 = vld [vmem:[%s4812_s4 + $0x380] ss:$16 sps:$4 sm:$0xff]   ;;  %v3996_v29 = vstv %s344_s21  ;;  %v84_v35 = vsub.s32 3, %v3979_v22 }
  0x2f   :  { %1754 = vmatprep.subr.bf16.mxu1 %v3216_v36  ;;  %v3262_v8 = vld [vmem:[%s4812_s4 + $0x384] ss:$16 sps:$4 sm:$0xff]   ;;  %v3263_v10 = vld [vmem:[%s4812_s4 + $0x1c0] ss:$16 sps:$4 sm:$0xff]  }
  0x30   :  { %3120 = vmatmul.mubr.msk.bf16.vlgmr.msra.gmra.mrb[12].mxu0 %vm177_vm0, %v51_v7  ;;  %v3258_v7 = vld [vmem:[%s4812_s4 + $0x1c4] ss:$16 sps:$4 sm:$0xff]   ;;  %v3266_v13 = vld [vmem:[%s4812_s4 + $0x3a0] ss:$16 sps:$4 sm:$0xff]  }
  0x31   :  { %1782 = vmatpush1.bf16.msra.mxu0 %v3188_v31  ;;  %v3264_v11 = vld [vmem:[%s4812_s4 + $0x1e4] ss:$16 sps:$4 sm:$0xff]   ;;  %v3269_v14 = vld [vmem:[%s4812_s4 + $0x1e0] ss:$16 sps:$4 sm:$0xff]  }
  0x32   :  { %1783 = vmatprep.subr.bf16.mxu0 %v3196_v33  ;;  %1755 = vmatpush1.bf16.msra.mxu1 %v3221_v38  ;;  %v3268_v12 = vld [vmem:[%s4812_s4 + $0x3a4] ss:$16 sps:$4 sm:$0xff]   ;;  %v3270_v17 = vld [vmem:[%s4812_s4 + $0x3c0] ss:$16 sps:$4 sm:$0xff]  }
  0x33   :  { %1756 = vmatprep.subr.bf16.mxu1 %v3222_v40  ;;  %v3272_v15 = vld [vmem:[%s4812_s4 + $0x3c4] ss:$16 sps:$4 sm:$0xff]   ;;  %v3276_v19 = vld [vmem:[%s4812_s4 + $0x3e0] ss:$16 sps:$4 sm:$0xff]  }
  0x34   :  { %v3278_v18 = vld [vmem:[%s4812_s4 + $0x3e4] ss:$16 sps:$4 sm:$0xff]  }
  0x35   :  { %1784 = vmatpush1.bf16.msra.mxu0 %v3194_v34  ;;  %v3284_v20 = vld [vmem:[%s4812_s4 + $0x404] ss:$16 sps:$4 sm:$0xff]  }
  0x36   :  { %1785 = vmatprep.subr.bf16.mxu0 %v3202_v37  ;;  %1757 = vmatpush1.bf16.msra.mxu1 %v3227_v43  ;;  %v3987_v24 = vld [vmem:[%s4811_s3] sm:$0xff]  ;;  %s3007_s3 = sld [smem:[#allocation2 + $0x1]] }
  0x37   :  { %1758 = vmatprep.subr.bf16.mxu1 %v3228_v44  ;;  %v73_v26 = vrot.slane %v3987_v24, %v3982_v23  ;;  %v77_v27 = vrot.slane %v3987_v24, %v3990_v25  ;;  %v3273_v44 = vld [vmem:[%s4812_s4 + $0x8] ss:$16 sps:$4 sm:$0xff]  }
  0x39   :  { %1786 = vmatpush1.bf16.msra.mxu0 %v3200_v39  ;;  %v81_v39 = vrot.slane %v3987_v24, %v80_v32 }
  0x3a   :  { %1787 = vmatprep.subr.bf16.mxu0 %v3208_v41  ;;  %1759 = vmatpush1.bf16.msra.mxu1 %v3233_v46  ;;  %v85_v41 = vrot.slane %v3987_v24, %v84_v35 }
  0x3b   :  { %1760 = vmatprep.subr.bf16.mxu1 %v3234_v48 }
  0x3d   :  { %1788 = vmatpush1.bf16.msra.mxu0 %v3206_v42 }
  0x3e   :  { %1789 = vmatprep.subr.bf16.mxu0 %v3214_v45  ;;  %1761 = vmatpush1.bf16.msra.mxu1 %v3239_v50  ;;  %v88_v50 = vsub.s32 4, %v3979_v22 }
  0x3f   :  { %1762 = vmatprep.subr.bf16.mxu1 %v3240_v52 }
  0x41   :  { %1790 = vmatpush1.bf16.msra.mxu0 %v3212_v47  ;;  %v3281_v47 = vld [vmem:[%s4812_s4 + $0x2c] ss:$16 sps:$4 sm:$0xff]  }
  0x42   :  { %1791 = vmatprep.subr.bf16.mxu0 %v3220_v49  ;;  %1763 = vmatpush1.bf16.msra.mxu1 %v3245_v54 }
  0x43   :  { %1764 = vmatprep.subr.bf16.mxu1 %v3246_v56 }
  0x45   :  { %1792 = vmatpush1.bf16.msra.mxu0 %v3218_v51 }
  0x46   :  { %1793 = vmatprep.subr.bf16.mxu0 %v3226_v53  ;;  %1765 = vmatpush1.bf16.msra.mxu1 %v3251_v58  ;;  %v92_v53 = vsub.s32 5, %v3979_v22  ;;  %v3287_v58 = vld [vmem:[%s4812_s4 + $0x4c] ss:$16 sps:$4 sm:$0xff]  }
  0x47   :  { %1766 = vmatprep.subr.bf16.mxu1 %v3252_v60  ;;  %v89_v60 = vrot.slane %v3987_v24, %v88_v50  ;;  %v3320_v50 = vld [vmem:[%s4812_s4 + $0x4c4] ss:$16 sps:$4 sm:$0xff]  }
  0x49   :  { %1794 = vmatpush1.bf16.msra.mxu0 %v3224_v55  ;;  %v3279_v55 = vld [vmem:[%s4812_s4 + $0x28] ss:$16 sps:$4 sm:$0xff]  }
  0x4a   :  { %1795 = vmatprep.subr.bf16.mxu0 %v3232_v57  ;;  %1767 = vmatpush1.bf16.msra.mxu1 %v3257_v62 }
  0x4b   :  { %1768 = vmatprep.subr.bf16.mxu1 %v3258_v7 }
  0x4d   :  { %1796 = vmatpush1.bf16.msra.mxu0 %v3230_v59 }
  0x4e   :  { %1797 = vmatprep.subr.bf16.mxu0 %v3238_v61  ;;  %1769 = vmatpush1.bf16.msra.mxu1 %v3263_v10 }
  0x4f   :  { %1770 = vmatprep.subr.bf16.mxu1 %v3264_v11 }
  0x51   :  { %1798 = vmatpush1.bf16.msra.mxu0 %v3236_v63  ;;  %v93_v63 = vrot.slane %v3987_v24, %v92_v53  ;;  %v3321_v53 = vld [vmem:[%s4812_s4 + $0x108] ss:$16 sps:$4 sm:$0xff]  }
  0x52   :  { %1799 = vmatprep.subr.bf16.mxu0 %v3244_v0  ;;  %1771 = vmatpush1.bf16.msra.mxu1 %v3269_v14 }
  0x53   :  { %1904 = vmatprep.subr.bf16.mxu1 %v3275_v16  ;;  %v3296_v16 = vld [vmem:[%s4812_s4 + $0x444] ss:$16 sps:$4 sm:$0xff]  }
  0x55   :  { %1800 = vmatpush1.bf16.msra.mxu0 %v3242_v1  ;;  %v3282_v1 = vld [vmem:[%s4812_s4 + $0x400] ss:$16 sps:$4 sm:$0xff]  }
  0x56   :  { %1801 = vmatprep.subr.bf16.mxu0 %v3250_v3  ;;  %v3285_v3 = vld [vmem:[%s4812_s4 + $0x48] ss:$16 sps:$4 sm:$0xff]  }
  0x59   :  { %1802 = vmatpush1.bf16.msra.mxu0 %v3248_v4  ;;  %v3290_v4 = vld [vmem:[%s4812_s4 + $0x424] ss:$16 sps:$4 sm:$0xff]  }
  0x5a   :  { %1803 = vmatprep.subr.bf16.mxu0 %v3256_v5  ;;  %v3293_v5 = vld [vmem:[%s4812_s4 + $0x6c] ss:$16 sps:$4 sm:$0xff]  }
  0x5d   :  { %1804 = vmatpush1.bf16.msra.mxu0 %v3254_v6 }
  0x5e   :  { %1805 = vmatprep.subr.bf16.mxu0 %v3262_v8 }
  0x61   :  { %1806 = vmatpush1.bf16.msra.mxu0 %v3260_v9  ;;  %v96_v9 = vsub.s32 6, %v3979_v22  ;;  %v3624_v22 = vld [vmem:[%s4816_s8 + $0x70] sm:$0xff]  }
  0x62   :  { %1807 = vmatprep.subr.bf16.mxu0 %v3268_v12  ;;  %v3288_v12 = vld [vmem:[%s4812_s4 + $0x420] ss:$16 sps:$4 sm:$0xff]  }
  0x65   :  { %1808 = vmatpush1.bf16.msra.mxu0 %v3266_v13  ;;  %v3291_v13 = vld [vmem:[%s4812_s4 + $0x68] ss:$16 sps:$4 sm:$0xff]  }
  0x66   :  { %1809 = vmatprep.subr.bf16.mxu0 %v3272_v15 }
  0x69   :  { %1810 = vmatpush1.bf16.msra.mxu0 %v3270_v17  ;;  %v3299_v17 = vld [vmem:[%s4812_s4 + $0x8c] ss:$16 sps:$4 sm:$0xff]  }
  0x6a   :  { %1811 = vmatprep.subr.bf16.mxu0 %v3278_v18 }
  0x6d   :  { %1812 = vmatpush1.bf16.msra.mxu0 %v3276_v19 }
  0x6e   :  { %1822 = vmatprep.subr.bf16.mxu0 %v3284_v20  ;;  %v97_v20 = vrot.slane %v3987_v24, %v96_v9  ;;  %v3305_v24 = vld [vmem:[%s4812_s4 + $0xac] ss:$16 sps:$4 sm:$0xff]   ;;  %v3350_v9 = vld [vmem:[%s4812_s4 + $0x564] ss:$16 sps:$4 sm:$0xff]  }
  0xeb   :  { %v215_v28 = vpop.f32.mrb[0].mxu0 }
  0xec   :  { %v216_v30 = vadd.f32 %v215_v28, %v73_v26  ;;  %v217_v31 = vpop.f32.mrb[1].mxu0  ;;  %v3294_v26 = vld [vmem:[%s4812_s4 + $0x440] ss:$16 sps:$4 sm:$0xff]  }
  0xed   :  { %v218_v33 = vadd.f32 %v217_v31, %v77_v27  ;;  %v219_v34 = vpop.f32.mrb[2].mxu0  ;;  %v3297_v27 = vld [vmem:[%s4812_s4 + $0x88] ss:$16 sps:$4 sm:$0xff]  }
  0xee   :  { %vm345_vm2 = vcmp.gt.f32.partialorder %v216_v30, 0.0  ;;  %v353_v36 = vmul.f32 %v3996_v29, %v216_v30  ;;  %v220_v37 = vpop.f32.mrb[3].mxu0 }
  0xef   :  { %v354_v38 = vmul.f32 %v3996_v29, %v218_v33  ;;  %vm346_vm3 = vcmp.gt.f32.partialorder %v218_v33, 0.0  ;;  %v3300_v37 = vld [vmem:[%s4812_s4 + $0x460] ss:$16 sps:$4 sm:$0xff]  }
  0xf0   :  { %v360_v40 = vsel %vm345_vm2, %v216_v30, %v353_v36  ;;  %v3302_v30 = vld [vmem:[%s4812_s4 + $0x464] ss:$16 sps:$4 sm:$0xff]  }
  0xf1   :  { %v361_v42 = vsel %vm346_vm3, %v218_v33, %v354_v38  ;;  %v4011_v46 = vpack.c.bf16 %v360_v40, %v360_v40  ;;  %v3303_v38 = vld [vmem:[%s4812_s4 + $0xa8] ss:$16 sps:$4 sm:$0xff]  }
  0xf2   :  { %v368_v43 = vpack.c.bf16 %v361_v42, %v361_v42  ;;  %v3311_v42 = vld [vmem:[%s4812_s4 + $0xcc] ss:$16 sps:$4 sm:$0xff]  }
  0xf3   :  { %v256_v45 = vpop.f32.mrb[4].mxu0 }
  0xf4   :  { %v257_v48 = vadd.f32 %v256_v45, %v81_v39  ;;  %v258_v49 = vpop.f32.mrb[5].mxu0  ;;  %1772 = vmatprep.mubr.bf16.mxu1 %v368_v43  ;;  %v3314_v45 = vld [vmem:[%s4812_s4 + $0x4a4] ss:$16 sps:$4 sm:$0xff]  }
  0xf5   :  { %v259_v51 = vadd.f32 %v258_v49, %v85_v41  ;;  %1773 = vmatmul.mubr.bf16.vlgmr.msra.gmra.mrb[0].mxu1 %v4011_v46  ;;  %v260_v52 = vpop.f32.mrb[6].mxu0  ;;  %v3308_v41 = vld [vmem:[%s4812_s4 + $0x484] ss:$16 sps:$4 sm:$0xff]   ;;  %v3315_v49 = vld [vmem:[%s4812_s4 + $0xe8] ss:$16 sps:$4 sm:$0xff]  }
  0xf6   :  { %vm347_vm4 = vcmp.gt.f32.partialorder %v257_v48, 0.0  ;;  %v355_v54 = vmul.f32 %v3996_v29, %v257_v48  ;;  %1905 = vmatpush1.bf16.msra.mxu1 %v3273_v44  ;;  %1936 = vmatprep.mubr.bf16.mxu1 %v368_v43  ;;  %v261_v56 = vpop.f32.mrb[7].mxu0  ;;  %v3306_v44 = vld [vmem:[%s4812_s4 + $0x480] ss:$16 sps:$4 sm:$0xff]  }
  0xf7   :  { %vm348_vm5 = vcmp.gt.f32.partialorder %v259_v51, 0.0  ;;  %v356_v57 = vmul.f32 %v3996_v29, %v259_v51  ;;  %1906 = vmatprep.subr.bf16.mxu1 %v3281_v47  ;;  %v3317_v47 = vld [vmem:[%s4812_s4 + $0xec] ss:$16 sps:$4 sm:$0xff]   ;;  %v3318_v52 = vld [vmem:[%s4812_s4 + $0x4c0] ss:$16 sps:$4 sm:$0xff]  }
  0xf8   :  { %v362_v59 = vsel %vm347_vm4, %v257_v48, %v355_v54  ;;  %v3312_v48 = vld [vmem:[%s4812_s4 + $0x4a0] ss:$16 sps:$4 sm:$0xff]   ;;  %v3326_v54 = vld [vmem:[%s4812_s4 + $0x4e4] ss:$16 sps:$4 sm:$0xff]  }
  0xf9   :  { %v4028_v61 = vpack.c.bf16 %v362_v59, %v362_v59  ;;  %v363_v62 = vsel %vm348_vm5, %v259_v51, %v356_v57  ;;  %v3323_v51 = vld [vmem:[%s4812_s4 + $0x10c] ss:$16 sps:$4 sm:$0xff]   ;;  %v3324_v56 = vld [vmem:[%s4812_s4 + $0x4e0] ss:$16 sps:$4 sm:$0xff]   ;;  %v3327_v57 = vld [vmem:[%s4812_s4 + $0x128] ss:$16 sps:$4 sm:$0xff]  }
  0xfa   :  { %1907 = vmatpush1.bf16.msra.mxu1 %v3279_v55  ;;  %v4031_v0 = vpack.c.bf16 %v363_v62, %v363_v62  ;;  %v3329_v55 = vld [vmem:[%s4812_s4 + $0x12c] ss:$16 sps:$4 sm:$0xff]   ;;  %v3333_v62 = vld [vmem:[%s4812_s4 + $0x148] ss:$16 sps:$4 sm:$0xff]  }
  0xfb   :  { %1908 = vmatprep.subr.bf16.mxu1 %v3287_v58  ;;  %v297_v6 = vpop.f32.mrb[8].mxu0  ;;  %v3332_v58 = vld [vmem:[%s4812_s4 + $0x504] ss:$16 sps:$4 sm:$0xff]   ;;  %v3335_v59 = vld [vmem:[%s4812_s4 + $0x14c] ss:$16 sps:$4 sm:$0xff]  }
  0xfc   :  { %1813 = vmatprep.mubr.bf16.mxu0 %v4031_v0  ;;  %v298_v7 = vadd.f32 %v297_v6, %v89_v60  ;;  %v299_v8 = vpop.f32.mrb[9].mxu0  ;;  %v3330_v60 = vld [vmem:[%s4812_s4 + $0x500] ss:$16 sps:$4 sm:$0xff]   ;;  %v3347_v6 = vld [vmem:[%s4812_s4 + $0x18c] ss:$16 sps:$4 sm:$0xff]  }
  0xfd   :  { %1814 = vmatmul.mubr.bf16.vlgmr.msra.gmra.mrb[16].mxu0 %v4028_v61  ;;  %v300_v10 = vadd.f32 %v299_v8, %v93_v63  ;;  %v301_v11 = vpop.f32.mrb[10].mxu0  ;;  %v3338_v63 = vld [vmem:[%s4812_s4 + $0x524] ss:$16 sps:$4 sm:$0xff]   ;;  %v3345_v8 = vld [vmem:[%s4812_s4 + $0x188] ss:$16 sps:$4 sm:$0xff]  }
  0xfe   :  { %1823 = vmatpush1.bf16.msra.mxu0 %v3282_v1  ;;  %1909 = vmatpush1.bf16.msra.mxu1 %v3285_v3  ;;  %vm349_vm6 = vcmp.gt.f32.partialorder %v298_v7, 0.0  ;;  %v357_v14 = vmul.f32 %v3996_v29, %v298_v7  ;;  %v302_v15 = vpop.f32.mrb[11].mxu0  ;;  %v3341_v1 = vld [vmem:[%s4812_s4 + $0x16c] ss:$16 sps:$4 sm:$0xff]   ;;  %v3336_v3 = vld [vmem:[%s4812_s4 + $0x520] ss:$16 sps:$4 sm:$0xff]  }
  0xff   :  { %1824 = vmatprep.subr.bf16.mxu0 %v3290_v4  ;;  %1910 = vmatprep.subr.bf16.mxu1 %v3293_v5  ;;  %vm350_vm7 = vcmp.gt.f32.partialorder %v300_v10, 0.0  ;;  %v358_v18 = vmul.f32 %v3996_v29, %v300_v10  ;;  %v3339_v4 = vld [vmem:[%s4812_s4 + $0x168] ss:$16 sps:$4 sm:$0xff]   ;;  %v3344_v5 = vld [vmem:[%s4812_s4 + $0x544] ss:$16 sps:$4 sm:$0xff]  }
 0x100   :  { %v4062_v19 = vsel %vm349_vm6, %v298_v7, %v357_v14  ;;  %v3342_v7 = vld [vmem:[%s4812_s4 + $0x540] ss:$16 sps:$4 sm:$0xff]   ;;  %v3359_v14 = vld [vmem:[%s4812_s4 + $0x1cc] ss:$16 sps:$4 sm:$0xff]  }
 0x101   :  { %v365_v21 = vsel %vm350_vm7, %v300_v10, %v358_v18  ;;  %v3353_v10 = vld [vmem:[%s4812_s4 + $0x1ac] ss:$16 sps:$4 sm:$0xff]   ;;  %v3348_v11 = vld [vmem:[%s4812_s4 + $0x560] ss:$16 sps:$4 sm:$0xff]  }
 0x102   :  { %1825 = vmatpush1.bf16.msra.mxu0 %v3288_v12  ;;  %1911 = vmatpush1.bf16.msra.mxu1 %v3291_v13  ;;  %v4071_v28 = vpack.c.bf16 %v365_v21, %v365_v21  ;;  %v3351_v12 = vld [vmem:[%s4812_s4 + $0x1a8] ss:$16 sps:$4 sm:$0xff]   ;;  %v3356_v13 = vld [vmem:[%s4812_s4 + $0x584] ss:$16 sps:$4 sm:$0xff]   ;;  %v3354_v15 = vld [vmem:[%s4812_s4 + $0x580] ss:$16 sps:$4 sm:$0xff]  }
 0x103   :  { %1826 = vmatprep.subr.bf16.mxu0 %v3296_v16  ;;  %1912 = vmatprep.subr.bf16.mxu1 %v3299_v17  ;;  %v338_v31 = vpop.f32.mrb[12].mxu0  ;;  %v3357_v16 = vld [vmem:[%s4812_s4 + $0x1c8] ss:$16 sps:$4 sm:$0xff]   ;;  %v3362_v17 = vld [vmem:[%s4812_s4 + $0x5a4] ss:$16 sps:$4 sm:$0xff]  }
 0x104   :  { %1854 = vmatprep.mubr.bf16.mxu0 %v4071_v28  ;;  %v339_v33 = vadd.f32 %v338_v31, %v97_v20  ;;  %v3121_v34 = vpop.f32.mrb[13].mxu0  ;;  %v3365_v18 = vld [vmem:[%s4812_s4 + $0x1ec] ss:$16 sps:$4 sm:$0xff]   ;;  %v3360_v20 = vld [vmem:[%s4812_s4 + $0x5a0] ss:$16 sps:$4 sm:$0xff]  }
 0x105   :  { %v341_v36 = vpop.f32.mrb[14].mxu0  ;;  %v3363_v21 = vld [vmem:[%s4812_s4 + $0x1e8] ss:$16 sps:$4 sm:$0xff]   ;;  %v3374_v31 = vld [vmem:[%s4812_s4 + $0x5e4] ss:$16 sps:$4 sm:$0xff]  }
 0x106   :  { %1827 = vmatpush1.bf16.msra.mxu0 %v3294_v26  ;;  %1913 = vmatpush1.bf16.msra.mxu1 %v3297_v27  ;;  %vm351_vm8 = vcmp.gt.f32.partialorder %v339_v33, 0.0  ;;  %v359_v39 = vmul.f32 %v3996_v29, %v339_v33  ;;  %v3122_v40 = vpop.f32.mrb[15].mxu0  ;;  %v3309_v29 = vld [vmem:[%s4812_s4 + $0xc8] ss:$16 sps:$4 sm:$0xff]   ;;  %v3368_v26 = vld [vmem:[%s4812_s4 + $0x5c4] ss:$16 sps:$4 sm:$0xff]  }
 0x107   :  { %1828 = vmatprep.subr.bf16.mxu0 %v3302_v30  ;;  %1914 = vmatprep.subr.bf16.mxu1 %v3305_v24  ;;  %v3371_v27 = vld [vmem:[%s4812_s4 + $0x20c] ss:$16 sps:$4 sm:$0xff]   ;;  %v3366_v30 = vld [vmem:[%s4812_s4 + $0x5c0] ss:$16 sps:$4 sm:$0xff]   ;;  %v3369_v24 = vld [vmem:[%s4812_s4 + $0x208] ss:$16 sps:$4 sm:$0xff]  }
 0x108   :  { %v4093_v43 = vsel %vm351_vm8, %v339_v33, %v359_v39  ;;  %v3377_v33 = vld [vmem:[%s4812_s4 + $0x22c] ss:$16 sps:$4 sm:$0xff]   ;;  %v3372_v34 = vld [vmem:[%s4812_s4 + $0x5e0] ss:$16 sps:$4 sm:$0xff]   ;;  %v3375_v36 = vld [vmem:[%s4812_s4 + $0x228] ss:$16 sps:$4 sm:$0xff]  }
 0x109   :  { %v3381_v39 = vld [vmem:[%s4812_s4 + $0x248] ss:$16 sps:$4 sm:$0xff]   ;;  %v3386_v40 = vld [vmem:[%s4812_s4 + $0x624] ss:$16 sps:$4 sm:$0xff]  }
 0x10a   :  { %1829 = vmatpush1.bf16.msra.mxu0 %v3300_v37  ;;  %1915 = vmatpush1.bf16.msra.mxu1 %v3303_v38  ;;  %v3380_v37 = vld [vmem:[%s4812_s4 + $0x604] ss:$16 sps:$4 sm:$0xff]   ;;  %v4243_v38 = vpack.c.bf16 %v4062_v19, %v4062_v19  ;;  %v3389_v19 = vld [vmem:[%s4812_s4 + $0x26c] ss:$16 sps:$4 sm:$0xff]  }
 0x10b   :  { %1830 = vmatprep.subr.bf16.mxu0 %v3308_v41  ;;  %1916 = vmatprep.subr.bf16.mxu1 %v3311_v42  ;;  %v3384_v41 = vld [vmem:[%s4812_s4 + $0x620] ss:$16 sps:$4 sm:$0xff]   ;;  %v3387_v42 = vld [vmem:[%s4812_s4 + $0x268] ss:$16 sps:$4 sm:$0xff]  }
 0x10e   :  { %1831 = vmatpush1.bf16.msra.mxu0 %v3306_v44  ;;  %1917 = vmatpush1.bf16.msra.mxu1 %v3309_v29  ;;  %v3392_v44 = vld [vmem:[%s4812_s4 + $0x644] ss:$16 sps:$4 sm:$0xff]   ;;  %v3395_v29 = vld [vmem:[%s4812_s4 + $0x28c] ss:$16 sps:$4 sm:$0xff]  }
 0x10f   :  { %1832 = vmatprep.subr.bf16.mxu0 %v3314_v45  ;;  %1918 = vmatprep.subr.bf16.mxu1 %v3317_v47  ;;  %v3390_v45 = vld [vmem:[%s4812_s4 + $0x640] ss:$16 sps:$4 sm:$0xff]   ;;  %v3393_v47 = vld [vmem:[%s4812_s4 + $0x288] ss:$16 sps:$4 sm:$0xff]  }
 0x112   :  { %1833 = vmatpush1.bf16.msra.mxu0 %v3312_v48  ;;  %1919 = vmatpush1.bf16.msra.mxu1 %v3315_v49  ;;  %v3398_v48 = vld [vmem:[%s4812_s4 + $0x664] ss:$16 sps:$4 sm:$0xff]   ;;  %v3401_v49 = vld [vmem:[%s4812_s4 + $0x2ac] ss:$16 sps:$4 sm:$0xff]  }
 0x113   :  { %1834 = vmatprep.subr.bf16.mxu0 %v3320_v50  ;;  %1920 = vmatprep.subr.bf16.mxu1 %v3323_v51  ;;  %v3396_v50 = vld [vmem:[%s4812_s4 + $0x660] ss:$16 sps:$4 sm:$0xff]   ;;  %v3399_v51 = vld [vmem:[%s4812_s4 + $0x2a8] ss:$16 sps:$4 sm:$0xff]  }
 0x116   :  { %1835 = vmatpush1.bf16.msra.mxu0 %v3318_v52  ;;  %1921 = vmatpush1.bf16.msra.mxu1 %v3321_v53  ;;  %v3404_v52 = vld [vmem:[%s4812_s4 + $0x684] ss:$16 sps:$4 sm:$0xff]   ;;  %v3407_v53 = vld [vmem:[%s4812_s4 + $0x2cc] ss:$16 sps:$4 sm:$0xff]  }
 0x117   :  { %1836 = vmatprep.subr.bf16.mxu0 %v3326_v54  ;;  %1922 = vmatprep.subr.bf16.mxu1 %v3329_v55  ;;  %v3402_v54 = vld [vmem:[%s4812_s4 + $0x680] ss:$16 sps:$4 sm:$0xff]   ;;  %v3405_v55 = vld [vmem:[%s4812_s4 + $0x2c8] ss:$16 sps:$4 sm:$0xff]  }
 0x11a   :  { %1837 = vmatpush1.bf16.msra.mxu0 %v3324_v56  ;;  %1923 = vmatpush1.bf16.msra.mxu1 %v3327_v57  ;;  %v3410_v56 = vld [vmem:[%s4812_s4 + $0x6a4] ss:$16 sps:$4 sm:$0xff]   ;;  %v3413_v57 = vld [vmem:[%s4812_s4 + $0x2ec] ss:$16 sps:$4 sm:$0xff]  }
 0x11b   :  { %1838 = vmatprep.subr.bf16.mxu0 %v3332_v58  ;;  %1924 = vmatprep.subr.bf16.mxu1 %v3335_v59  ;;  %v3408_v58 = vld [vmem:[%s4812_s4 + $0x6a0] ss:$16 sps:$4 sm:$0xff]   ;;  %v3411_v59 = vld [vmem:[%s4812_s4 + $0x2e8] ss:$16 sps:$4 sm:$0xff]  }
 0x11e   :  { %1839 = vmatpush1.bf16.msra.mxu0 %v3330_v60  ;;  %1925 = vmatpush1.bf16.msra.mxu1 %v3333_v62  ;;  %v3416_v60 = vld [vmem:[%s4812_s4 + $0x6c4] ss:$16 sps:$4 sm:$0xff]   ;;  %v3419_v62 = vld [vmem:[%s4812_s4 + $0x30c] ss:$16 sps:$4 sm:$0xff]  }
 0x11f   :  { %1840 = vmatprep.subr.bf16.mxu0 %v3338_v63  ;;  %1926 = vmatprep.subr.bf16.mxu1 %v3341_v1  ;;  %v3414_v63 = vld [vmem:[%s4812_s4 + $0x6c0] ss:$16 sps:$4 sm:$0xff]   ;;  %v3417_v1 = vld [vmem:[%s4812_s4 + $0x308] ss:$16 sps:$4 sm:$0xff]  }
 0x122   :  { %1841 = vmatpush1.bf16.msra.mxu0 %v3336_v3  ;;  %1927 = vmatpush1.bf16.msra.mxu1 %v3339_v4  ;;  %v3422_v3 = vld [vmem:[%s4812_s4 + $0x6e4] ss:$16 sps:$4 sm:$0xff]   ;;  %v3425_v4 = vld [vmem:[%s4812_s4 + $0x32c] ss:$16 sps:$4 sm:$0xff]  }
 0x123   :  { %1842 = vmatprep.subr.bf16.mxu0 %v3344_v5  ;;  %1928 = vmatprep.subr.bf16.mxu1 %v3347_v6  ;;  %v3420_v5 = vld [vmem:[%s4812_s4 + $0x6e0] ss:$16 sps:$4 sm:$0xff]   ;;  %v3423_v6 = vld [vmem:[%s4812_s4 + $0x328] ss:$16 sps:$4 sm:$0xff]  }
 0x126   :  { %1843 = vmatpush1.bf16.msra.mxu0 %v3342_v7  ;;  %1929 = vmatpush1.bf16.msra.mxu1 %v3345_v8  ;;  %v3428_v7 = vld [vmem:[%s4812_s4 + $0x34c] ss:$16 sps:$4 sm:$0xff]  }
 0x127   :  { %1844 = vmatprep.subr.bf16.mxu0 %v3350_v9  ;;  %1930 = vmatprep.subr.bf16.mxu1 %v3353_v10  ;;  %v3518_v8 = vld [vmem:[%s4814_s6 + $0x4] ss:$8 sps:$4 sm:$0xff]   ;;  %v4345_v9 = vpack.c.bf16 %v4093_v43, %v4093_v43  ;;  %v3426_v10 = vld [vmem:[%s4812_s4 + $0x348] ss:$16 sps:$4 sm:$0xff]   ;;  %v3521_v43 = vld [vmem:[%s4814_s6 + $0x14] ss:$8 sps:$4 sm:$0xff]  }
 0x12a   :  { %1845 = vmatpush1.bf16.msra.mxu0 %v3348_v11  ;;  %1931 = vmatpush1.bf16.msra.mxu1 %v3351_v12  ;;  %v3516_v11 = vld [vmem:[%s4814_s6] ss:$8 sps:$4 sm:$0xff]   ;;  %v3431_v12 = vld [vmem:[%s4812_s4 + $0x36c] ss:$16 sps:$4 sm:$0xff]  }
 0x12b   :  { %1846 = vmatprep.subr.bf16.mxu0 %v3356_v13  ;;  %1932 = vmatprep.subr.bf16.mxu1 %v3359_v14  ;;  %v3429_v13 = vld [vmem:[%s4812_s4 + $0x368] ss:$16 sps:$4 sm:$0xff]  }
 0x12c   :  { %v3519_v14 = vld [vmem:[%s4814_s6 + $0x10] ss:$8 sps:$4 sm:$0xff]  }
 0x12e   :  { %1847 = vmatpush1.bf16.msra.mxu0 %v3354_v15  ;;  %1933 = vmatpush1.bf16.msra.mxu1 %v3357_v16  ;;  %v3434_v15 = vld [vmem:[%s4812_s4 + $0x38c] ss:$16 sps:$4 sm:$0xff]  }
 0x12f   :  { %1848 = vmatprep.subr.bf16.mxu0 %v3362_v17  ;;  %1934 = vmatprep.subr.bf16.mxu1 %v3365_v18  ;;  %v3524_v16 = vld [vmem:[%s4814_s6 + $0x24] ss:$8 sps:$4 sm:$0xff]   ;;  %v3432_v17 = vld [vmem:[%s4812_s4 + $0x388] ss:$16 sps:$4 sm:$0xff]  }
 0x130   :  { %v3522_v18 = vld [vmem:[%s4814_s6 + $0x20] ss:$8 sps:$4 sm:$0xff]  }
 0x132   :  { %1849 = vmatpush1.bf16.msra.mxu0 %v3360_v20  ;;  %1935 = vmatpush1.bf16.msra.mxu1 %v3363_v21  ;;  %v3437_v20 = vld [vmem:[%s4812_s4 + $0x3ac] ss:$16 sps:$4 sm:$0xff]  }
 0x133   :  { %1850 = vmatprep.subr.bf16.mxu0 %v3368_v26  ;;  %1945 = vmatprep.subr.bf16.mxu1 %v3371_v27  ;;  %v3527_v21 = vld [vmem:[%s4814_s6 + $0x34] ss:$8 sps:$4 sm:$0xff]   ;;  %v3435_v26 = vld [vmem:[%s4812_s4 + $0x3a8] ss:$16 sps:$4 sm:$0xff]  }
 0x134   :  { %v3525_v27 = vld [vmem:[%s4814_s6 + $0x30] ss:$8 sps:$4 sm:$0xff]  }
 0x135   :  { %1937 = vmatmul.mubr.bf16.vlgmr.msra.gmra.mrb[4].mxu1 %v4011_v46  ;;  %v3383_v46 = vld [vmem:[%s4812_s4 + $0x24c] ss:$16 sps:$4 sm:$0xff]  }
 0x136   :  { %1851 = vmatpush1.bf16.msra.mxu0 %v3366_v30  ;;  %1946 = vmatpush1.bf16.msra.mxu1 %v3369_v24  ;;  %v3440_v30 = vld [vmem:[%s4812_s4 + $0x3cc] ss:$16 sps:$4 sm:$0xff]  }
 0x137   :  { %1977 = vmatprep.mubr.bf16.mxu1 %v4031_v0  ;;  %1852 = vmatprep.subr.bf16.mxu0 %v3374_v31  ;;  %v3378_v0 = vld [vmem:[%s4812_s4 + $0x600] ss:$16 sps:$4 sm:$0xff]   ;;  %v3530_v24 = vld [vmem:[%s4814_s6 + $0x44] ss:$8 sps:$4 sm:$0xff]   ;;  %v3438_v31 = vld [vmem:[%s4812_s4 + $0x3c8] ss:$16 sps:$4 sm:$0xff]  }
 0x138   :  { %1947 = vmatprep.subr.bf16.mxu1 %v3377_v33  ;;  %v3528_v33 = vld [vmem:[%s4814_s6 + $0x40] ss:$8 sps:$4 sm:$0xff]  }
 0x13a   :  { %1853 = vmatpush1.bf16.msra.mxu0 %v3372_v34  ;;  %1948 = vmatpush1.bf16.msra.mxu1 %v3375_v36  ;;  %v3443_v34 = vld [vmem:[%s4812_s4 + $0x3ec] ss:$16 sps:$4 sm:$0xff]  }
 0x13b   :  { %1863 = vmatprep.subr.bf16.mxu0 %v3380_v37  ;;  %1949 = vmatprep.subr.bf16.mxu1 %v3383_v46  ;;  %v3533_v36 = vld [vmem:[%s4814_s6 + $0x54] ss:$8 sps:$4 sm:$0xff]   ;;  %v3441_v37 = vld [vmem:[%s4812_s4 + $0x3e8] ss:$16 sps:$4 sm:$0xff]  }
 0x13c   :  { %v3531_v46 = vld [vmem:[%s4814_s6 + $0x50] ss:$8 sps:$4 sm:$0xff]  }
 0x13d   :  { %1855 = vmatmul.mubr.bf16.vlgmr.msra.gmra.mrb[16].mxu0 %v4243_v38 }
 0x13e   :  { %1864 = vmatpush1.bf16.msra.mxu0 %v3378_v0  ;;  %1950 = vmatpush1.bf16.msra.mxu1 %v3381_v39  ;;  %v3446_v0 = vld [vmem:[%s4812_s4 + $0x40c] ss:$16 sps:$4 sm:$0xff]  }
 0x13f   :  { %1865 = vmatprep.subr.bf16.mxu0 %v3386_v40  ;;  %1951 = vmatprep.subr.bf16.mxu1 %v3389_v19  ;;  %v3536_v39 = vld [vmem:[%s4814_s6 + $0x64] ss:$8 sps:$4 sm:$0xff]   ;;  %v3444_v40 = vld [vmem:[%s4812_s4 + $0x408] ss:$16 sps:$4 sm:$0xff]  }
 0x140   :  { %1895 = vmatprep.mubr.bf16.mxu0 %v3667_v2  ;;  %v3449_v19 = vld [vmem:[%s4812_s4 + $0x42c] ss:$16 sps:$4 sm:$0xff]  }
 0x142   :  { %1866 = vmatpush1.bf16.msra.mxu0 %v3384_v41  ;;  %1952 = vmatpush1.bf16.msra.mxu1 %v3387_v42  ;;  %v3534_v41 = vld [vmem:[%s4814_s6 + $0x60] ss:$8 sps:$4 sm:$0xff]   ;;  %v3539_v42 = vld [vmem:[%s4814_s6 + $0x74] ss:$8 sps:$4 sm:$0xff]  }
 0x143   :  { %1867 = vmatprep.subr.bf16.mxu0 %v3392_v44  ;;  %1953 = vmatprep.subr.bf16.mxu1 %v3395_v29  ;;  %v3447_v44 = vld [vmem:[%s4812_s4 + $0x428] ss:$16 sps:$4 sm:$0xff]   ;;  %v3452_v29 = vld [vmem:[%s4812_s4 + $0x44c] ss:$16 sps:$4 sm:$0xff]  }
 0x146   :  { %1868 = vmatpush1.bf16.msra.mxu0 %v3390_v45  ;;  %1954 = vmatpush1.bf16.msra.mxu1 %v3393_v47  ;;  %v3537_v45 = vld [vmem:[%s4814_s6 + $0x70] ss:$8 sps:$4 sm:$0xff]   ;;  %v3455_v47 = vld [vmem:[%s4812_s4 + $0x46c] ss:$16 sps:$4 sm:$0xff]  }
 0x147   :  { %1869 = vmatprep.subr.bf16.mxu0 %v3398_v48  ;;  %1955 = vmatprep.subr.bf16.mxu1 %v3401_v49  ;;  %v3540_v48 = vld [vmem:[%s4814_s6 + $0x80] ss:$8 sps:$4 sm:$0xff]   ;;  %v3545_v49 = vld [vmem:[%s4814_s6 + $0x94] ss:$8 sps:$4 sm:$0xff]  }
 0x14a   :  { %1870 = vmatpush1.bf16.msra.mxu0 %v3396_v50  ;;  %1956 = vmatpush1.bf16.msra.mxu1 %v3399_v51  ;;  %v3453_v50 = vld [vmem:[%s4812_s4 + $0x468] ss:$16 sps:$4 sm:$0xff]   ;;  %v3458_v51 = vld [vmem:[%s4812_s4 + $0x48c] ss:$16 sps:$4 sm:$0xff]  }
 0x14b   :  { %1871 = vmatprep.subr.bf16.mxu0 %v3404_v52  ;;  %1957 = vmatprep.subr.bf16.mxu1 %v3407_v53  ;;  %v3543_v52 = vld [vmem:[%s4814_s6 + $0x90] ss:$8 sps:$4 sm:$0xff]   ;;  %v3548_v53 = vld [vmem:[%s4814_s6 + $0xa4] ss:$8 sps:$4 sm:$0xff]  }
 0x14e   :  { %1872 = vmatpush1.bf16.msra.mxu0 %v3402_v54  ;;  %1958 = vmatpush1.bf16.msra.mxu1 %v3405_v55  ;;  %v3456_v54 = vld [vmem:[%s4812_s4 + $0x488] ss:$16 sps:$4 sm:$0xff]   ;;  %v3461_v55 = vld [vmem:[%s4812_s4 + $0x4ac] ss:$16 sps:$4 sm:$0xff]  }
 0x14f   :  { %1873 = vmatprep.subr.bf16.mxu0 %v3410_v56  ;;  %1959 = vmatprep.subr.bf16.mxu1 %v3413_v57  ;;  %v3546_v56 = vld [vmem:[%s4814_s6 + $0xa0] ss:$8 sps:$4 sm:$0xff]   ;;  %v3551_v57 = vld [vmem:[%s4814_s6 + $0xb4] ss:$8 sps:$4 sm:$0xff]  }
 0x152   :  { %1874 = vmatpush1.bf16.msra.mxu0 %v3408_v58  ;;  %1960 = vmatpush1.bf16.msra.mxu1 %v3411_v59  ;;  %v3459_v58 = vld [vmem:[%s4812_s4 + $0x4a8] ss:$16 sps:$4 sm:$0xff]   ;;  %v3464_v59 = vld [vmem:[%s4812_s4 + $0x4cc] ss:$16 sps:$4 sm:$0xff]  }
 0x153   :  { %1875 = vmatprep.subr.bf16.mxu0 %v3416_v60  ;;  %1961 = vmatprep.subr.bf16.mxu1 %v3419_v62  ;;  %v3549_v60 = vld [vmem:[%s4814_s6 + $0xb0] ss:$8 sps:$4 sm:$0xff]   ;;  %v3554_v62 = vld [vmem:[%s4814_s6 + $0xc4] ss:$8 sps:$4 sm:$0xff]  }
 0x156   :  { %1876 = vmatpush1.bf16.msra.mxu0 %v3414_v63  ;;  %1962 = vmatpush1.bf16.msra.mxu1 %v3417_v1  ;;  %v3462_v63 = vld [vmem:[%s4812_s4 + $0x4c8] ss:$16 sps:$4 sm:$0xff]   ;;  %v3467_v1 = vld [vmem:[%s4812_s4 + $0x4ec] ss:$16 sps:$4 sm:$0xff]  }
 0x157   :  { %1877 = vmatprep.subr.bf16.mxu0 %v3422_v3  ;;  %1963 = vmatprep.subr.bf16.mxu1 %v3425_v4  ;;  %v3552_v3 = vld [vmem:[%s4814_s6 + $0xc0] ss:$8 sps:$4 sm:$0xff]   ;;  %v3557_v4 = vld [vmem:[%s4814_s6 + $0xd4] ss:$8 sps:$4 sm:$0xff]  }
 0x15a   :  { %1878 = vmatpush1.bf16.msra.mxu0 %v3420_v5  ;;  %1964 = vmatpush1.bf16.msra.mxu1 %v3423_v6  ;;  %v3465_v5 = vld [vmem:[%s4812_s4 + $0x4e8] ss:$16 sps:$4 sm:$0xff]   ;;  %v3470_v6 = vld [vmem:[%s4812_s4 + $0x50c] ss:$16 sps:$4 sm:$0xff]  }
 0x15b   :  { %1965 = vmatprep.subr.bf16.mxu1 %v3428_v7  ;;  %2482 = vmatprep.subr.bf16.mxu0 %v3518_v8  ;;  %v3555_v7 = vld [vmem:[%s4814_s6 + $0xd0] ss:$8 sps:$4 sm:$0xff]  }
 0x15c   :  { %v3468_v8 = vld [vmem:[%s4812_s4 + $0x508] ss:$16 sps:$4 sm:$0xff]  }
 0x15d   :  { %1896 = vmatmul.mubr.bf16.vlgmr.msra.gmra.mrb[16].mxu0 %v4345_v9 }
 0x15e   :  { %1966 = vmatpush1.bf16.msra.mxu1 %v3426_v10  ;;  %2483 = vmatpush1.bf16.msra.mxu0 %v3516_v11  ;;  %v3473_v10 = vld [vmem:[%s4812_s4 + $0x52c] ss:$16 sps:$4 sm:$0xff]   ;;  %v3471_v11 = vld [vmem:[%s4812_s4 + $0x528] ss:$16 sps:$4 sm:$0xff]  }
 0x15f   :  { %1967 = vmatprep.subr.bf16.mxu1 %v3431_v12  ;;  %2484 = vmatprep.subr.bf16.mxu0 %v3521_v43  ;;  %v3476_v12 = vld [vmem:[%s4812_s4 + $0x54c] ss:$16 sps:$4 sm:$0xff]   ;;  %v3474_v43 = vld [vmem:[%s4812_s4 + $0x548] ss:$16 sps:$4 sm:$0xff]  }
 0x162   :  { %1968 = vmatpush1.bf16.msra.mxu1 %v3429_v13  ;;  %2485 = vmatpush1.bf16.msra.mxu0 %v3519_v14  ;;  %v3479_v13 = vld [vmem:[%s4812_s4 + $0x56c] ss:$16 sps:$4 sm:$0xff]   ;;  %v3477_v14 = vld [vmem:[%s4812_s4 + $0x568] ss:$16 sps:$4 sm:$0xff]  }
 0x163   :  { %1969 = vmatprep.subr.bf16.mxu1 %v3434_v15  ;;  %2486 = vmatprep.subr.bf16.mxu0 %v3524_v16  ;;  %v3482_v15 = vld [vmem:[%s4812_s4 + $0x58c] ss:$16 sps:$4 sm:$0xff]   ;;  %v3480_v16 = vld [vmem:[%s4812_s4 + $0x588] ss:$16 sps:$4 sm:$0xff]  }
 0x166   :  { %1970 = vmatpush1.bf16.msra.mxu1 %v3432_v17  ;;  %2487 = vmatpush1.bf16.msra.mxu0 %v3522_v18  ;;  %v3485_v17 = vld [vmem:[%s4812_s4 + $0x5ac] ss:$16 sps:$4 sm:$0xff]   ;;  %v3483_v18 = vld [vmem:[%s4812_s4 + $0x5a8] ss:$16 sps:$4 sm:$0xff]  }
 0x167   :  { %1971 = vmatprep.subr.bf16.mxu1 %v3437_v20  ;;  %2488 = vmatprep.subr.bf16.mxu0 %v3527_v21  ;;  %v3488_v20 = vld [vmem:[%s4812_s4 + $0x5cc] ss:$16 sps:$4 sm:$0xff]   ;;  %v3486_v21 = vld [vmem:[%s4812_s4 + $0x5c8] ss:$16 sps:$4 sm:$0xff]  }
 0x16a   :  { %1972 = vmatpush1.bf16.msra.mxu1 %v3435_v26  ;;  %2489 = vmatpush1.bf16.msra.mxu0 %v3525_v27  ;;  %v3491_v26 = vld [vmem:[%s4812_s4 + $0x5ec] ss:$16 sps:$4 sm:$0xff]   ;;  %v3489_v27 = vld [vmem:[%s4812_s4 + $0x5e8] ss:$16 sps:$4 sm:$0xff]  }
 0x16b   :  { %1973 = vmatprep.subr.bf16.mxu1 %v3440_v30  ;;  %2490 = vmatprep.subr.bf16.mxu0 %v3530_v24  ;;  %v3494_v30 = vld [vmem:[%s4812_s4 + $0x60c] ss:$16 sps:$4 sm:$0xff]  }
 0x16c   :  { %v3560_v24 = vld [vmem:[%s4814_s6 + $0xe4] ss:$8 sps:$4 sm:$0xff]  }
 0x16e   :  { %1974 = vmatpush1.bf16.msra.mxu1 %v3438_v31  ;;  %2491 = vmatpush1.bf16.msra.mxu0 %v3528_v33  ;;  %v3492_v31 = vld [vmem:[%s4812_s4 + $0x608] ss:$16 sps:$4 sm:$0xff]  }
 0x16f   :  { %1975 = vmatprep.subr.bf16.mxu1 %v3443_v34  ;;  %2492 = vmatprep.subr.bf16.mxu0 %v3533_v36  ;;  %v3558_v33 = vld [vmem:[%s4814_s6 + $0xe0] ss:$8 sps:$4 sm:$0xff]   ;;  %v3497_v34 = vld [vmem:[%s4812_s4 + $0x62c] ss:$16 sps:$4 sm:$0xff]  }
 0x170   :  { %v3563_v36 = vld [vmem:[%s4814_s6 + $0xf4] ss:$8 sps:$4 sm:$0xff]  }
 0x172   :  { %1976 = vmatpush1.bf16.msra.mxu1 %v3441_v37  ;;  %2493 = vmatpush1.bf16.msra.mxu0 %v3531_v46  ;;  %v3495_v37 = vld [vmem:[%s4812_s4 + $0x628] ss:$16 sps:$4 sm:$0xff]  }
 0x173   :  { %1986 = vmatprep.subr.bf16.mxu1 %v3446_v0  ;;  %2494 = vmatprep.subr.bf16.mxu0 %v3536_v39  ;;  %v3561_v46 = vld [vmem:[%s4814_s6 + $0xf0] ss:$8 sps:$4 sm:$0xff]   ;;  %v3503_v39 = vld [vmem:[%s4812_s4 + $0x66c] ss:$16 sps:$4 sm:$0xff]  }
 0x174   :  { %v3498_v0 = vld [vmem:[%s4812_s4 + $0x648] ss:$16 sps:$4 sm:$0xff]  }
 0x175   :  { %1978 = vmatmul.mubr.bf16.vlgmr.msra.gmra.mrb[4].mxu1 %v4028_v61  ;;  %v3542_v61 = vld [vmem:[%s4814_s6 + $0x84] ss:$8 sps:$4 sm:$0xff]  }
 0x176   :  { %1987 = vmatpush1.bf16.msra.mxu1 %v3444_v40  ;;  %2018 = vmatprep.mubr.bf16.mxu1 %v4071_v28  ;;  %v3450_v28 = vld [vmem:[%s4812_s4 + $0x448] ss:$16 sps:$4 sm:$0xff]  }
 0x177   :  { %1988 = vmatprep.subr.bf16.mxu1 %v3449_v19  ;;  %2495 = vmatpush1.bf16.msra.mxu0 %v3534_v41  ;;  %v3501_v40 = vld [vmem:[%s4812_s4 + $0x668] ss:$16 sps:$4 sm:$0xff]   ;;  %v3506_v19 = vld [vmem:[%s4812_s4 + $0x68c] ss:$16 sps:$4 sm:$0xff]  }
 0x178   :  { %2496 = vmatprep.subr.bf16.mxu0 %v3539_v42  ;;  %v3504_v41 = vld [vmem:[%s4812_s4 + $0x688] ss:$16 sps:$4 sm:$0xff]   ;;  %v3509_v42 = vld [vmem:[%s4812_s4 + $0x6ac] ss:$16 sps:$4 sm:$0xff]  }
 0x17a   :  { %1989 = vmatpush1.bf16.msra.mxu1 %v3447_v44  ;;  %v3507_v44 = vld [vmem:[%s4812_s4 + $0x6a8] ss:$16 sps:$4 sm:$0xff]  }
 0x17b   :  { %1990 = vmatprep.subr.bf16.mxu1 %v3452_v29  ;;  %2497 = vmatpush1.bf16.msra.mxu0 %v3537_v45  ;;  %v3512_v29 = vld [vmem:[%s4812_s4 + $0x6cc] ss:$16 sps:$4 sm:$0xff]  }
 0x17c   :  { %2498 = vmatprep.subr.bf16.mxu0 %v3542_v61 }
 0x17e   :  { %1991 = vmatpush1.bf16.msra.mxu1 %v3450_v28 }
 0x17f   :  { %1992 = vmatprep.subr.bf16.mxu1 %v3455_v47  ;;  %2499 = vmatpush1.bf16.msra.mxu0 %v3540_v48  ;;  %v3510_v47 = vld [vmem:[%s4812_s4 + $0x6c8] ss:$16 sps:$4 sm:$0xff]  }
 0x180   :  { %2500 = vmatprep.subr.bf16.mxu0 %v3545_v49  ;;  %v3515_v49 = vld [vmem:[%s4812_s4 + $0x6ec] ss:$16 sps:$4 sm:$0xff]  }
 0x182   :  { %1993 = vmatpush1.bf16.msra.mxu1 %v3453_v50  ;;  %v3513_v50 = vld [vmem:[%s4812_s4 + $0x6e8] ss:$16 sps:$4 sm:$0xff]  }
 0x183   :  { %1994 = vmatprep.subr.bf16.mxu1 %v3458_v51  ;;  %2501 = vmatpush1.bf16.msra.mxu0 %v3543_v52  ;;  %v4629_v51 = vld [vmem:[%s4813_s5] sm:$0xf] }
 0x184   :  { %2502 = vmatprep.subr.bf16.mxu0 %v3548_v53  ;;  %v603_v52 = vrot.slane %v4629_v51, %v3982_v23  ;;  %v607_v53 = vrot.slane %v4629_v51, %v3990_v25 }
 0x186   :  { %1995 = vmatpush1.bf16.msra.mxu1 %v3456_v54 }
 0x187   :  { %1996 = vmatprep.subr.bf16.mxu1 %v3461_v55  ;;  %2503 = vmatpush1.bf16.msra.mxu0 %v3546_v56 }
 0x188   :  { %2504 = vmatprep.subr.bf16.mxu0 %v3551_v57  ;;  %v4635_v57 = vstv %s3007_s3 }
 0x18a   :  { %1997 = vmatpush1.bf16.msra.mxu1 %v3459_v58 }
 0x18b   :  { %1998 = vmatprep.subr.bf16.mxu1 %v3464_v59  ;;  %2505 = vmatpush1.bf16.msra.mxu0 %v3549_v60 }
 0x18c   :  { %2506 = vmatprep.subr.bf16.mxu0 %v3554_v62  ;;  %v3612_v62 = vld [vmem:[%s4816_s8 + $0x40] sm:$0xff]  }
 0x18e   :  { %1999 = vmatpush1.bf16.msra.mxu1 %v3462_v63  ;;  %v3613_v63 = vld [vmem:[%s4816_s8] sm:$0xff]  }
 0x18f   :  { %2000 = vmatprep.subr.bf16.mxu1 %v3467_v1  ;;  %2507 = vmatpush1.bf16.msra.mxu0 %v3552_v3  ;;  %v3614_v1 = vld [vmem:[%s4816_s8 + $0x48] sm:$0xff]  }
 0x190   :  { %2508 = vmatprep.subr.bf16.mxu0 %v3557_v4 }
 0x192   :  { %2001 = vmatpush1.bf16.msra.mxu1 %v3465_v5 }
 0x193   :  { %2002 = vmatprep.subr.bf16.mxu1 %v3470_v6  ;;  %2509 = vmatpush1.bf16.msra.mxu0 %v3555_v7  ;;  %v3615_v7 = vld [vmem:[%s4816_s8 + $0x8] sm:$0xff]  }
 0x194   :  { %2510 = vmatprep.subr.bf16.mxu0 %v3560_v24  ;;  %v3573_v24 = vld [vmem:[%s4814_s6 + $0x130] ss:$8 sps:$4 sm:$0xff]  }
 0x196   :  { %2003 = vmatpush1.bf16.msra.mxu1 %v3468_v8 }
 0x197   :  { %2004 = vmatprep.subr.bf16.mxu1 %v3473_v10  ;;  %2511 = vmatpush1.bf16.msra.mxu0 %v3558_v33  ;;  %v3616_v10 = vld [vmem:[%s4816_s8 + $0x50] sm:$0xff]   ;;  %v3623_v33 = vld [vmem:[%s4816_s8 + $0x28] sm:$0xff]  }
 0x198   :  { %2512 = vmatprep.subr.bf16.mxu0 %v3563_v36  ;;  %v3581_v36 = vld [vmem:[%s4814_s6 + $0x154] ss:$8 sps:$4 sm:$0xff]  }
 0x19a   :  { %2005 = vmatpush1.bf16.msra.mxu1 %v3471_v11 }
 0x19b   :  { %2006 = vmatprep.subr.bf16.mxu1 %v3476_v12  ;;  %2513 = vmatpush1.bf16.msra.mxu0 %v3561_v46  ;;  %v3564_v12 = vld [vmem:[%s4814_s6 + $0x100] ss:$8 sps:$4 sm:$0xff]   ;;  %v3584_v46 = vld [vmem:[%s4814_s6 + $0x164] ss:$8 sps:$4 sm:$0xff]  }
 0x19e   :  { %2007 = vmatpush1.bf16.msra.mxu1 %v3474_v43 }
 0x19f   :  { %2008 = vmatprep.subr.bf16.mxu1 %v3479_v13  ;;  %v3569_v13 = vld [vmem:[%s4814_s6 + $0x114] ss:$8 sps:$4 sm:$0xff]  }
 0x1a2   :  { %2009 = vmatpush1.bf16.msra.mxu1 %v3477_v14  ;;  %v3617_v14 = vld [vmem:[%s4816_s8 + $0x10] sm:$0xff]  }
 0x1a3   :  { %2010 = vmatprep.subr.bf16.mxu1 %v3482_v15  ;;  %v3618_v15 = vld [vmem:[%s4816_s8 + $0x58] sm:$0xff]  }
 0x1a6   :  { %2011 = vmatpush1.bf16.msra.mxu1 %v3480_v16  ;;  %v3567_v16 = vld [vmem:[%s4814_s6 + $0x110] ss:$8 sps:$4 sm:$0xff]  }
 0x1a7   :  { %2012 = vmatprep.subr.bf16.mxu1 %v3485_v17  ;;  %v3572_v17 = vld [vmem:[%s4814_s6 + $0x124] ss:$8 sps:$4 sm:$0xff]  }
 0x1aa   :  { %2013 = vmatpush1.bf16.msra.mxu1 %v3483_v18  ;;  %v3619_v18 = vld [vmem:[%s4816_s8 + $0x18] sm:$0xff]  }
 0x1ab   :  { %2014 = vmatprep.subr.bf16.mxu1 %v3488_v20  ;;  %v3620_v20 = vld [vmem:[%s4816_s8 + $0x60] sm:$0xff]  }
 0x1ae   :  { %2015 = vmatpush1.bf16.msra.mxu1 %v3486_v21  ;;  %v3570_v21 = vld [vmem:[%s4814_s6 + $0x120] ss:$8 sps:$4 sm:$0xff]  }
 0x1af   :  { %2016 = vmatprep.subr.bf16.mxu1 %v3491_v26  ;;  %v3575_v26 = vld [vmem:[%s4814_s6 + $0x134] ss:$8 sps:$4 sm:$0xff]  }
 0x1b2   :  { %2017 = vmatpush1.bf16.msra.mxu1 %v3489_v27  ;;  %v3621_v27 = vld [vmem:[%s4816_s8 + $0x20] sm:$0xff]  }
 0x1b3   :  { %2027 = vmatprep.subr.bf16.mxu1 %v3494_v30  ;;  %v3622_v30 = vld [vmem:[%s4816_s8 + $0x68] sm:$0xff]  }
 0x1b5   :  { %2019 = vmatmul.mubr.bf16.vlgmr.msra.gmra.mrb[4].mxu1 %v4243_v38  ;;  %v3500_v38 = vld [vmem:[%s4812_s4 + $0x64c] ss:$16 sps:$4 sm:$0xff]  }
 0x1b6   :  { %2028 = vmatpush1.bf16.msra.mxu1 %v3492_v31  ;;  %2059 = vmatprep.mubr.bf16.mxu1 %v3667_v2  ;;  %v3566_v2 = vld [vmem:[%s4814_s6 + $0x104] ss:$8 sps:$4 sm:$0xff]  }
 0x1b7   :  { %2029 = vmatprep.subr.bf16.mxu1 %v3497_v34  ;;  %2523 = vmatprep.subr.bf16.mxu0 %v3566_v2  ;;  %v3578_v31 = vld [vmem:[%s4814_s6 + $0x144] ss:$8 sps:$4 sm:$0xff]   ;;  %v3576_v34 = vld [vmem:[%s4814_s6 + $0x140] ss:$8 sps:$4 sm:$0xff]   ;;  %v3585_v2 = vld [vmem:[%s4814_s6 + $0x170] ss:$8 sps:$4 sm:$0xff]  }
 0x1ba   :  { %2030 = vmatpush1.bf16.msra.mxu1 %v3495_v37  ;;  %v3579_v37 = vld [vmem:[%s4814_s6 + $0x150] ss:$8 sps:$4 sm:$0xff]  }
 0x1bb   :  { %2031 = vmatprep.subr.bf16.mxu1 %v3500_v38  ;;  %v3582_v38 = vld [vmem:[%s4814_s6 + $0x160] ss:$8 sps:$4 sm:$0xff]  }
 0x1be   :  { %2032 = vmatpush1.bf16.msra.mxu1 %v3498_v0  ;;  %v3587_v0 = vld [vmem:[%s4814_s6 + $0x174] ss:$8 sps:$4 sm:$0xff]  }
 0x1bf   :  { %2033 = vmatprep.subr.bf16.mxu1 %v3503_v39  ;;  %v3590_v39 = vld [vmem:[%s4814_s6 + $0x184] ss:$8 sps:$4 sm:$0xff]  }
 0x1c2   :  { %2034 = vmatpush1.bf16.msra.mxu1 %v3501_v40  ;;  %v3588_v40 = vld [vmem:[%s4814_s6 + $0x180] ss:$8 sps:$4 sm:$0xff]  }
 0x1c3   :  { %2035 = vmatprep.subr.bf16.mxu1 %v3506_v19  ;;  %v3593_v19 = vld [vmem:[%s4814_s6 + $0x194] ss:$8 sps:$4 sm:$0xff]  }
 0x1c6   :  { %2036 = vmatpush1.bf16.msra.mxu1 %v3504_v41  ;;  %v3591_v41 = vld [vmem:[%s4814_s6 + $0x190] ss:$8 sps:$4 sm:$0xff]  }
 0x1c7   :  { %2037 = vmatprep.subr.bf16.mxu1 %v3509_v42  ;;  %v3596_v42 = vld [vmem:[%s4814_s6 + $0x1a4] ss:$8 sps:$4 sm:$0xff]  }
 0x1c8   :  { %v1774_v45 = vpop.f32.mrb[0].mxu1 }
 0x1c9   :  { %v1776_v61 = vpop.f32.mrb[1].mxu1  ;;  %v1775_v54 = vadd.f32 %v1774_v45, %v603_v52  ;;  %v3597_v45 = vld [vmem:[%s4814_s6 + $0x1b0] ss:$8 sps:$4 sm:$0xff]   ;;  %v3611_v52 = vld [vmem:[%s4814_s6 + $0x1f4] ss:$8 sps:$4 sm:$0xff]  }
 0x1ca   :  { %2038 = vmatpush1.bf16.msra.mxu1 %v3507_v44  ;;  %v1778_v28 = vpop.f32.mrb[2].mxu1  ;;  %v1777_v55 = vadd.f32 %v1776_v61, %v607_v53  ;;  %v3594_v44 = vld [vmem:[%s4814_s6 + $0x1a0] ss:$8 sps:$4 sm:$0xff]   ;;  %v3602_v61 = vld [vmem:[%s4814_s6 + $0x1c4] ss:$8 sps:$4 sm:$0xff]  }
 0x1cb   :  { %v1779_v48 = vpop.f32.mrb[3].mxu1  ;;  %2039 = vmatprep.subr.bf16.mxu1 %v3512_v29  ;;  %v3599_v29 = vld [vmem:[%s4814_s6 + $0x1b4] ss:$8 sps:$4 sm:$0xff]   ;;  %v3600_v28 = vld [vmem:[%s4814_s6 + $0x1c0] ss:$8 sps:$4 sm:$0xff]  }
 0x1cc   :  { %v3603_v48 = vld [vmem:[%s4814_s6 + $0x1d0] ss:$8 sps:$4 sm:$0xff]  }
 0x1cd   :  { %v3609_v53 = vld [vmem:[%s4814_s6 + $0x1f0] ss:$8 sps:$4 sm:$0xff]  }
 0x1ce   :  { %2040 = vmatpush1.bf16.msra.mxu1 %v3510_v47  ;;  %v3605_v47 = vld [vmem:[%s4814_s6 + $0x1d4] ss:$8 sps:$4 sm:$0xff]  }
 0x1cf   :  { %2041 = vmatprep.subr.bf16.mxu1 %v3515_v49  ;;  %v3608_v49 = vld [vmem:[%s4814_s6 + $0x1e4] ss:$8 sps:$4 sm:$0xff]  }
 0x1d2   :  { %2042 = vmatpush1.bf16.msra.mxu1 %v3513_v50  ;;  %v3606_v50 = vld [vmem:[%s4814_s6 + $0x1e0] ss:$8 sps:$4 sm:$0xff]  }
 0x1d3   :  { %3093 = vmatprep.subr.bf16.mxu1 %v3612_v62 }
 0x1d5   :  { %2060 = vmatmul.mubr.bf16.vlgmr.msra.gmra.mrb[4].mxu1 %v4345_v9 }
 0x1d6   :  { %3094 = vmatpush3.bf16.msra.mxu1 %v3613_v63 }
 0x1d7   :  { %3095 = vmatprep.subr.bf16.mxu1 %v3614_v1 }
 0x1da   :  { %3096 = vmatpush3.bf16.msra.mxu1 %v3615_v7 }
 0x1db   :  { %3097 = vmatprep.subr.bf16.mxu1 %v3616_v10 }
 0x1de   :  { %3098 = vmatpush3.bf16.msra.mxu1 %v3617_v14 }
 0x1df   :  { %3099 = vmatprep.subr.bf16.mxu1 %v3618_v15 }
 0x1e2   :  { %3100 = vmatpush3.bf16.msra.mxu1 %v3619_v18 }
 0x1e3   :  { %3101 = vmatprep.subr.bf16.mxu1 %v3620_v20 }
 0x1e6   :  { %3102 = vmatpush3.bf16.msra.mxu1 %v3621_v27 }
 0x1e7   :  { %3103 = vmatprep.subr.bf16.mxu1 %v3622_v30 }
 0x1ea   :  { %3104 = vmatpush3.bf16.msra.mxu1 %v3623_v33 }
 0x1eb   :  { %3105 = vmatprep.subr.bf16.mxu1 %v3624_v22 }
 0x230   :  { %v1897_v56 = vpop.f32.mrb[16].mxu0 }
 0x231   :  { %v3124_v58 = vadd.f32 %v1897_v56, %v1775_v54  ;;  %v1899_v59 = vpop.f32.mrb[17].mxu0  ;;  %v611_v54 = vrot.slane %v4629_v51, %v80_v32 }
 0x232   :  { %v3126_v9 = vadd.f32 %v1899_v59, %v1777_v55  ;;  %v1901_v60 = vpop.f32.mrb[18].mxu0  ;;  %v615_v55 = vrot.slane %v4629_v51, %v84_v35  ;;  %v3625_v35 = vld [vmem:[%s4816_s8 + $0x30] sm:$0xff]   ;;  %v3626_v51 = vld [vmem:[%s4816_s8 + $0x78] sm:$0xff]  }
 0x233   :  { %vm2069_vm9 = vcmp.gt.f32.partialorder %v3124_v58, 0.0  ;;  %v2074_v3 = vmul.f32 %v3124_v58, %v4635_v57  ;;  %v1902_v4 = vpop.f32.mrb[19].mxu0  ;;  %3106 = vmatpush3.bf16.msra.mxu1 %v3625_v35 }
 0x234   :  { %vm2070_vm10 = vcmp.gt.f32.partialorder %v3126_v9, 0.0  ;;  %v2075_v5 = vmul.f32 %v3126_v9, %v4635_v57  ;;  %3107 = vmatprep.subr.bf16.mxu1 %v3626_v51 }
 0x235   :  { %v2078_v6 = vsel %vm2069_vm9, %v3124_v58, %v2074_v3 }
 0x236   :  { %v2079_v8 = vsel %vm2070_vm10, %v3126_v9, %v2075_v5  ;;  %v2082_v43 = vpack.c.bf16 %v2078_v6, %v2078_v6  ;;  %v2150_v6 = vld [vmem:[%s4815_s7] sm:$0x3] }
 0x237   :  { %v2083_v11 = vpack.c.bf16 %v2079_v8, %v2079_v8  ;;  %v2155_v7 = vrot.slane %v2150_v6, %v3982_v23  ;;  %v2159_v8 = vrot.slane %v2150_v6, %v3990_v25  ;;  %v3073_v25 = vld [vmem:[%s4817_s9] ss:$0 sm:$0xff] }
 0x239   :  { %2514 = vmatprep.mubr.bf16.mxu0 %v2083_v11  ;;  %v2567_v11 = vstv %s3072_s14 }
 0x23a   :  { %2515 = vmatmul.mubr.bf16.vlgmr.msra.gmra.mrb[20].mxu0 %v2082_v43 }
 0x23b   :  { %2524 = vmatpush1.bf16.msra.mxu0 %v3564_v12 }
 0x23c   :  { %2525 = vmatprep.subr.bf16.mxu0 %v3569_v13 }
 0x23f   :  { %2526 = vmatpush1.bf16.msra.mxu0 %v3567_v16 }
 0x240   :  { %2527 = vmatprep.subr.bf16.mxu0 %v3572_v17 }
 0x243   :  { %2528 = vmatpush1.bf16.msra.mxu0 %v3570_v21 }
 0x244   :  { %2529 = vmatprep.subr.bf16.mxu0 %v3575_v26 }
 0x247   :  { %2530 = vmatpush1.bf16.msra.mxu0 %v3573_v24 }
 0x248   :  { %2531 = vmatprep.subr.bf16.mxu0 %v3578_v31 }
 0x24b   :  { %2532 = vmatpush1.bf16.msra.mxu0 %v3576_v34 }
 0x24c   :  { %2533 = vmatprep.subr.bf16.mxu0 %v3581_v36 }
 0x24f   :  { %2534 = vmatpush1.bf16.msra.mxu0 %v3579_v37 }
 0x250   :  { %2535 = vmatprep.subr.bf16.mxu0 %v3584_v46 }
 0x253   :  { %2536 = vmatpush1.bf16.msra.mxu0 %v3582_v38 }
 0x254   :  { %2537 = vmatprep.subr.bf16.mxu0 %v3587_v0 }
 0x257   :  { %2538 = vmatpush1.bf16.msra.mxu0 %v3585_v2 }
 0x258   :  { %2539 = vmatprep.subr.bf16.mxu0 %v3590_v39 }
 0x25b   :  { %2540 = vmatpush1.bf16.msra.mxu0 %v3588_v40 }
 0x25c   :  { %2541 = vmatprep.subr.bf16.mxu0 %v3593_v19 }
 0x25f   :  { %2542 = vmatpush1.bf16.msra.mxu0 %v3591_v41 }
 0x260   :  { %2543 = vmatprep.subr.bf16.mxu0 %v3596_v42 }
 0x263   :  { %2544 = vmatpush1.bf16.msra.mxu0 %v3594_v44 }
 0x264   :  { %2545 = vmatprep.subr.bf16.mxu0 %v3599_v29 }
 0x267   :  { %2546 = vmatpush1.bf16.msra.mxu0 %v3597_v45 }
 0x268   :  { %2547 = vmatprep.subr.bf16.mxu0 %v3602_v61 }
 0x26b   :  { %2548 = vmatpush1.bf16.msra.mxu0 %v3600_v28 }
 0x26c   :  { %2549 = vmatprep.subr.bf16.mxu0 %v3605_v47 }
 0x26f   :  { %2550 = vmatpush1.bf16.msra.mxu0 %v3603_v48 }
 0x270   :  { %2551 = vmatprep.subr.bf16.mxu0 %v3608_v49 }
 0x273   :  { %2552 = vmatpush1.bf16.msra.mxu0 %v3606_v50 }
 0x274   :  { %2553 = vmatprep.subr.bf16.mxu0 %v3611_v52 }
 0x277   :  { %2554 = vmatpush1.bf16.msra.mxu0 %v3609_v53 }
 0x2a8   :  { %v2061_v56 = vpop.f32.mrb[4].mxu1 }
 0x2a9   :  { %v3127_v58 = vadd.f32 %v2061_v56, %v611_v54  ;;  %v2063_v59 = vpop.f32.mrb[5].mxu1 }
 0x2aa   :  { %v3128_v9 = vadd.f32 %v2063_v59, %v615_v55  ;;  %v2065_v60 = vpop.f32.mrb[6].mxu1 }
 0x2ab   :  { %vm2071_vm11 = vcmp.gt.f32.partialorder %v3127_v58, 0.0  ;;  %v2076_v62 = vmul.f32 %v3127_v58, %v4635_v57  ;;  %v2066_v63 = vpop.f32.mrb[7].mxu1 }
 0x2ac   :  { %vm2072_vm12 = vcmp.gt.f32.partialorder %v3128_v9, 0.0  ;;  %v2077_v1 = vmul.f32 %v3128_v9, %v4635_v57  ;;  %v3627_v57 = vld [vmem:[%s4816_s8 + $0x38] sm:$0xff]  }
 0x2ad   :  { %v2080_v3 = vsel %vm2071_vm11, %v3127_v58, %v2076_v62  ;;  %3108 = vmatpush3.bf16.msra.mxu1 %v3627_v57 }
 0x2ae   :  { %v2081_v4 = vsel %vm2072_vm12, %v3128_v9, %v2077_v1  ;;  %v2084_v32 = vpack.c.bf16 %v2080_v3, %v2080_v3 }
 0x2af   :  { %v2085_v5 = vpack.c.bf16 %v2081_v4, %v2081_v4 }
 0x2b1   :  { %2555 = vmatprep.mubr.bf16.mxu0 %v2085_v5 }
 0x2b2   :  { %2556 = vmatmul.mubr.bf16.vlgmr.msra.gmra.mrb[20].mxu0 %v2084_v32 }
 0x385   :  { %v2557_v10 = vpop.f32.mrb[20].mxu0 }
 0x386   :  { %v3129_v12 = vadd.f32 %v2557_v10, %v2155_v7  ;;  %v2559_v43 = vpop.f32.mrb[21].mxu0 }
 0x387   :  { %v3130_v13 = vadd.f32 %v2559_v43, %v2159_v8  ;;  %v2561_v14 = vpop.f32.mrb[22].mxu0 }
 0x388   :  { %vm2565_vm13 = vcmp.gt.f32.partialorder %v3129_v12, 0.0  ;;  %v2568_v15 = vmul.f32 %v3129_v12, %v2567_v11  ;;  %v2562_v16 = vpop.f32.mrb[23].mxu0 }
 0x389   :  { %vm2566_vm14 = vcmp.gt.f32.partialorder %v3130_v13, 0.0  ;;  %v2569_v17 = vmul.f32 %v3130_v13, %v2567_v11 }
 0x38a   :  { %v2570_v18 = vsel %vm2565_vm13, %v3129_v12, %v2568_v15 }
 0x38b   :  { %v2571_v20 = vsel %vm2566_vm14, %v3130_v13, %v2569_v17  ;;  %v2572_v26 = vpack.c.bf16 %v2570_v18, %v2570_v18 }
 0x38c   :  { %v2573_v21 = vpack.c.bf16 %v2571_v20, %v2571_v20 }
 0x38e   :  { %2741 = vmatprep.mubr.bf16.mxu1 %v2573_v21 }
 0x38f   :  { %2742 = vmatmul.mubr.bf16.vlgmr.msra.gmra.mrb[8].mxu1 %v2572_v26 }
 0x462   :  { %v3109_v23 = vpop.f32.mrb[8].mxu1 }
 0x463   :  { %v3110_v27 = vpop.f32.mrb[9].mxu1 }
 0x464   :  { %v3111_v30 = vadd.f32 %v3110_v27, %v3109_v23  ;;  %v3112_v24 = vpop.f32.mrb[10].mxu1 }
 0x465   :  { %v3113_v31 = vpop.f32.mrb[11].mxu1 }
 0x466   :  { %v2744_v33 = vadd.f32 %v3111_v30, %v3073_v25 }
 0x468   :  { %2749 = vst [vmem:[#allocation5] sm:$0xff] %v2744_v33 }
 0x469   :  { %3651 = shalt.err (!%p3648_p9)
}
 0x46a   :  { %s3652_s0 = scalar_lea.hbm %s4818_s10, 128 }
 0x46b   :  { %p3653_p10 = scmp.ne.s32.totalorder %s4818_s10, %s3652_s0  ;;  %p3656_p11 = scmp.lt.u32.totalorder %s3652_s0, %s4818_s10 }
 0x46d   :  { %p3658_p12 = pnand %p3656_p11, %p3653_p10 }
 0x46f   :  { %3661 = shalt.err (!%p3658_p12)
}
 0x470   :  { %2759 = dma.vmem_to_hbm [thread:$0]  %s2757_s18, 128, %s4818_s10, [#allocation3]  }
 0x471   :  { %3664 = dma.done.wait [#allocation3], 128  }
 0x472   :  { %3665 = vsyncadd [#allocation3], 4294967168 }
 0x473   :  { %2763 = vsyncpa [#allocation3], 1 }
 0x474   :  { %2764 = vsyncpa [#allocation4], 1 }

</bundles_post_ra>
